<compile_context>
chip_gen: v7x
topology: tpu7x:2x2x1
jax: 0.10.0
libtpu: 0.0.40
codegen_flags: <defaults>
</compile_context>

<pallas_src>
import functools

import numpy as np
import jax
import jax.numpy as jnp
from jax.experimental import pallas as pl
from jax.experimental.pallas import tpu as pltpu


# ----------------------------------------------------------------------------
# Small padding helpers (wrapper-side layout plumbing)
# ----------------------------------------------------------------------------
def _round_up(n, m):
    return ((n + m - 1) // m) * m


def _pad_to(a, shape):
    pads = [(0, t - s) for s, t in zip(a.shape, shape)]
    if all(p == (0, 0) for p in pads):
        return a
    return jnp.pad(a, pads)


def _pad_gate_cols(w, H, Hp):
    """(..., 4H) -> (..., 4Hp): gate g's real H columns land at [g*Hp, g*Hp+H)."""
    if Hp == H:
        return w
    parts = []
    for g in range(4):
        blk = w[..., g * H:(g + 1) * H]
        blk = jnp.pad(blk, [(0, 0)] * (w.ndim - 1) + [(0, Hp - H)])
        parts.append(blk)
    return jnp.concatenate(parts, axis=-1)


def _nbytes(shape, dtype):
    return int(np.prod(shape)) * jnp.dtype(dtype).itemsize


def _sigmoid(x):
    # sigmoid(x) == 0.5*tanh(0.5*x) + 0.5 : one EUP push instead of exp+recip.
    return 0.5 * jnp.tanh(0.5 * x) + 0.5


# ----------------------------------------------------------------------------
# Pallas kernel: stacked LSTM over time + final fc (per batch block)
# ----------------------------------------------------------------------------
def _lstm_rec_kernel(num_layers, seq_len, bb, hp, *refs):
    # refs = (gx0, h0, whh_0..whh_{NL-1}, [wih_l, b_l for l=1..NL-1],
    #         fcw, fcb, out, [seq_scratch, gx_scratch if NL>1])
    f32, bf16 = jnp.float32, jnp.bfloat16
    L, BB, Hp = seq_len, bb, hp

    gx0_ref, h0_ref = refs[0], refs[1]
    whh_refs = refs[2:2 + num_layers]
    rest = refs[2 + num_layers:]
    wih_refs = [rest[2 * l] for l in range(num_layers - 1)]
    b_refs = [rest[2 * l + 1] for l in range(num_layers - 1)]
    rest = rest[2 * (num_layers - 1):]
    fcw_ref, fcb_ref, out_ref = rest[0], rest[1], rest[2]
    if num_layers > 1:
        seq_ref, gx_ref = rest[3], rest[4]

    h = None
    for layer in range(num_layers):
        is_last_layer = (layer == num_layers - 1)

        if layer > 0:
            # Hoisted input projection for ALL timesteps at once (bias folded).
            xin = seq_ref[...].reshape(L * BB, Hp)                 # bf16
            gx_ref[...] = (jnp.dot(xin, wih_refs[layer - 1][...],
                                   preferred_element_type=f32)
                           + b_refs[layer - 1][...])               # (L*BB, 4Hp) f32

        h = h0_ref[layer]                                          # (BB, Hp) f32
        c = jnp.zeros_like(h)

        # Static unroll over time (L is compile-time known and small here).
        for t in range(L):
            if layer == 0:
                gxt = gx0_ref[t]                                   # precomputed in XLA
            else:
                gxt = gx_ref[pl.ds(t * BB, BB), :]
            # Weight ref indexed directly inside the dot (stays in VMEM, not
            # held live across the unrolled loop as vregs).
            gates = gxt + jnp.dot(h.astype(bf16), whh_refs[layer][...],
                                  preferred_element_type=f32)
            # 128-lane-aligned gate slices (Hp is a multiple of 128).
            i_g = _sigmoid(gates[:, 0:Hp])
            f_g = _sigmoid(gates[:, Hp:2 * Hp])
            g_g = jnp.tanh(gates[:, 2 * Hp:3 * Hp])
            o_g = _sigmoid(gates[:, 3 * Hp:4 * Hp])
            c = f_g * c + i_g * g_g
            h = o_g * jnp.tanh(c)
            if not is_last_layer:
                seq_ref[t] = h.astype(bf16)      # feed next layer; dead for last

    # hn[-1] @ fc_w^T + fc_b  -> (BB, Np)  (lane-dense output block)
    out_ref[...] = (jnp.dot(h.astype(jnp.bfloat16), fcw_ref[...],
                            preferred_element_type=jnp.float32)
                    + fcb_ref[...])


def lstm_rec_pallas(gx0, h0_lbh, whh_list, wih_list, b_list, fc_w_t, fc_b, BB):
    L, B_pad, G = gx0.shape                       # G = 4*Hp
    num_layers, _, Hp = h0_lbh.shape
    Np = fc_w_t.shape[-1]
    n_bblocks = B_pad // BB

    args = [gx0, h0_lbh]
    in_specs = [
        pl.BlockSpec((L, BB, G), lambda b: (0, b, 0)),
        pl.BlockSpec((num_layers, BB, Hp), lambda b: (0, b, 0)),
    ]
    for whh in whh_list:
        args.append(whh)
        in_specs.append(pl.BlockSpec(whh.shape, lambda b: (0, 0)))
    for wih, bias in zip(wih_list, b_list):
        args += [wih, bias]
        in_specs += [pl.BlockSpec(wih.shape, lambda b: (0, 0)),
                     pl.BlockSpec(bias.shape, lambda b: (0, 0))]
    args += [fc_w_t, fc_b]
    in_specs += [pl.BlockSpec(fc_w_t.shape, lambda b: (0, 0)),
                 pl.BlockSpec(fc_b.shape, lambda b: (0, 0))]

    scratch_shapes = []
    if num_layers > 1:
        scratch_shapes = [
            pltpu.VMEM((L, BB, Hp), jnp.bfloat16),   # inter-layer sequence (bf16)
            pltpu.VMEM((L * BB, G), jnp.float32),    # hoisted input gates (f32)
        ]

    # Explicit VMEM budget (inputs double-buffered by default).
    est = 2 * (_nbytes((L, BB, G), gx0.dtype)
               + _nbytes((num_layers, BB, Hp), h0_lbh.dtype)
               + sum(int(w.size) * w.dtype.itemsize
                     for w in whh_list + wih_list + b_list + [fc_w_t, fc_b])
               + _nbytes((BB, Np), jnp.float32))
    if num_layers > 1:
        est += _nbytes((L, BB, Hp), jnp.bfloat16) + _nbytes((L * BB, G), jnp.float32)
    vmem_limit = min(64 * 1024 * 1024, max(32 * 1024 * 1024, int(est * 1.5)))

    kernel = functools.partial(_lstm_rec_kernel, num_layers, L, BB, Hp)

    return pl.pallas_call(
        kernel,
        out_shape=jax.ShapeDtypeStruct((B_pad, Np), jnp.float32),
        grid=(n_bblocks,),
        in_specs=in_specs,
        out_specs=pl.BlockSpec((BB, Np), lambda b: (b, 0)),
        scratch_shapes=scratch_shapes,
        compiler_params=pltpu.CompilerParams(
            dimension_semantics=("parallel",),
            vmem_limit_bytes=vmem_limit),
    )(*args)


# ----------------------------------------------------------------------------
# Full forward (glue in JAX + Pallas kernel for the LSTM/fc hot path)
# ----------------------------------------------------------------------------
def lstm_rec_forward(params, item_seq, cat_seq, price_seq, user_feat,
                     num_layers, hidden_dim, num_items):
    bf16 = jnp.bfloat16
    B, L = item_seq.shape
    # Embeddings (gather) — padding row is zeroed at init time.
    item_emb = jnp.take(params["item_emb"], item_seq, axis=0)       # (B,L,De_i)
    cat_emb = jnp.take(params["cat_emb"], cat_seq, axis=0)          # (B,L,De_c)
    # price_proj: Linear(1 -> price_hidden) + ReLU
    price_emb = jax.nn.relu(
        price_seq[..., None] * params["price_w"][None, None, :]
        + params["price_b"][None, None, :])                          # (B,L,Dp)
    x = jnp.concatenate([item_emb, cat_emb, price_emb], axis=-1)     # (B,L,Din)

    # user_feat_proj -> initial hidden states per layer
    h0 = user_feat @ params["user_w_T"] + params["user_b"]           # (B, nl*H)
    h0 = h0.reshape(B, num_layers, hidden_dim).transpose(1, 0, 2)    # (nl,B,H)

    # ---- TPU-friendly padded layout ----
    H = hidden_dim
    Hp = _round_up(H, 128)
    Np = _round_up(num_items, 128)
    # Batch tile: x16 sublanes minimum (bf16 scratch packing), up to 128 rows
    # to feed the MXU.  For >=2 batch blocks (v7x megacore) use batch >= 2*BB.
    BB = min(128, _round_up(B, 16))
    B_pad = _round_up(B, BB)

    # Gate-column-padded weights; matmul operands cast to bf16 (MXU-native).
    whh_list, wih_list, b_list = [], [], []
    wih0_p = b0_p = None
    for l, (wih_t, whh_t, bias) in enumerate(params["layers"]):
        whh_list.append(
            _pad_to(_pad_gate_cols(whh_t, H, Hp), (Hp, 4 * Hp)).astype(bf16))
        b_p = _pad_gate_cols(bias, H, Hp)                            # (1,4Hp) f32
        if l == 0:
            wih0_p = _pad_gate_cols(wih_t, H, Hp)                    # (Din,4Hp)
            b0_p = b_p
        else:
            wih_list.append(
                _pad_to(_pad_gate_cols(wih_t, H, Hp), (Hp, 4 * Hp)).astype(bf16))
            b_list.append(b_p)

    # Layer-0 input projection hoisted to XLA (plain GEMM, bias folded in).
    x_t = jnp.transpose(x, (1, 0, 2))                        # time-major (L,B,Din)
    gx0 = (jnp.dot(x_t.astype(bf16).reshape(L * B, -1), wih0_p.astype(bf16),
                   preferred_element_type=jnp.float32).reshape(L, B, 4 * Hp)
           + b0_p)                                           # (L,B,4Hp) f32
    gx0 = _pad_to(gx0, (L, B_pad, 4 * Hp))

    h0_p = _pad_to(h0, (num_layers, B_pad, Hp))
    fc_w_p = _pad_to(params["fc_w_T"], (Hp, Np)).astype(bf16)
    fc_b_p = _pad_to(params["fc_b"], (1, Np))

    logits_p = lstm_rec_pallas(gx0, h0_p, whh_list, wih_list, b_list,
                               fc_w_p, fc_b_p, BB)
    logits = logits_p[:B, :num_items]
    return logits, x, h0


# Pure-JAX reference (same math, unpadded, mirroring the bf16 matmul operands)
# for the correctness check.
def lstm_rec_ref(x_bld, h0_lbh, layer_params, fc_w_t, fc_b):
    bf16 = jnp.bfloat16
    B, L, _ = x_bld.shape
    H = h0_lbh.shape[-1]
    inp = x_bld
    h_last = None
    for l, (wih, whh, b) in enumerate(layer_params):
        gx = (jnp.dot(inp.astype(bf16).reshape(B * L, -1), wih.astype(bf16),
                      preferred_element_type=jnp.float32).reshape(B, L, 4 * H)
              + b)
        h = h0_lbh[l]
        c = jnp.zeros_like(h)
        outs = []
        for t in range(L):
            gates = gx[:, t, :] + jnp.dot(h.astype(bf16), whh.astype(bf16),
                                          preferred_element_type=jnp.float32)
            i = jax.nn.sigmoid(gates[:, :H])
            f = jax.nn.sigmoid(gates[:, H:2 * H])
            g = jnp.tanh(gates[:, 2 * H:3 * H])
            o = jax.nn.sigmoid(gates[:, 3 * H:])
            c = f * c + i * g
            h = o * jnp.tanh(c)
            outs.append(h)
        inp = jnp.stack(outs, axis=1)
        h_last = h
    return (jnp.dot(h_last.astype(bf16), fc_w_t.astype(bf16),
                    preferred_element_type=jnp.float32) + fc_b)


# ----------------------------------------------------------------------------
if __name__ == "__main__":
    # Model hyperparameters (small, consistent with the module's __init__).
    num_items = 64
    item_emb_dim = 16
    num_categories = 10
    category_emb_dim = 8
    price_hidden_dim = 8
    hidden_dim = 32
    num_layers = 2
    padding_idx = 0
    user_feat_dim = 6
    input_dim = item_emb_dim + category_emb_dim + price_hidden_dim  # 32

    B, L = 2, 8

    key = jax.random.PRNGKey(0)
    ks = jax.random.split(key, 24)

    def unif(k, shape, scale):
        return jax.random.uniform(k, shape, jnp.float32, -scale, scale)

    # Deterministic parameter init (synthetic; no checkpoint load).
    item_emb = jax.random.normal(ks[0], (num_items, item_emb_dim), jnp.float32) * 0.1
    item_emb = item_emb.at[padding_idx].set(0.0)
    cat_emb = jax.random.normal(ks[1], (num_categories, category_emb_dim), jnp.float32) * 0.1
    cat_emb = cat_emb.at[padding_idx].set(0.0)

    price_w = unif(ks[2], (price_hidden_dim,), 1.0)
    price_b = unif(ks[3], (price_hidden_dim,), 1.0)

    s = 1.0 / np.sqrt(hidden_dim)
    layers = []
    kidx = 4
    for l in range(num_layers):
        in_dim = input_dim if l == 0 else hidden_dim
        wih_t = unif(ks[kidx + 0], (in_dim, 4 * hidden_dim), s)       # W_ih^T
        whh_t = unif(ks[kidx + 1], (hidden_dim, 4 * hidden_dim), s)   # W_hh^T
        b = unif(ks[kidx + 2], (1, 4 * hidden_dim), s)                # b_ih + b_hh
        layers.append((wih_t, whh_t, b))
        kidx += 3

    user_w_T = unif(ks[kidx + 0], (user_feat_dim, num_layers * hidden_dim),
                    1.0 / np.sqrt(user_feat_dim))
    user_b = unif(ks[kidx + 1], (num_layers * hidden_dim,),
                  1.0 / np.sqrt(user_feat_dim))
    fc_w_T = unif(ks[kidx + 2], (hidden_dim, num_items), s)
    fc_b = unif(ks[kidx + 3], (1, num_items), s)

    params = {
        "item_emb": item_emb, "cat_emb": cat_emb,
        "price_w": price_w, "price_b": price_b,
        "layers": layers,
        "user_w_T": user_w_T, "user_b": user_b,
        "fc_w_T": fc_w_T, "fc_b": fc_b,
    }

    # Deterministic example inputs.
    ik = jax.random.split(jax.random.PRNGKey(0), 4)
    item_seq = jax.random.randint(ik[0], (B, L), 0, num_items, jnp.int32)
    cat_seq = jax.random.randint(ik[1], (B, L), 0, num_categories, jnp.int32)
    price_seq = jax.random.uniform(ik[2], (B, L), jnp.float32)
    user_feat = jax.random.normal(ik[3], (B, user_feat_dim), jnp.float32)

    logits, x, h0 = lstm_rec_forward(params, item_seq, cat_seq, price_seq,
                                     user_feat, num_layers, hidden_dim,
                                     num_items)
    logits = jax.block_until_ready(logits)
    assert logits.shape == (B, num_items)

    ref = lstm_rec_ref(x, h0, layers, fc_w_T, fc_b)
    # bf16 matmul operands in both kernel and reference -> modest tolerance.
    np.testing.assert_allclose(np.asarray(logits), np.asarray(ref),
                               rtol=2e-3, atol=2e-3)
    print("KERNEL_OK")
</pallas_src>

<mosaic_0001>
module attributes {stable_mosaic.version = 11 : i64} {
  func.func @_lstm_rec_kernel(%arg0: i32, %arg1: memref<8x16x512xf32, #tpu.memory_space<vmem>>, %arg2: memref<2x16x128xf32, #tpu.memory_space<vmem>>, %arg3: memref<128x512xbf16, #tpu.memory_space<vmem>>, %arg4: memref<128x512xbf16, #tpu.memory_space<vmem>>, %arg5: memref<128x512xbf16, #tpu.memory_space<vmem>>, %arg6: memref<1x512xf32, #tpu.memory_space<vmem>>, %arg7: memref<128x128xbf16, #tpu.memory_space<vmem>>, %arg8: memref<1x128xf32, #tpu.memory_space<vmem>>, %arg9: memref<16x128xf32, #tpu.memory_space<vmem>>, %arg10: memref<8x16x128xbf16, #tpu.memory_space<vmem>>, %arg11: memref<128x512xf32, #tpu.memory_space<vmem>>) attributes {dimension_semantics = [#tpu.dimension_semantics<parallel>], iteration_bounds = array<i64: 1>, scalar_prefetch = 0 : i64, scratch_operands = 2 : i64, tpu.core_type = #tpu.core_type<tc>, window_params = [{transform_indices = @transform_0, window_bounds = array<i64: 8, 16, 512>}, {transform_indices = @transform_1, window_bounds = array<i64: 2, 16, 128>}, {pipeline_mode = #tpu.pipeline_mode<synchronous>, transform_indices = @transform_2, window_bounds = array<i64: 128, 512>}, {pipeline_mode = #tpu.pipeline_mode<synchronous>, transform_indices = @transform_3, window_bounds = array<i64: 128, 512>}, {pipeline_mode = #tpu.pipeline_mode<synchronous>, transform_indices = @transform_4, window_bounds = array<i64: 128, 512>}, {pipeline_mode = #tpu.pipeline_mode<synchronous>, transform_indices = @transform_5, window_bounds = array<i64: 1, 512>}, {pipeline_mode = #tpu.pipeline_mode<synchronous>, transform_indices = @transform_6, window_bounds = array<i64: 128, 128>}, {pipeline_mode = #tpu.pipeline_mode<synchronous>, transform_indices = @transform_7, window_bounds = array<i64: 1, 128>}, {transform_indices = @transform_8, window_bounds = array<i64: 16, 128>}]} {
    %c0 = arith.constant 0 : index
    %c0_0 = arith.constant 0 : index
    %c0_1 = arith.constant 0 : index
    %0 = vector.load %arg2[%c0, %c0_0, %c0_1] : memref<2x16x128xf32, #tpu.memory_space<vmem>>, vector<1x16x128xf32>
    %1 = vector.shape_cast %0 : vector<1x16x128xf32> to vector<16x128xf32>
    %cst = arith.constant 0.000000e+00 : f32
    %2 = vector.broadcast %cst : f32 to vector<16x128xf32>
    %c0_2 = arith.constant 0 : index
    %c0_3 = arith.constant 0 : index
    %c0_4 = arith.constant 0 : index
    %3 = vector.load %arg1[%c0_2, %c0_3, %c0_4] : memref<8x16x512xf32, #tpu.memory_space<vmem>>, vector<1x16x512xf32>
    %4 = vector.shape_cast %3 : vector<1x16x512xf32> to vector<16x512xf32>
    %5 = arith.truncf %1 : vector<16x128xf32> to vector<16x128xbf16>
    %c0_5 = arith.constant 0 : index
    %c0_6 = arith.constant 0 : index
    %6 = vector.load %arg3[%c0_5, %c0_6] : memref<128x512xbf16, #tpu.memory_space<vmem>>, vector<128x512xbf16>
    %cst_7 = arith.constant dense<0.000000e+00> : vector<16x512xf32>
    %7 = tpu.matmul %5, %6, %cst_7 {dimension_numbers = #tpu.dot_dimension_numbers<[1], [0], [0], [1], [0, 0, 1, 1], [], []>} : vector<16x128xbf16>, vector<128x512xbf16>, vector<16x512xf32> -> vector<16x512xf32>
    %8 = arith.addf %4, %7 : vector<16x512xf32>
    %9 = vector.extract_strided_slice %8 {offsets = [0, 0], sizes = [16, 128], strides = [1, 1]} : vector<16x512xf32> to vector<16x128xf32>
    %cst_8 = arith.constant 5.000000e-01 : f32
    %10 = vector.broadcast %cst_8 : f32 to vector<16x128xf32>
    %11 = arith.mulf %10, %9 : vector<16x128xf32>
    %12 = math.tanh %11 : vector<16x128xf32>
    %cst_9 = arith.constant 5.000000e-01 : f32
    %13 = vector.broadcast %cst_9 : f32 to vector<16x128xf32>
    %14 = arith.mulf %13, %12 : vector<16x128xf32>
    %cst_10 = arith.constant 5.000000e-01 : f32
    %15 = vector.broadcast %cst_10 : f32 to vector<16x128xf32>
    %16 = arith.addf %14, %15 : vector<16x128xf32>
    %17 = vector.extract_strided_slice %8 {offsets = [0, 128], sizes = [16, 128], strides = [1, 1]} : vector<16x512xf32> to vector<16x128xf32>
    %cst_11 = arith.constant 5.000000e-01 : f32
    %18 = vector.broadcast %cst_11 : f32 to vector<16x128xf32>
    %19 = arith.mulf %18, %17 : vector<16x128xf32>
    %20 = math.tanh %19 : vector<16x128xf32>
    %cst_12 = arith.constant 5.000000e-01 : f32
    %21 = vector.broadcast %cst_12 : f32 to vector<16x128xf32>
    %22 = arith.mulf %21, %20 : vector<16x128xf32>
    %cst_13 = arith.constant 5.000000e-01 : f32
    %23 = vector.broadcast %cst_13 : f32 to vector<16x128xf32>
    %24 = arith.addf %22, %23 : vector<16x128xf32>
    %25 = vector.extract_strided_slice %8 {offsets = [0, 256], sizes = [16, 128], strides = [1, 1]} : vector<16x512xf32> to vector<16x128xf32>
    %26 = math.tanh %25 : vector<16x128xf32>
    %27 = vector.extract_strided_slice %8 {offsets = [0, 384], sizes = [16, 128], strides = [1, 1]} : vector<16x512xf32> to vector<16x128xf32>
    %cst_14 = arith.constant 5.000000e-01 : f32
    %28 = vector.broadcast %cst_14 : f32 to vector<16x128xf32>
    %29 = arith.mulf %28, %27 : vector<16x128xf32>
    %30 = math.tanh %29 : vector<16x128xf32>
    %cst_15 = arith.constant 5.000000e-01 : f32
    %31 = vector.broadcast %cst_15 : f32 to vector<16x128xf32>
    %32 = arith.mulf %31, %30 : vector<16x128xf32>
    %cst_16 = arith.constant 5.000000e-01 : f32
    %33 = vector.broadcast %cst_16 : f32 to vector<16x128xf32>
    %34 = arith.addf %32, %33 : vector<16x128xf32>
    %35 = arith.mulf %24, %2 : vector<16x128xf32>
    %36 = arith.mulf %16, %26 : vector<16x128xf32>
    %37 = arith.addf %35, %36 : vector<16x128xf32>
    %38 = math.tanh %37 : vector<16x128xf32>
    %39 = arith.mulf %34, %38 : vector<16x128xf32>
    %40 = arith.truncf %39 : vector<16x128xf32> to vector<16x128xbf16>
    %c0_17 = arith.constant 0 : index
    %c0_18 = arith.constant 0 : index
    %c0_19 = arith.constant 0 : index
    %41 = vector.load %arg10[%c0_17, %c0_18, %c0_19] : memref<8x16x128xbf16, #tpu.memory_space<vmem>>, vector<1x16x128xbf16>
    %42 = vector.shape_cast %41 : vector<1x16x128xbf16> to vector<16x128xbf16>
    %43 = vector.shape_cast %40 : vector<16x128xbf16> to vector<1x16x128xbf16>
    tpu.vector_store %arg10[%c0_17, %c0_18, %c0_19], %43 {strides = array<i32>} : memref<8x16x128xbf16, #tpu.memory_space<vmem>>, vector<1x16x128xbf16>,
    %c1 = arith.constant 1 : index
    %c0_20 = arith.constant 0 : index
    %c0_21 = arith.constant 0 : index
    %44 = vector.load %arg1[%c1, %c0_20, %c0_21] : memref<8x16x512xf32, #tpu.memory_space<vmem>>, vector<1x16x512xf32>
    %45 = vector.shape_cast %44 : vector<1x16x512xf32> to vector<16x512xf32>
    %46 = arith.truncf %39 : vector<16x128xf32> to vector<16x128xbf16>
    %c0_22 = arith.constant 0 : index
    %c0_23 = arith.constant 0 : index
    %47 = vector.load %arg3[%c0_22, %c0_23] : memref<128x512xbf16, #tpu.memory_space<vmem>>, vector<128x512xbf16>
    %cst_24 = arith.constant dense<0.000000e+00> : vector<16x512xf32>
    %48 = tpu.matmul %46, %47, %cst_24 {dimension_numbers = #tpu.dot_dimension_numbers<[1], [0], [0], [1], [0, 0, 1, 1], [], []>} : vector<16x128xbf16>, vector<128x512xbf16>, vector<16x512xf32> -> vector<16x512xf32>
    %49 = arith.addf %45, %48 : vector<16x512xf32>
    %50 = vector.extract_strided_slice %49 {offsets = [0, 0], sizes = [16, 128], strides = [1, 1]} : vector<16x512xf32> to vector<16x128xf32>
    %cst_25 = arith.constant 5.000000e-01 : f32
    %51 = vector.broadcast %cst_25 : f32 to vector<16x128xf32>
    %52 = arith.mulf %51, %50 : vector<16x128xf32>
    %53 = math.tanh %52 : vector<16x128xf32>
    %cst_26 = arith.constant 5.000000e-01 : f32
    %54 = vector.broadcast %cst_26 : f32 to vector<16x128xf32>
    %55 = arith.mulf %54, %53 : vector<16x128xf32>
    %cst_27 = arith.constant 5.000000e-01 : f32
    %56 = vector.broadcast %cst_27 : f32 to vector<16x128xf32>
    %57 = arith.addf %55, %56 : vector<16x128xf32>
    %58 = vector.extract_strided_slice %49 {offsets = [0, 128], sizes = [16, 128], strides = [1, 1]} : vector<16x512xf32> to vector<16x128xf32>
    %cst_28 = arith.constant 5.000000e-01 : f32
    %59 = vector.broadcast %cst_28 : f32 to vector<16x128xf32>
    %60 = arith.mulf %59, %58 : vector<16x128xf32>
    %61 = math.tanh %60 : vector<16x128xf32>
    %cst_29 = arith.constant 5.000000e-01 : f32
    %62 = vector.broadcast %cst_29 : f32 to vector<16x128xf32>
    %63 = arith.mulf %62, %61 : vector<16x128xf32>
    %cst_30 = arith.constant 5.000000e-01 : f32
    %64 = vector.broadcast %cst_30 : f32 to vector<16x128xf32>
    %65 = arith.addf %63, %64 : vector<16x128xf32>
    %66 = vector.extract_strided_slice %49 {offsets = [0, 256], sizes = [16, 128], strides = [1, 1]} : vector<16x512xf32> to vector<16x128xf32>
    %67 = math.tanh %66 : vector<16x128xf32>
    %68 = vector.extract_strided_slice %49 {offsets = [0, 384], sizes = [16, 128], strides = [1, 1]} : vector<16x512xf32> to vector<16x128xf32>
    %cst_31 = arith.constant 5.000000e-01 : f32
    %69 = vector.broadcast %cst_31 : f32 to vector<16x128xf32>
    %70 = arith.mulf %69, %68 : vector<16x128xf32>
    %71 = math.tanh %70 : vector<16x128xf32>
    %cst_32 = arith.constant 5.000000e-01 : f32
    %72 = vector.broadcast %cst_32 : f32 to vector<16x128xf32>
    %73 = arith.mulf %72, %71 : vector<16x128xf32>
    %cst_33 = arith.constant 5.000000e-01 : f32
    %74 = vector.broadcast %cst_33 : f32 to vector<16x128xf32>
    %75 = arith.addf %73, %74 : vector<16x128xf32>
    %76 = arith.mulf %65, %37 : vector<16x128xf32>
    %77 = arith.mulf %57, %67 : vector<16x128xf32>
    %78 = arith.addf %76, %77 : vector<16x128xf32>
    %79 = math.tanh %78 : vector<16x128xf32>
    %80 = arith.mulf %75, %79 : vector<16x128xf32>
    %81 = arith.truncf %80 : vector<16x128xf32> to vector<16x128xbf16>
    %c1_34 = arith.constant 1 : index
    %c0_35 = arith.constant 0 : index
    %c0_36 = arith.constant 0 : index
    %82 = vector.load %arg10[%c1_34, %c0_35, %c0_36] : memref<8x16x128xbf16, #tpu.memory_space<vmem>>, vector<1x16x128xbf16>
    %83 = vector.shape_cast %82 : vector<1x16x128xbf16> to vector<16x128xbf16>
    %84 = vector.shape_cast %81 : vector<16x128xbf16> to vector<1x16x128xbf16>
    tpu.vector_store %arg10[%c1_34, %c0_35, %c0_36], %84 {strides = array<i32>} : memref<8x16x128xbf16, #tpu.memory_space<vmem>>, vector<1x16x128xbf16>,
    %c2 = arith.constant 2 : index
    %c0_37 = arith.constant 0 : index
    %c0_38 = arith.constant 0 : index
    %85 = vector.load %arg1[%c2, %c0_37, %c0_38] : memref<8x16x512xf32, #tpu.memory_space<vmem>>, vector<1x16x512xf32>
    %86 = vector.shape_cast %85 : vector<1x16x512xf32> to vector<16x512xf32>
    %87 = arith.truncf %80 : vector<16x128xf32> to vector<16x128xbf16>
    %c0_39 = arith.constant 0 : index
    %c0_40 = arith.constant 0 : index
    %88 = vector.load %arg3[%c0_39, %c0_40] : memref<128x512xbf16, #tpu.memory_space<vmem>>, vector<128x512xbf16>
    %cst_41 = arith.constant dense<0.000000e+00> : vector<16x512xf32>
    %89 = tpu.matmul %87, %88, %cst_41 {dimension_numbers = #tpu.dot_dimension_numbers<[1], [0], [0], [1], [0, 0, 1, 1], [], []>} : vector<16x128xbf16>, vector<128x512xbf16>, vector<16x512xf32> -> vector<16x512xf32>
    %90 = arith.addf %86, %89 : vector<16x512xf32>
    %91 = vector.extract_strided_slice %90 {offsets = [0, 0], sizes = [16, 128], strides = [1, 1]} : vector<16x512xf32> to vector<16x128xf32>
    %cst_42 = arith.constant 5.000000e-01 : f32
    %92 = vector.broadcast %cst_42 : f32 to vector<16x128xf32>
    %93 = arith.mulf %92, %91 : vector<16x128xf32>
    %94 = math.tanh %93 : vector<16x128xf32>
    %cst_43 = arith.constant 5.000000e-01 : f32
    %95 = vector.broadcast %cst_43 : f32 to vector<16x128xf32>
    %96 = arith.mulf %95, %94 : vector<16x128xf32>
    %cst_44 = arith.constant 5.000000e-01 : f32
    %97 = vector.broadcast %cst_44 : f32 to vector<16x128xf32>
    %98 = arith.addf %96, %97 : vector<16x128xf32>
    %99 = vector.extract_strided_slice %90 {offsets = [0, 128], sizes = [16, 128], strides = [1, 1]} : vector<16x512xf32> to vector<16x128xf32>
    %cst_45 = arith.constant 5.000000e-01 : f32
    %100 = vector.broadcast %cst_45 : f32 to vector<16x128xf32>
    %101 = arith.mulf %100, %99 : vector<16x128xf32>
    %102 = math.tanh %101 : vector<16x128xf32>
    %cst_46 = arith.constant 5.000000e-01 : f32
    %103 = vector.broadcast %cst_46 : f32 to vector<16x128xf32>
    %104 = arith.mulf %103, %102 : vector<16x128xf32>
    %cst_47 = arith.constant 5.000000e-01 : f32
    %105 = vector.broadcast %cst_47 : f32 to vector<16x128xf32>
    %106 = arith.addf %104, %105 : vector<16x128xf32>
    %107 = vector.extract_strided_slice %90 {offsets = [0, 256], sizes = [16, 128], strides = [1, 1]} : vector<16x512xf32> to vector<16x128xf32>
    %108 = math.tanh %107 : vector<16x128xf32>
    %109 = vector.extract_strided_slice %90 {offsets = [0, 384], sizes = [16, 128], strides = [1, 1]} : vector<16x512xf32> to vector<16x128xf32>
    %cst_48 = arith.constant 5.000000e-01 : f32
    %110 = vector.broadcast %cst_48 : f32 to vector<16x128xf32>
    %111 = arith.mulf %110, %109 : vector<16x128xf32>
    %112 = math.tanh %111 : vector<16x128xf32>
    %cst_49 = arith.constant 5.000000e-01 : f32
    %113 = vector.broadcast %cst_49 : f32 to vector<16x128xf32>
    %114 = arith.mulf %113, %112 : vector<16x128xf32>
    %cst_50 = arith.constant 5.000000e-01 : f32
    %115 = vector.broadcast %cst_50 : f32 to vector<16x128xf32>
    %116 = arith.addf %114, %115 : vector<16x128xf32>
    %117 = arith.mulf %106, %78 : vector<16x128xf32>
    %118 = arith.mulf %98, %108 : vector<16x128xf32>
    %119 = arith.addf %117, %118 : vector<16x128xf32>
    %120 = math.tanh %119 : vector<16x128xf32>
    %121 = arith.mulf %116, %120 : vector<16x128xf32>
    %122 = arith.truncf %121 : vector<16x128xf32> to vector<16x128xbf16>
    %c2_51 = arith.constant 2 : index
    %c0_52 = arith.constant 0 : index
    %c0_53 = arith.constant 0 : index
    %123 = vector.load %arg10[%c2_51, %c0_52, %c0_53] : memref<8x16x128xbf16, #tpu.memory_space<vmem>>, vector<1x16x128xbf16>
    %124 = vector.shape_cast %123 : vector<1x16x128xbf16> to vector<16x128xbf16>
    %125 = vector.shape_cast %122 : vector<16x128xbf16> to vector<1x16x128xbf16>
    tpu.vector_store %arg10[%c2_51, %c0_52, %c0_53], %125 {strides = array<i32>} : memref<8x16x128xbf16, #tpu.memory_space<vmem>>, vector<1x16x128xbf16>,
    %c3 = arith.constant 3 : index
    %c0_54 = arith.constant 0 : index
    %c0_55 = arith.constant 0 : index
    %126 = vector.load %arg1[%c3, %c0_54, %c0_55] : memref<8x16x512xf32, #tpu.memory_space<vmem>>, vector<1x16x512xf32>
    %127 = vector.shape_cast %126 : vector<1x16x512xf32> to vector<16x512xf32>
    %128 = arith.truncf %121 : vector<16x128xf32> to vector<16x128xbf16>
    %c0_56 = arith.constant 0 : index
    %c0_57 = arith.constant 0 : index
    %129 = vector.load %arg3[%c0_56, %c0_57] : memref<128x512xbf16, #tpu.memory_space<vmem>>, vector<128x512xbf16>
    %cst_58 = arith.constant dense<0.000000e+00> : vector<16x512xf32>
    %130 = tpu.matmul %128, %129, %cst_58 {dimension_numbers = #tpu.dot_dimension_numbers<[1], [0], [0], [1], [0, 0, 1, 1], [], []>} : vector<16x128xbf16>, vector<128x512xbf16>, vector<16x512xf32> -> vector<16x512xf32>
    %131 = arith.addf %127, %130 : vector<16x512xf32>
    %132 = vector.extract_strided_slice %131 {offsets = [0, 0], sizes = [16, 128], strides = [1, 1]} : vector<16x512xf32> to vector<16x128xf32>
    %cst_59 = arith.constant 5.000000e-01 : f32
    %133 = vector.broadcast %cst_59 : f32 to vector<16x128xf32>
    %134 = arith.mulf %133, %132 : vector<16x128xf32>
    %135 = math.tanh %134 : vector<16x128xf32>
    %cst_60 = arith.constant 5.000000e-01 : f32
    %136 = vector.broadcast %cst_60 : f32 to vector<16x128xf32>
    %137 = arith.mulf %136, %135 : vector<16x128xf32>
    %cst_61 = arith.constant 5.000000e-01 : f32
    %138 = vector.broadcast %cst_61 : f32 to vector<16x128xf32>
    %139 = arith.addf %137, %138 : vector<16x128xf32>
    %140 = vector.extract_strided_slice %131 {offsets = [0, 128], sizes = [16, 128], strides = [1, 1]} : vector<16x512xf32> to vector<16x128xf32>
    %cst_62 = arith.constant 5.000000e-01 : f32
    %141 = vector.broadcast %cst_62 : f32 to vector<16x128xf32>
    %142 = arith.mulf %141, %140 : vector<16x128xf32>
    %143 = math.tanh %142 : vector<16x128xf32>
    %cst_63 = arith.constant 5.000000e-01 : f32
    %144 = vector.broadcast %cst_63 : f32 to vector<16x128xf32>
    %145 = arith.mulf %144, %143 : vector<16x128xf32>
    %cst_64 = arith.constant 5.000000e-01 : f32
    %146 = vector.broadcast %cst_64 : f32 to vector<16x128xf32>
    %147 = arith.addf %145, %146 : vector<16x128xf32>
    %148 = vector.extract_strided_slice %131 {offsets = [0, 256], sizes = [16, 128], strides = [1, 1]} : vector<16x512xf32> to vector<16x128xf32>
    %149 = math.tanh %148 : vector<16x128xf32>
    %150 = vector.extract_strided_slice %131 {offsets = [0, 384], sizes = [16, 128], strides = [1, 1]} : vector<16x512xf32> to vector<16x128xf32>
    %cst_65 = arith.constant 5.000000e-01 : f32
    %151 = vector.broadcast %cst_65 : f32 to vector<16x128xf32>
    %152 = arith.mulf %151, %150 : vector<16x128xf32>
    %153 = math.tanh %152 : vector<16x128xf32>
    %cst_66 = arith.constant 5.000000e-01 : f32
    %154 = vector.broadcast %cst_66 : f32 to vector<16x128xf32>
    %155 = arith.mulf %154, %153 : vector<16x128xf32>
    %cst_67 = arith.constant 5.000000e-01 : f32
    %156 = vector.broadcast %cst_67 : f32 to vector<16x128xf32>
    %157 = arith.addf %155, %156 : vector<16x128xf32>
    %158 = arith.mulf %147, %119 : vector<16x128xf32>
    %159 = arith.mulf %139, %149 : vector<16x128xf32>
    %160 = arith.addf %158, %159 : vector<16x128xf32>
    %161 = math.tanh %160 : vector<16x128xf32>
    %162 = arith.mulf %157, %161 : vector<16x128xf32>
    %163 = arith.truncf %162 : vector<16x128xf32> to vector<16x128xbf16>
    %c3_68 = arith.constant 3 : index
    %c0_69 = arith.constant 0 : index
    %c0_70 = arith.constant 0 : index
    %164 = vector.load %arg10[%c3_68, %c0_69, %c0_70] : memref<8x16x128xbf16, #tpu.memory_space<vmem>>, vector<1x16x128xbf16>
    %165 = vector.shape_cast %164 : vector<1x16x128xbf16> to vector<16x128xbf16>
    %166 = vector.shape_cast %163 : vector<16x128xbf16> to vector<1x16x128xbf16>
    tpu.vector_store %arg10[%c3_68, %c0_69, %c0_70], %166 {strides = array<i32>} : memref<8x16x128xbf16, #tpu.memory_space<vmem>>, vector<1x16x128xbf16>,
    %c4 = arith.constant 4 : index
    %c0_71 = arith.constant 0 : index
    %c0_72 = arith.constant 0 : index
    %167 = vector.load %arg1[%c4, %c0_71, %c0_72] : memref<8x16x512xf32, #tpu.memory_space<vmem>>, vector<1x16x512xf32>
    %168 = vector.shape_cast %167 : vector<1x16x512xf32> to vector<16x512xf32>
    %169 = arith.truncf %162 : vector<16x128xf32> to vector<16x128xbf16>
    %c0_73 = arith.constant 0 : index
    %c0_74 = arith.constant 0 : index
    %170 = vector.load %arg3[%c0_73, %c0_74] : memref<128x512xbf16, #tpu.memory_space<vmem>>, vector<128x512xbf16>
    %cst_75 = arith.constant dense<0.000000e+00> : vector<16x512xf32>
    %171 = tpu.matmul %169, %170, %cst_75 {dimension_numbers = #tpu.dot_dimension_numbers<[1], [0], [0], [1], [0, 0, 1, 1], [], []>} : vector<16x128xbf16>, vector<128x512xbf16>, vector<16x512xf32> -> vector<16x512xf32>
    %172 = arith.addf %168, %171 : vector<16x512xf32>
    %173 = vector.extract_strided_slice %172 {offsets = [0, 0], sizes = [16, 128], strides = [1, 1]} : vector<16x512xf32> to vector<16x128xf32>
    %cst_76 = arith.constant 5.000000e-01 : f32
    %174 = vector.broadcast %cst_76 : f32 to vector<16x128xf32>
    %175 = arith.mulf %174, %173 : vector<16x128xf32>
    %176 = math.tanh %175 : vector<16x128xf32>
    %cst_77 = arith.constant 5.000000e-01 : f32
    %177 = vector.broadcast %cst_77 : f32 to vector<16x128xf32>
    %178 = arith.mulf %177, %176 : vector<16x128xf32>
    %cst_78 = arith.constant 5.000000e-01 : f32
    %179 = vector.broadcast %cst_78 : f32 to vector<16x128xf32>
    %180 = arith.addf %178, %179 : vector<16x128xf32>
    %181 = vector.extract_strided_slice %172 {offsets = [0, 128], sizes = [16, 128], strides = [1, 1]} : vector<16x512xf32> to vector<16x128xf32>
    %cst_79 = arith.constant 5.000000e-01 : f32
    %182 = vector.broadcast %cst_79 : f32 to vector<16x128xf32>
    %183 = arith.mulf %182, %181 : vector<16x128xf32>
    %184 = math.tanh %183 : vector<16x128xf32>
    %cst_80 = arith.constant 5.000000e-01 : f32
    %185 = vector.broadcast %cst_80 : f32 to vector<16x128xf32>
    %186 = arith.mulf %185, %184 : vector<16x128xf32>
    %cst_81 = arith.constant 5.000000e-01 : f32
    %187 = vector.broadcast %cst_81 : f32 to vector<16x128xf32>
    %188 = arith.addf %186, %187 : vector<16x128xf32>
    %189 = vector.extract_strided_slice %172 {offsets = [0, 256], sizes = [16, 128], strides = [1, 1]} : vector<16x512xf32> to vector<16x128xf32>
    %190 = math.tanh %189 : vector<16x128xf32>
    %191 = vector.extract_strided_slice %172 {offsets = [0, 384], sizes = [16, 128], strides = [1, 1]} : vector<16x512xf32> to vector<16x128xf32>
    %cst_82 = arith.constant 5.000000e-01 : f32
    %192 = vector.broadcast %cst_82 : f32 to vector<16x128xf32>
    %193 = arith.mulf %192, %191 : vector<16x128xf32>
    %194 = math.tanh %193 : vector<16x128xf32>
    %cst_83 = arith.constant 5.000000e-01 : f32
    %195 = vector.broadcast %cst_83 : f32 to vector<16x128xf32>
    %196 = arith.mulf %195, %194 : vector<16x128xf32>
    %cst_84 = arith.constant 5.000000e-01 : f32
    %197 = vector.broadcast %cst_84 : f32 to vector<16x128xf32>
    %198 = arith.addf %196, %197 : vector<16x128xf32>
    %199 = arith.mulf %188, %160 : vector<16x128xf32>
    %200 = arith.mulf %180, %190 : vector<16x128xf32>
    %201 = arith.addf %199, %200 : vector<16x128xf32>
    %202 = math.tanh %201 : vector<16x128xf32>
    %203 = arith.mulf %198, %202 : vector<16x128xf32>
    %204 = arith.truncf %203 : vector<16x128xf32> to vector<16x128xbf16>
    %c4_85 = arith.constant 4 : index
    %c0_86 = arith.constant 0 : index
    %c0_87 = arith.constant 0 : index
    %205 = vector.load %arg10[%c4_85, %c0_86, %c0_87] : memref<8x16x128xbf16, #tpu.memory_space<vmem>>, vector<1x16x128xbf16>
    %206 = vector.shape_cast %205 : vector<1x16x128xbf16> to vector<16x128xbf16>
    %207 = vector.shape_cast %204 : vector<16x128xbf16> to vector<1x16x128xbf16>
    tpu.vector_store %arg10[%c4_85, %c0_86, %c0_87], %207 {strides = array<i32>} : memref<8x16x128xbf16, #tpu.memory_space<vmem>>, vector<1x16x128xbf16>,
    %c5 = arith.constant 5 : index
    %c0_88 = arith.constant 0 : index
    %c0_89 = arith.constant 0 : index
    %208 = vector.load %arg1[%c5, %c0_88, %c0_89] : memref<8x16x512xf32, #tpu.memory_space<vmem>>, vector<1x16x512xf32>
    %209 = vector.shape_cast %208 : vector<1x16x512xf32> to vector<16x512xf32>
    %210 = arith.truncf %203 : vector<16x128xf32> to vector<16x128xbf16>
    %c0_90 = arith.constant 0 : index
    %c0_91 = arith.constant 0 : index
    %211 = vector.load %arg3[%c0_90, %c0_91] : memref<128x512xbf16, #tpu.memory_space<vmem>>, vector<128x512xbf16>
    %cst_92 = arith.constant dense<0.000000e+00> : vector<16x512xf32>
    %212 = tpu.matmul %210, %211, %cst_92 {dimension_numbers = #tpu.dot_dimension_numbers<[1], [0], [0], [1], [0, 0, 1, 1], [], []>} : vector<16x128xbf16>, vector<128x512xbf16>, vector<16x512xf32> -> vector<16x512xf32>
    %213 = arith.addf %209, %212 : vector<16x512xf32>
    %214 = vector.extract_strided_slice %213 {offsets = [0, 0], sizes = [16, 128], strides = [1, 1]} : vector<16x512xf32> to vector<16x128xf32>
    %cst_93 = arith.constant 5.000000e-01 : f32
    %215 = vector.broadcast %cst_93 : f32 to vector<16x128xf32>
    %216 = arith.mulf %215, %214 : vector<16x128xf32>
    %217 = math.tanh %216 : vector<16x128xf32>
    %cst_94 = arith.constant 5.000000e-01 : f32
    %218 = vector.broadcast %cst_94 : f32 to vector<16x128xf32>
    %219 = arith.mulf %218, %217 : vector<16x128xf32>
    %cst_95 = arith.constant 5.000000e-01 : f32
    %220 = vector.broadcast %cst_95 : f32 to vector<16x128xf32>
    %221 = arith.addf %219, %220 : vector<16x128xf32>
    %222 = vector.extract_strided_slice %213 {offsets = [0, 128], sizes = [16, 128], strides = [1, 1]} : vector<16x512xf32> to vector<16x128xf32>
    %cst_96 = arith.constant 5.000000e-01 : f32
    %223 = vector.broadcast %cst_96 : f32 to vector<16x128xf32>
    %224 = arith.mulf %223, %222 : vector<16x128xf32>
    %225 = math.tanh %224 : vector<16x128xf32>
    %cst_97 = arith.constant 5.000000e-01 : f32
    %226 = vector.broadcast %cst_97 : f32 to vector<16x128xf32>
    %227 = arith.mulf %226, %225 : vector<16x128xf32>
    %cst_98 = arith.constant 5.000000e-01 : f32
    %228 = vector.broadcast %cst_98 : f32 to vector<16x128xf32>
    %229 = arith.addf %227, %228 : vector<16x128xf32>
    %230 = vector.extract_strided_slice %213 {offsets = [0, 256], sizes = [16, 128], strides = [1, 1]} : vector<16x512xf32> to vector<16x128xf32>
    %231 = math.tanh %230 : vector<16x128xf32>
    %232 = vector.extract_strided_slice %213 {offsets = [0, 384], sizes = [16, 128], strides = [1, 1]} : vector<16x512xf32> to vector<16x128xf32>
    %cst_99 = arith.constant 5.000000e-01 : f32
    %233 = vector.broadcast %cst_99 : f32 to vector<16x128xf32>
    %234 = arith.mulf %233, %232 : vector<16x128xf32>
    %235 = math.tanh %234 : vector<16x128xf32>
    %cst_100 = arith.constant 5.000000e-01 : f32
    %236 = vector.broadcast %cst_100 : f32 to vector<16x128xf32>
    %237 = arith.mulf %236, %235 : vector<16x128xf32>
    %cst_101 = arith.constant 5.000000e-01 : f32
    %238 = vector.broadcast %cst_101 : f32 to vector<16x128xf32>
    %239 = arith.addf %237, %238 : vector<16x128xf32>
    %240 = arith.mulf %229, %201 : vector<16x128xf32>
    %241 = arith.mulf %221, %231 : vector<16x128xf32>
    %242 = arith.addf %240, %241 : vector<16x128xf32>
    %243 = math.tanh %242 : vector<16x128xf32>
    %244 = arith.mulf %239, %243 : vector<16x128xf32>
    %245 = arith.truncf %244 : vector<16x128xf32> to vector<16x128xbf16>
    %c5_102 = arith.constant 5 : index
    %c0_103 = arith.constant 0 : index
    %c0_104 = arith.constant 0 : index
    %246 = vector.load %arg10[%c5_102, %c0_103, %c0_104] : memref<8x16x128xbf16, #tpu.memory_space<vmem>>, vector<1x16x128xbf16>
    %247 = vector.shape_cast %246 : vector<1x16x128xbf16> to vector<16x128xbf16>
    %248 = vector.shape_cast %245 : vector<16x128xbf16> to vector<1x16x128xbf16>
    tpu.vector_store %arg10[%c5_102, %c0_103, %c0_104], %248 {strides = array<i32>} : memref<8x16x128xbf16, #tpu.memory_space<vmem>>, vector<1x16x128xbf16>,
    %c6 = arith.constant 6 : index
    %c0_105 = arith.constant 0 : index
    %c0_106 = arith.constant 0 : index
    %249 = vector.load %arg1[%c6, %c0_105, %c0_106] : memref<8x16x512xf32, #tpu.memory_space<vmem>>, vector<1x16x512xf32>
    %250 = vector.shape_cast %249 : vector<1x16x512xf32> to vector<16x512xf32>
    %251 = arith.truncf %244 : vector<16x128xf32> to vector<16x128xbf16>
    %c0_107 = arith.constant 0 : index
    %c0_108 = arith.constant 0 : index
    %252 = vector.load %arg3[%c0_107, %c0_108] : memref<128x512xbf16, #tpu.memory_space<vmem>>, vector<128x512xbf16>
    %cst_109 = arith.constant dense<0.000000e+00> : vector<16x512xf32>
    %253 = tpu.matmul %251, %252, %cst_109 {dimension_numbers = #tpu.dot_dimension_numbers<[1], [0], [0], [1], [0, 0, 1, 1], [], []>} : vector<16x128xbf16>, vector<128x512xbf16>, vector<16x512xf32> -> vector<16x512xf32>
    %254 = arith.addf %250, %253 : vector<16x512xf32>
    %255 = vector.extract_strided_slice %254 {offsets = [0, 0], sizes = [16, 128], strides = [1, 1]} : vector<16x512xf32> to vector<16x128xf32>
    %cst_110 = arith.constant 5.000000e-01 : f32
    %256 = vector.broadcast %cst_110 : f32 to vector<16x128xf32>
    %257 = arith.mulf %256, %255 : vector<16x128xf32>
    %258 = math.tanh %257 : vector<16x128xf32>
    %cst_111 = arith.constant 5.000000e-01 : f32
    %259 = vector.broadcast %cst_111 : f32 to vector<16x128xf32>
    %260 = arith.mulf %259, %258 : vector<16x128xf32>
    %cst_112 = arith.constant 5.000000e-01 : f32
    %261 = vector.broadcast %cst_112 : f32 to vector<16x128xf32>
    %262 = arith.addf %260, %261 : vector<16x128xf32>
    %263 = vector.extract_strided_slice %254 {offsets = [0, 128], sizes = [16, 128], strides = [1, 1]} : vector<16x512xf32> to vector<16x128xf32>
    %cst_113 = arith.constant 5.000000e-01 : f32
    %264 = vector.broadcast %cst_113 : f32 to vector<16x128xf32>
    %265 = arith.mulf %264, %263 : vector<16x128xf32>
    %266 = math.tanh %265 : vector<16x128xf32>
    %cst_114 = arith.constant 5.000000e-01 : f32
    %267 = vector.broadcast %cst_114 : f32 to vector<16x128xf32>
    %268 = arith.mulf %267, %266 : vector<16x128xf32>
    %cst_115 = arith.constant 5.000000e-01 : f32
    %269 = vector.broadcast %cst_115 : f32 to vector<16x128xf32>
    %270 = arith.addf %268, %269 : vector<16x128xf32>
    %271 = vector.extract_strided_slice %254 {offsets = [0, 256], sizes = [16, 128], strides = [1, 1]} : vector<16x512xf32> to vector<16x128xf32>
    %272 = math.tanh %271 : vector<16x128xf32>
    %273 = vector.extract_strided_slice %254 {offsets = [0, 384], sizes = [16, 128], strides = [1, 1]} : vector<16x512xf32> to vector<16x128xf32>
    %cst_116 = arith.constant 5.000000e-01 : f32
    %274 = vector.broadcast %cst_116 : f32 to vector<16x128xf32>
    %275 = arith.mulf %274, %273 : vector<16x128xf32>
    %276 = math.tanh %275 : vector<16x128xf32>
    %cst_117 = arith.constant 5.000000e-01 : f32
    %277 = vector.broadcast %cst_117 : f32 to vector<16x128xf32>
    %278 = arith.mulf %277, %276 : vector<16x128xf32>
    %cst_118 = arith.constant 5.000000e-01 : f32
    %279 = vector.broadcast %cst_118 : f32 to vector<16x128xf32>
    %280 = arith.addf %278, %279 : vector<16x128xf32>
    %281 = arith.mulf %270, %242 : vector<16x128xf32>
    %282 = arith.mulf %262, %272 : vector<16x128xf32>
    %283 = arith.addf %281, %282 : vector<16x128xf32>
    %284 = math.tanh %283 : vector<16x128xf32>
    %285 = arith.mulf %280, %284 : vector<16x128xf32>
    %286 = arith.truncf %285 : vector<16x128xf32> to vector<16x128xbf16>
    %c6_119 = arith.constant 6 : index
    %c0_120 = arith.constant 0 : index
    %c0_121 = arith.constant 0 : index
    %287 = vector.load %arg10[%c6_119, %c0_120, %c0_121] : memref<8x16x128xbf16, #tpu.memory_space<vmem>>, vector<1x16x128xbf16>
    %288 = vector.shape_cast %287 : vector<1x16x128xbf16> to vector<16x128xbf16>
    %289 = vector.shape_cast %286 : vector<16x128xbf16> to vector<1x16x128xbf16>
    tpu.vector_store %arg10[%c6_119, %c0_120, %c0_121], %289 {strides = array<i32>} : memref<8x16x128xbf16, #tpu.memory_space<vmem>>, vector<1x16x128xbf16>,
    %c7 = arith.constant 7 : index
    %c0_122 = arith.constant 0 : index
    %c0_123 = arith.constant 0 : index
    %290 = vector.load %arg1[%c7, %c0_122, %c0_123] : memref<8x16x512xf32, #tpu.memory_space<vmem>>, vector<1x16x512xf32>
    %291 = vector.shape_cast %290 : vector<1x16x512xf32> to vector<16x512xf32>
    %292 = arith.truncf %285 : vector<16x128xf32> to vector<16x128xbf16>
    %c0_124 = arith.constant 0 : index
    %c0_125 = arith.constant 0 : index
    %293 = vector.load %arg3[%c0_124, %c0_125] : memref<128x512xbf16, #tpu.memory_space<vmem>>, vector<128x512xbf16>
    %cst_126 = arith.constant dense<0.000000e+00> : vector<16x512xf32>
    %294 = tpu.matmul %292, %293, %cst_126 {dimension_numbers = #tpu.dot_dimension_numbers<[1], [0], [0], [1], [0, 0, 1, 1], [], []>} : vector<16x128xbf16>, vector<128x512xbf16>, vector<16x512xf32> -> vector<16x512xf32>
    %295 = arith.addf %291, %294 : vector<16x512xf32>
    %296 = vector.extract_strided_slice %295 {offsets = [0, 0], sizes = [16, 128], strides = [1, 1]} : vector<16x512xf32> to vector<16x128xf32>
    %cst_127 = arith.constant 5.000000e-01 : f32
    %297 = vector.broadcast %cst_127 : f32 to vector<16x128xf32>
    %298 = arith.mulf %297, %296 : vector<16x128xf32>
    %299 = math.tanh %298 : vector<16x128xf32>
    %cst_128 = arith.constant 5.000000e-01 : f32
    %300 = vector.broadcast %cst_128 : f32 to vector<16x128xf32>
    %301 = arith.mulf %300, %299 : vector<16x128xf32>
    %cst_129 = arith.constant 5.000000e-01 : f32
    %302 = vector.broadcast %cst_129 : f32 to vector<16x128xf32>
    %303 = arith.addf %301, %302 : vector<16x128xf32>
    %304 = vector.extract_strided_slice %295 {offsets = [0, 128], sizes = [16, 128], strides = [1, 1]} : vector<16x512xf32> to vector<16x128xf32>
    %cst_130 = arith.constant 5.000000e-01 : f32
    %305 = vector.broadcast %cst_130 : f32 to vector<16x128xf32>
    %306 = arith.mulf %305, %304 : vector<16x128xf32>
    %307 = math.tanh %306 : vector<16x128xf32>
    %cst_131 = arith.constant 5.000000e-01 : f32
    %308 = vector.broadcast %cst_131 : f32 to vector<16x128xf32>
    %309 = arith.mulf %308, %307 : vector<16x128xf32>
    %cst_132 = arith.constant 5.000000e-01 : f32
    %310 = vector.broadcast %cst_132 : f32 to vector<16x128xf32>
    %311 = arith.addf %309, %310 : vector<16x128xf32>
    %312 = vector.extract_strided_slice %295 {offsets = [0, 256], sizes = [16, 128], strides = [1, 1]} : vector<16x512xf32> to vector<16x128xf32>
    %313 = math.tanh %312 : vector<16x128xf32>
    %314 = vector.extract_strided_slice %295 {offsets = [0, 384], sizes = [16, 128], strides = [1, 1]} : vector<16x512xf32> to vector<16x128xf32>
    %cst_133 = arith.constant 5.000000e-01 : f32
    %315 = vector.broadcast %cst_133 : f32 to vector<16x128xf32>
    %316 = arith.mulf %315, %314 : vector<16x128xf32>
    %317 = math.tanh %316 : vector<16x128xf32>
    %cst_134 = arith.constant 5.000000e-01 : f32
    %318 = vector.broadcast %cst_134 : f32 to vector<16x128xf32>
    %319 = arith.mulf %318, %317 : vector<16x128xf32>
    %cst_135 = arith.constant 5.000000e-01 : f32
    %320 = vector.broadcast %cst_135 : f32 to vector<16x128xf32>
    %321 = arith.addf %319, %320 : vector<16x128xf32>
    %322 = arith.mulf %311, %283 : vector<16x128xf32>
    %323 = arith.mulf %303, %313 : vector<16x128xf32>
    %324 = arith.addf %322, %323 : vector<16x128xf32>
    %325 = math.tanh %324 : vector<16x128xf32>
    %326 = arith.mulf %321, %325 : vector<16x128xf32>
    %327 = arith.truncf %326 : vector<16x128xf32> to vector<16x128xbf16>
    %c7_136 = arith.constant 7 : index
    %c0_137 = arith.constant 0 : index
    %c0_138 = arith.constant 0 : index
    %328 = vector.load %arg10[%c7_136, %c0_137, %c0_138] : memref<8x16x128xbf16, #tpu.memory_space<vmem>>, vector<1x16x128xbf16>
    %329 = vector.shape_cast %328 : vector<1x16x128xbf16> to vector<16x128xbf16>
    %330 = vector.shape_cast %327 : vector<16x128xbf16> to vector<1x16x128xbf16>
    tpu.vector_store %arg10[%c7_136, %c0_137, %c0_138], %330 {strides = array<i32>} : memref<8x16x128xbf16, #tpu.memory_space<vmem>>, vector<1x16x128xbf16>,
    %c0_139 = arith.constant 0 : index
    %c0_140 = arith.constant 0 : index
    %c0_141 = arith.constant 0 : index
    %331 = vector.load %arg10[%c0_139, %c0_140, %c0_141] : memref<8x16x128xbf16, #tpu.memory_space<vmem>>, vector<8x16x128xbf16>
    %332 = vector.shape_cast %331 : vector<8x16x128xbf16> to vector<128x128xbf16>
    %c0_142 = arith.constant 0 : index
    %c0_143 = arith.constant 0 : index
    %333 = vector.load %arg5[%c0_142, %c0_143] : memref<128x512xbf16, #tpu.memory_space<vmem>>, vector<128x512xbf16>
    %cst_144 = arith.constant dense<0.000000e+00> : vector<128x512xf32>
    %334 = tpu.matmul %332, %333, %cst_144 {dimension_numbers = #tpu.dot_dimension_numbers<[1], [0], [0], [1], [0, 0, 1, 1], [], []>} : vector<128x128xbf16>, vector<128x512xbf16>, vector<128x512xf32> -> vector<128x512xf32>
    %c0_145 = arith.constant 0 : index
    %c0_146 = arith.constant 0 : index
    %335 = vector.load %arg6[%c0_145, %c0_146] : memref<1x512xf32, #tpu.memory_space<vmem>>, vector<1x512xf32>
    %336 = vector.broadcast %335 : vector<1x512xf32> to vector<128x512xf32>
    %337 = arith.addf %334, %336 : vector<128x512xf32>
    %c0_147 = arith.constant 0 : index
    %c0_148 = arith.constant 0 : index
    %338 = vector.load %arg11[%c0_147, %c0_148] : memref<128x512xf32, #tpu.memory_space<vmem>>, vector<128x512xf32>
    tpu.vector_store %arg11[%c0_147, %c0_148], %337 {strides = array<i32>} : memref<128x512xf32, #tpu.memory_space<vmem>>, vector<128x512xf32>,
    %c1_149 = arith.constant 1 : index
    %c0_150 = arith.constant 0 : index
    %c0_151 = arith.constant 0 : index
    %339 = vector.load %arg2[%c1_149, %c0_150, %c0_151] : memref<2x16x128xf32, #tpu.memory_space<vmem>>, vector<1x16x128xf32>
    %340 = vector.shape_cast %339 : vector<1x16x128xf32> to vector<16x128xf32>
    %cst_152 = arith.constant 0.000000e+00 : f32
    %341 = vector.broadcast %cst_152 : f32 to vector<16x128xf32>
    %c0_153 = arith.constant 0 : index
    %c0_154 = arith.constant 0 : index
    %342 = vector.load %arg11[%c0_153, %c0_154] : memref<128x512xf32, #tpu.memory_space<vmem>>, vector<16x512xf32>
    %343 = arith.truncf %340 : vector<16x128xf32> to vector<16x128xbf16>
    %c0_155 = arith.constant 0 : index
    %c0_156 = arith.constant 0 : index
    %344 = vector.load %arg4[%c0_155, %c0_156] : memref<128x512xbf16, #tpu.memory_space<vmem>>, vector<128x512xbf16>
    %cst_157 = arith.constant dense<0.000000e+00> : vector<16x512xf32>
    %345 = tpu.matmul %343, %344, %cst_157 {dimension_numbers = #tpu.dot_dimension_numbers<[1], [0], [0], [1], [0, 0, 1, 1], [], []>} : vector<16x128xbf16>, vector<128x512xbf16>, vector<16x512xf32> -> vector<16x512xf32>
    %346 = arith.addf %342, %345 : vector<16x512xf32>
    %347 = vector.extract_strided_slice %346 {offsets = [0, 0], sizes = [16, 128], strides = [1, 1]} : vector<16x512xf32> to vector<16x128xf32>
    %cst_158 = arith.constant 5.000000e-01 : f32
    %348 = vector.broadcast %cst_158 : f32 to vector<16x128xf32>
    %349 = arith.mulf %348, %347 : vector<16x128xf32>
    %350 = math.tanh %349 : vector<16x128xf32>
    %cst_159 = arith.constant 5.000000e-01 : f32
    %351 = vector.broadcast %cst_159 : f32 to vector<16x128xf32>
    %352 = arith.mulf %351, %350 : vector<16x128xf32>
    %cst_160 = arith.constant 5.000000e-01 : f32
    %353 = vector.broadcast %cst_160 : f32 to vector<16x128xf32>
    %354 = arith.addf %352, %353 : vector<16x128xf32>
    %355 = vector.extract_strided_slice %346 {offsets = [0, 128], sizes = [16, 128], strides = [1, 1]} : vector<16x512xf32> to vector<16x128xf32>
    %cst_161 = arith.constant 5.000000e-01 : f32
    %356 = vector.broadcast %cst_161 : f32 to vector<16x128xf32>
    %357 = arith.mulf %356, %355 : vector<16x128xf32>
    %358 = math.tanh %357 : vector<16x128xf32>
    %cst_162 = arith.constant 5.000000e-01 : f32
    %359 = vector.broadcast %cst_162 : f32 to vector<16x128xf32>
    %360 = arith.mulf %359, %358 : vector<16x128xf32>
    %cst_163 = arith.constant 5.000000e-01 : f32
    %361 = vector.broadcast %cst_163 : f32 to vector<16x128xf32>
    %362 = arith.addf %360, %361 : vector<16x128xf32>
    %363 = vector.extract_strided_slice %346 {offsets = [0, 256], sizes = [16, 128], strides = [1, 1]} : vector<16x512xf32> to vector<16x128xf32>
    %364 = math.tanh %363 : vector<16x128xf32>
    %365 = vector.extract_strided_slice %346 {offsets = [0, 384], sizes = [16, 128], strides = [1, 1]} : vector<16x512xf32> to vector<16x128xf32>
    %cst_164 = arith.constant 5.000000e-01 : f32
    %366 = vector.broadcast %cst_164 : f32 to vector<16x128xf32>
    %367 = arith.mulf %366, %365 : vector<16x128xf32>
    %368 = math.tanh %367 : vector<16x128xf32>
    %cst_165 = arith.constant 5.000000e-01 : f32
    %369 = vector.broadcast %cst_165 : f32 to vector<16x128xf32>
    %370 = arith.mulf %369, %368 : vector<16x128xf32>
    %cst_166 = arith.constant 5.000000e-01 : f32
    %371 = vector.broadcast %cst_166 : f32 to vector<16x128xf32>
    %372 = arith.addf %370, %371 : vector<16x128xf32>
    %373 = arith.mulf %362, %341 : vector<16x128xf32>
    %374 = arith.mulf %354, %364 : vector<16x128xf32>
    %375 = arith.addf %373, %374 : vector<16x128xf32>
    %376 = math.tanh %375 : vector<16x128xf32>
    %377 = arith.mulf %372, %376 : vector<16x128xf32>
    %c16 = arith.constant 16 : index
    %c0_167 = arith.constant 0 : index
    %378 = vector.load %arg11[%c16, %c0_167] : memref<128x512xf32, #tpu.memory_space<vmem>>, vector<16x512xf32>
    %379 = arith.truncf %377 : vector<16x128xf32> to vector<16x128xbf16>
    %c0_168 = arith.constant 0 : index
    %c0_169 = arith.constant 0 : index
    %380 = vector.load %arg4[%c0_168, %c0_169] : memref<128x512xbf16, #tpu.memory_space<vmem>>, vector<128x512xbf16>
    %cst_170 = arith.constant dense<0.000000e+00> : vector<16x512xf32>
    %381 = tpu.matmul %379, %380, %cst_170 {dimension_numbers = #tpu.dot_dimension_numbers<[1], [0], [0], [1], [0, 0, 1, 1], [], []>} : vector<16x128xbf16>, vector<128x512xbf16>, vector<16x512xf32> -> vector<16x512xf32>
    %382 = arith.addf %378, %381 : vector<16x512xf32>
    %383 = vector.extract_strided_slice %382 {offsets = [0, 0], sizes = [16, 128], strides = [1, 1]} : vector<16x512xf32> to vector<16x128xf32>
    %cst_171 = arith.constant 5.000000e-01 : f32
    %384 = vector.broadcast %cst_171 : f32 to vector<16x128xf32>
    %385 = arith.mulf %384, %383 : vector<16x128xf32>
    %386 = math.tanh %385 : vector<16x128xf32>
    %cst_172 = arith.constant 5.000000e-01 : f32
    %387 = vector.broadcast %cst_172 : f32 to vector<16x128xf32>
    %388 = arith.mulf %387, %386 : vector<16x128xf32>
    %cst_173 = arith.constant 5.000000e-01 : f32
    %389 = vector.broadcast %cst_173 : f32 to vector<16x128xf32>
    %390 = arith.addf %388, %389 : vector<16x128xf32>
    %391 = vector.extract_strided_slice %382 {offsets = [0, 128], sizes = [16, 128], strides = [1, 1]} : vector<16x512xf32> to vector<16x128xf32>
    %cst_174 = arith.constant 5.000000e-01 : f32
    %392 = vector.broadcast %cst_174 : f32 to vector<16x128xf32>
    %393 = arith.mulf %392, %391 : vector<16x128xf32>
    %394 = math.tanh %393 : vector<16x128xf32>
    %cst_175 = arith.constant 5.000000e-01 : f32
    %395 = vector.broadcast %cst_175 : f32 to vector<16x128xf32>
    %396 = arith.mulf %395, %394 : vector<16x128xf32>
    %cst_176 = arith.constant 5.000000e-01 : f32
    %397 = vector.broadcast %cst_176 : f32 to vector<16x128xf32>
    %398 = arith.addf %396, %397 : vector<16x128xf32>
    %399 = vector.extract_strided_slice %382 {offsets = [0, 256], sizes = [16, 128], strides = [1, 1]} : vector<16x512xf32> to vector<16x128xf32>
    %400 = math.tanh %399 : vector<16x128xf32>
    %401 = vector.extract_strided_slice %382 {offsets = [0, 384], sizes = [16, 128], strides = [1, 1]} : vector<16x512xf32> to vector<16x128xf32>
    %cst_177 = arith.constant 5.000000e-01 : f32
    %402 = vector.broadcast %cst_177 : f32 to vector<16x128xf32>
    %403 = arith.mulf %402, %401 : vector<16x128xf32>
    %404 = math.tanh %403 : vector<16x128xf32>
    %cst_178 = arith.constant 5.000000e-01 : f32
    %405 = vector.broadcast %cst_178 : f32 to vector<16x128xf32>
    %406 = arith.mulf %405, %404 : vector<16x128xf32>
    %cst_179 = arith.constant 5.000000e-01 : f32
    %407 = vector.broadcast %cst_179 : f32 to vector<16x128xf32>
    %408 = arith.addf %406, %407 : vector<16x128xf32>
    %409 = arith.mulf %398, %375 : vector<16x128xf32>
    %410 = arith.mulf %390, %400 : vector<16x128xf32>
    %411 = arith.addf %409, %410 : vector<16x128xf32>
    %412 = math.tanh %411 : vector<16x128xf32>
    %413 = arith.mulf %408, %412 : vector<16x128xf32>
    %c32 = arith.constant 32 : index
    %c0_180 = arith.constant 0 : index
    %414 = vector.load %arg11[%c32, %c0_180] : memref<128x512xf32, #tpu.memory_space<vmem>>, vector<16x512xf32>
    %415 = arith.truncf %413 : vector<16x128xf32> to vector<16x128xbf16>
    %c0_181 = arith.constant 0 : index
    %c0_182 = arith.constant 0 : index
    %416 = vector.load %arg4[%c0_181, %c0_182] : memref<128x512xbf16, #tpu.memory_space<vmem>>, vector<128x512xbf16>
    %cst_183 = arith.constant dense<0.000000e+00> : vector<16x512xf32>
    %417 = tpu.matmul %415, %416, %cst_183 {dimension_numbers = #tpu.dot_dimension_numbers<[1], [0], [0], [1], [0, 0, 1, 1], [], []>} : vector<16x128xbf16>, vector<128x512xbf16>, vector<16x512xf32> -> vector<16x512xf32>
    %418 = arith.addf %414, %417 : vector<16x512xf32>
    %419 = vector.extract_strided_slice %418 {offsets = [0, 0], sizes = [16, 128], strides = [1, 1]} : vector<16x512xf32> to vector<16x128xf32>
    %cst_184 = arith.constant 5.000000e-01 : f32
    %420 = vector.broadcast %cst_184 : f32 to vector<16x128xf32>
    %421 = arith.mulf %420, %419 : vector<16x128xf32>
    %422 = math.tanh %421 : vector<16x128xf32>
    %cst_185 = arith.constant 5.000000e-01 : f32
    %423 = vector.broadcast %cst_185 : f32 to vector<16x128xf32>
    %424 = arith.mulf %423, %422 : vector<16x128xf32>
    %cst_186 = arith.constant 5.000000e-01 : f32
    %425 = vector.broadcast %cst_186 : f32 to vector<16x128xf32>
    %426 = arith.addf %424, %425 : vector<16x128xf32>
    %427 = vector.extract_strided_slice %418 {offsets = [0, 128], sizes = [16, 128], strides = [1, 1]} : vector<16x512xf32> to vector<16x128xf32>
    %cst_187 = arith.constant 5.000000e-01 : f32
    %428 = vector.broadcast %cst_187 : f32 to vector<16x128xf32>
    %429 = arith.mulf %428, %427 : vector<16x128xf32>
    %430 = math.tanh %429 : vector<16x128xf32>
    %cst_188 = arith.constant 5.000000e-01 : f32
    %431 = vector.broadcast %cst_188 : f32 to vector<16x128xf32>
    %432 = arith.mulf %431, %430 : vector<16x128xf32>
    %cst_189 = arith.constant 5.000000e-01 : f32
    %433 = vector.broadcast %cst_189 : f32 to vector<16x128xf32>
    %434 = arith.addf %432, %433 : vector<16x128xf32>
    %435 = vector.extract_strided_slice %418 {offsets = [0, 256], sizes = [16, 128], strides = [1, 1]} : vector<16x512xf32> to vector<16x128xf32>
    %436 = math.tanh %435 : vector<16x128xf32>
    %437 = vector.extract_strided_slice %418 {offsets = [0, 384], sizes = [16, 128], strides = [1, 1]} : vector<16x512xf32> to vector<16x128xf32>
    %cst_190 = arith.constant 5.000000e-01 : f32
    %438 = vector.broadcast %cst_190 : f32 to vector<16x128xf32>
    %439 = arith.mulf %438, %437 : vector<16x128xf32>
    %440 = math.tanh %439 : vector<16x128xf32>
    %cst_191 = arith.constant 5.000000e-01 : f32
    %441 = vector.broadcast %cst_191 : f32 to vector<16x128xf32>
    %442 = arith.mulf %441, %440 : vector<16x128xf32>
    %cst_192 = arith.constant 5.000000e-01 : f32
    %443 = vector.broadcast %cst_192 : f32 to vector<16x128xf32>
    %444 = arith.addf %442, %443 : vector<16x128xf32>
    %445 = arith.mulf %434, %411 : vector<16x128xf32>
    %446 = arith.mulf %426, %436 : vector<16x128xf32>
    %447 = arith.addf %445, %446 : vector<16x128xf32>
    %448 = math.tanh %447 : vector<16x128xf32>
    %449 = arith.mulf %444, %448 : vector<16x128xf32>
    %c48 = arith.constant 48 : index
    %c0_193 = arith.constant 0 : index
    %450 = vector.load %arg11[%c48, %c0_193] : memref<128x512xf32, #tpu.memory_space<vmem>>, vector<16x512xf32>
    %451 = arith.truncf %449 : vector<16x128xf32> to vector<16x128xbf16>
    %c0_194 = arith.constant 0 : index
    %c0_195 = arith.constant 0 : index
    %452 = vector.load %arg4[%c0_194, %c0_195] : memref<128x512xbf16, #tpu.memory_space<vmem>>, vector<128x512xbf16>
    %cst_196 = arith.constant dense<0.000000e+00> : vector<16x512xf32>
    %453 = tpu.matmul %451, %452, %cst_196 {dimension_numbers = #tpu.dot_dimension_numbers<[1], [0], [0], [1], [0, 0, 1, 1], [], []>} : vector<16x128xbf16>, vector<128x512xbf16>, vector<16x512xf32> -> vector<16x512xf32>
    %454 = arith.addf %450, %453 : vector<16x512xf32>
    %455 = vector.extract_strided_slice %454 {offsets = [0, 0], sizes = [16, 128], strides = [1, 1]} : vector<16x512xf32> to vector<16x128xf32>
    %cst_197 = arith.constant 5.000000e-01 : f32
    %456 = vector.broadcast %cst_197 : f32 to vector<16x128xf32>
    %457 = arith.mulf %456, %455 : vector<16x128xf32>
    %458 = math.tanh %457 : vector<16x128xf32>
    %cst_198 = arith.constant 5.000000e-01 : f32
    %459 = vector.broadcast %cst_198 : f32 to vector<16x128xf32>
    %460 = arith.mulf %459, %458 : vector<16x128xf32>
    %cst_199 = arith.constant 5.000000e-01 : f32
    %461 = vector.broadcast %cst_199 : f32 to vector<16x128xf32>
    %462 = arith.addf %460, %461 : vector<16x128xf32>
    %463 = vector.extract_strided_slice %454 {offsets = [0, 128], sizes = [16, 128], strides = [1, 1]} : vector<16x512xf32> to vector<16x128xf32>
    %cst_200 = arith.constant 5.000000e-01 : f32
    %464 = vector.broadcast %cst_200 : f32 to vector<16x128xf32>
    %465 = arith.mulf %464, %463 : vector<16x128xf32>
    %466 = math.tanh %465 : vector<16x128xf32>
    %cst_201 = arith.constant 5.000000e-01 : f32
    %467 = vector.broadcast %cst_201 : f32 to vector<16x128xf32>
    %468 = arith.mulf %467, %466 : vector<16x128xf32>
    %cst_202 = arith.constant 5.000000e-01 : f32
    %469 = vector.broadcast %cst_202 : f32 to vector<16x128xf32>
    %470 = arith.addf %468, %469 : vector<16x128xf32>
    %471 = vector.extract_strided_slice %454 {offsets = [0, 256], sizes = [16, 128], strides = [1, 1]} : vector<16x512xf32> to vector<16x128xf32>
    %472 = math.tanh %471 : vector<16x128xf32>
    %473 = vector.extract_strided_slice %454 {offsets = [0, 384], sizes = [16, 128], strides = [1, 1]} : vector<16x512xf32> to vector<16x128xf32>
    %cst_203 = arith.constant 5.000000e-01 : f32
    %474 = vector.broadcast %cst_203 : f32 to vector<16x128xf32>
    %475 = arith.mulf %474, %473 : vector<16x128xf32>
    %476 = math.tanh %475 : vector<16x128xf32>
    %cst_204 = arith.constant 5.000000e-01 : f32
    %477 = vector.broadcast %cst_204 : f32 to vector<16x128xf32>
    %478 = arith.mulf %477, %476 : vector<16x128xf32>
    %cst_205 = arith.constant 5.000000e-01 : f32
    %479 = vector.broadcast %cst_205 : f32 to vector<16x128xf32>
    %480 = arith.addf %478, %479 : vector<16x128xf32>
    %481 = arith.mulf %470, %447 : vector<16x128xf32>
    %482 = arith.mulf %462, %472 : vector<16x128xf32>
    %483 = arith.addf %481, %482 : vector<16x128xf32>
    %484 = math.tanh %483 : vector<16x128xf32>
    %485 = arith.mulf %480, %484 : vector<16x128xf32>
    %c64 = arith.constant 64 : index
    %c0_206 = arith.constant 0 : index
    %486 = vector.load %arg11[%c64, %c0_206] : memref<128x512xf32, #tpu.memory_space<vmem>>, vector<16x512xf32>
    %487 = arith.truncf %485 : vector<16x128xf32> to vector<16x128xbf16>
    %c0_207 = arith.constant 0 : index
    %c0_208 = arith.constant 0 : index
    %488 = vector.load %arg4[%c0_207, %c0_208] : memref<128x512xbf16, #tpu.memory_space<vmem>>, vector<128x512xbf16>
    %cst_209 = arith.constant dense<0.000000e+00> : vector<16x512xf32>
    %489 = tpu.matmul %487, %488, %cst_209 {dimension_numbers = #tpu.dot_dimension_numbers<[1], [0], [0], [1], [0, 0, 1, 1], [], []>} : vector<16x128xbf16>, vector<128x512xbf16>, vector<16x512xf32> -> vector<16x512xf32>
    %490 = arith.addf %486, %489 : vector<16x512xf32>
    %491 = vector.extract_strided_slice %490 {offsets = [0, 0], sizes = [16, 128], strides = [1, 1]} : vector<16x512xf32> to vector<16x128xf32>
    %cst_210 = arith.constant 5.000000e-01 : f32
    %492 = vector.broadcast %cst_210 : f32 to vector<16x128xf32>
    %493 = arith.mulf %492, %491 : vector<16x128xf32>
    %494 = math.tanh %493 : vector<16x128xf32>
    %cst_211 = arith.constant 5.000000e-01 : f32
    %495 = vector.broadcast %cst_211 : f32 to vector<16x128xf32>
    %496 = arith.mulf %495, %494 : vector<16x128xf32>
    %cst_212 = arith.constant 5.000000e-01 : f32
    %497 = vector.broadcast %cst_212 : f32 to vector<16x128xf32>
    %498 = arith.addf %496, %497 : vector<16x128xf32>
    %499 = vector.extract_strided_slice %490 {offsets = [0, 128], sizes = [16, 128], strides = [1, 1]} : vector<16x512xf32> to vector<16x128xf32>
    %cst_213 = arith.constant 5.000000e-01 : f32
    %500 = vector.broadcast %cst_213 : f32 to vector<16x128xf32>
    %501 = arith.mulf %500, %499 : vector<16x128xf32>
    %502 = math.tanh %501 : vector<16x128xf32>
    %cst_214 = arith.constant 5.000000e-01 : f32
    %503 = vector.broadcast %cst_214 : f32 to vector<16x128xf32>
    %504 = arith.mulf %503, %502 : vector<16x128xf32>
    %cst_215 = arith.constant 5.000000e-01 : f32
    %505 = vector.broadcast %cst_215 : f32 to vector<16x128xf32>
    %506 = arith.addf %504, %505 : vector<16x128xf32>
    %507 = vector.extract_strided_slice %490 {offsets = [0, 256], sizes = [16, 128], strides = [1, 1]} : vector<16x512xf32> to vector<16x128xf32>
    %508 = math.tanh %507 : vector<16x128xf32>
    %509 = vector.extract_strided_slice %490 {offsets = [0, 384], sizes = [16, 128], strides = [1, 1]} : vector<16x512xf32> to vector<16x128xf32>
    %cst_216 = arith.constant 5.000000e-01 : f32
    %510 = vector.broadcast %cst_216 : f32 to vector<16x128xf32>
    %511 = arith.mulf %510, %509 : vector<16x128xf32>
    %512 = math.tanh %511 : vector<16x128xf32>
    %cst_217 = arith.constant 5.000000e-01 : f32
    %513 = vector.broadcast %cst_217 : f32 to vector<16x128xf32>
    %514 = arith.mulf %513, %512 : vector<16x128xf32>
    %cst_218 = arith.constant 5.000000e-01 : f32
    %515 = vector.broadcast %cst_218 : f32 to vector<16x128xf32>
    %516 = arith.addf %514, %515 : vector<16x128xf32>
    %517 = arith.mulf %506, %483 : vector<16x128xf32>
    %518 = arith.mulf %498, %508 : vector<16x128xf32>
    %519 = arith.addf %517, %518 : vector<16x128xf32>
    %520 = math.tanh %519 : vector<16x128xf32>
    %521 = arith.mulf %516, %520 : vector<16x128xf32>
    %c80 = arith.constant 80 : index
    %c0_219 = arith.constant 0 : index
    %522 = vector.load %arg11[%c80, %c0_219] : memref<128x512xf32, #tpu.memory_space<vmem>>, vector<16x512xf32>
    %523 = arith.truncf %521 : vector<16x128xf32> to vector<16x128xbf16>
    %c0_220 = arith.constant 0 : index
    %c0_221 = arith.constant 0 : index
    %524 = vector.load %arg4[%c0_220, %c0_221] : memref<128x512xbf16, #tpu.memory_space<vmem>>, vector<128x512xbf16>
    %cst_222 = arith.constant dense<0.000000e+00> : vector<16x512xf32>
    %525 = tpu.matmul %523, %524, %cst_222 {dimension_numbers = #tpu.dot_dimension_numbers<[1], [0], [0], [1], [0, 0, 1, 1], [], []>} : vector<16x128xbf16>, vector<128x512xbf16>, vector<16x512xf32> -> vector<16x512xf32>
    %526 = arith.addf %522, %525 : vector<16x512xf32>
    %527 = vector.extract_strided_slice %526 {offsets = [0, 0], sizes = [16, 128], strides = [1, 1]} : vector<16x512xf32> to vector<16x128xf32>
    %cst_223 = arith.constant 5.000000e-01 : f32
    %528 = vector.broadcast %cst_223 : f32 to vector<16x128xf32>
    %529 = arith.mulf %528, %527 : vector<16x128xf32>
    %530 = math.tanh %529 : vector<16x128xf32>
    %cst_224 = arith.constant 5.000000e-01 : f32
    %531 = vector.broadcast %cst_224 : f32 to vector<16x128xf32>
    %532 = arith.mulf %531, %530 : vector<16x128xf32>
    %cst_225 = arith.constant 5.000000e-01 : f32
    %533 = vector.broadcast %cst_225 : f32 to vector<16x128xf32>
    %534 = arith.addf %532, %533 : vector<16x128xf32>
    %535 = vector.extract_strided_slice %526 {offsets = [0, 128], sizes = [16, 128], strides = [1, 1]} : vector<16x512xf32> to vector<16x128xf32>
    %cst_226 = arith.constant 5.000000e-01 : f32
    %536 = vector.broadcast %cst_226 : f32 to vector<16x128xf32>
    %537 = arith.mulf %536, %535 : vector<16x128xf32>
    %538 = math.tanh %537 : vector<16x128xf32>
    %cst_227 = arith.constant 5.000000e-01 : f32
    %539 = vector.broadcast %cst_227 : f32 to vector<16x128xf32>
    %540 = arith.mulf %539, %538 : vector<16x128xf32>
    %cst_228 = arith.constant 5.000000e-01 : f32
    %541 = vector.broadcast %cst_228 : f32 to vector<16x128xf32>
    %542 = arith.addf %540, %541 : vector<16x128xf32>
    %543 = vector.extract_strided_slice %526 {offsets = [0, 256], sizes = [16, 128], strides = [1, 1]} : vector<16x512xf32> to vector<16x128xf32>
    %544 = math.tanh %543 : vector<16x128xf32>
    %545 = vector.extract_strided_slice %526 {offsets = [0, 384], sizes = [16, 128], strides = [1, 1]} : vector<16x512xf32> to vector<16x128xf32>
    %cst_229 = arith.constant 5.000000e-01 : f32
    %546 = vector.broadcast %cst_229 : f32 to vector<16x128xf32>
    %547 = arith.mulf %546, %545 : vector<16x128xf32>
    %548 = math.tanh %547 : vector<16x128xf32>
    %cst_230 = arith.constant 5.000000e-01 : f32
    %549 = vector.broadcast %cst_230 : f32 to vector<16x128xf32>
    %550 = arith.mulf %549, %548 : vector<16x128xf32>
    %cst_231 = arith.constant 5.000000e-01 : f32
    %551 = vector.broadcast %cst_231 : f32 to vector<16x128xf32>
    %552 = arith.addf %550, %551 : vector<16x128xf32>
    %553 = arith.mulf %542, %519 : vector<16x128xf32>
    %554 = arith.mulf %534, %544 : vector<16x128xf32>
    %555 = arith.addf %553, %554 : vector<16x128xf32>
    %556 = math.tanh %555 : vector<16x128xf32>
    %557 = arith.mulf %552, %556 : vector<16x128xf32>
    %c96 = arith.constant 96 : index
    %c0_232 = arith.constant 0 : index
    %558 = vector.load %arg11[%c96, %c0_232] : memref<128x512xf32, #tpu.memory_space<vmem>>, vector<16x512xf32>
    %559 = arith.truncf %557 : vector<16x128xf32> to vector<16x128xbf16>
    %c0_233 = arith.constant 0 : index
    %c0_234 = arith.constant 0 : index
    %560 = vector.load %arg4[%c0_233, %c0_234] : memref<128x512xbf16, #tpu.memory_space<vmem>>, vector<128x512xbf16>
    %cst_235 = arith.constant dense<0.000000e+00> : vector<16x512xf32>
    %561 = tpu.matmul %559, %560, %cst_235 {dimension_numbers = #tpu.dot_dimension_numbers<[1], [0], [0], [1], [0, 0, 1, 1], [], []>} : vector<16x128xbf16>, vector<128x512xbf16>, vector<16x512xf32> -> vector<16x512xf32>
    %562 = arith.addf %558, %561 : vector<16x512xf32>
    %563 = vector.extract_strided_slice %562 {offsets = [0, 0], sizes = [16, 128], strides = [1, 1]} : vector<16x512xf32> to vector<16x128xf32>
    %cst_236 = arith.constant 5.000000e-01 : f32
    %564 = vector.broadcast %cst_236 : f32 to vector<16x128xf32>
    %565 = arith.mulf %564, %563 : vector<16x128xf32>
    %566 = math.tanh %565 : vector<16x128xf32>
    %cst_237 = arith.constant 5.000000e-01 : f32
    %567 = vector.broadcast %cst_237 : f32 to vector<16x128xf32>
    %568 = arith.mulf %567, %566 : vector<16x128xf32>
    %cst_238 = arith.constant 5.000000e-01 : f32
    %569 = vector.broadcast %cst_238 : f32 to vector<16x128xf32>
    %570 = arith.addf %568, %569 : vector<16x128xf32>
    %571 = vector.extract_strided_slice %562 {offsets = [0, 128], sizes = [16, 128], strides = [1, 1]} : vector<16x512xf32> to vector<16x128xf32>
    %cst_239 = arith.constant 5.000000e-01 : f32
    %572 = vector.broadcast %cst_239 : f32 to vector<16x128xf32>
    %573 = arith.mulf %572, %571 : vector<16x128xf32>
    %574 = math.tanh %573 : vector<16x128xf32>
    %cst_240 = arith.constant 5.000000e-01 : f32
    %575 = vector.broadcast %cst_240 : f32 to vector<16x128xf32>
    %576 = arith.mulf %575, %574 : vector<16x128xf32>
    %cst_241 = arith.constant 5.000000e-01 : f32
    %577 = vector.broadcast %cst_241 : f32 to vector<16x128xf32>
    %578 = arith.addf %576, %577 : vector<16x128xf32>
    %579 = vector.extract_strided_slice %562 {offsets = [0, 256], sizes = [16, 128], strides = [1, 1]} : vector<16x512xf32> to vector<16x128xf32>
    %580 = math.tanh %579 : vector<16x128xf32>
    %581 = vector.extract_strided_slice %562 {offsets = [0, 384], sizes = [16, 128], strides = [1, 1]} : vector<16x512xf32> to vector<16x128xf32>
    %cst_242 = arith.constant 5.000000e-01 : f32
    %582 = vector.broadcast %cst_242 : f32 to vector<16x128xf32>
    %583 = arith.mulf %582, %581 : vector<16x128xf32>
    %584 = math.tanh %583 : vector<16x128xf32>
    %cst_243 = arith.constant 5.000000e-01 : f32
    %585 = vector.broadcast %cst_243 : f32 to vector<16x128xf32>
    %586 = arith.mulf %585, %584 : vector<16x128xf32>
    %cst_244 = arith.constant 5.000000e-01 : f32
    %587 = vector.broadcast %cst_244 : f32 to vector<16x128xf32>
    %588 = arith.addf %586, %587 : vector<16x128xf32>
    %589 = arith.mulf %578, %555 : vector<16x128xf32>
    %590 = arith.mulf %570, %580 : vector<16x128xf32>
    %591 = arith.addf %589, %590 : vector<16x128xf32>
    %592 = math.tanh %591 : vector<16x128xf32>
    %593 = arith.mulf %588, %592 : vector<16x128xf32>
    %c112 = arith.constant 112 : index
    %c0_245 = arith.constant 0 : index
    %594 = vector.load %arg11[%c112, %c0_245] : memref<128x512xf32, #tpu.memory_space<vmem>>, vector<16x512xf32>
    %595 = arith.truncf %593 : vector<16x128xf32> to vector<16x128xbf16>
    %c0_246 = arith.constant 0 : index
    %c0_247 = arith.constant 0 : index
    %596 = vector.load %arg4[%c0_246, %c0_247] : memref<128x512xbf16, #tpu.memory_space<vmem>>, vector<128x512xbf16>
    %cst_248 = arith.constant dense<0.000000e+00> : vector<16x512xf32>
    %597 = tpu.matmul %595, %596, %cst_248 {dimension_numbers = #tpu.dot_dimension_numbers<[1], [0], [0], [1], [0, 0, 1, 1], [], []>} : vector<16x128xbf16>, vector<128x512xbf16>, vector<16x512xf32> -> vector<16x512xf32>
    %598 = arith.addf %594, %597 : vector<16x512xf32>
    %599 = vector.extract_strided_slice %598 {offsets = [0, 0], sizes = [16, 128], strides = [1, 1]} : vector<16x512xf32> to vector<16x128xf32>
    %cst_249 = arith.constant 5.000000e-01 : f32
    %600 = vector.broadcast %cst_249 : f32 to vector<16x128xf32>
    %601 = arith.mulf %600, %599 : vector<16x128xf32>
    %602 = math.tanh %601 : vector<16x128xf32>
    %cst_250 = arith.constant 5.000000e-01 : f32
    %603 = vector.broadcast %cst_250 : f32 to vector<16x128xf32>
    %604 = arith.mulf %603, %602 : vector<16x128xf32>
    %cst_251 = arith.constant 5.000000e-01 : f32
    %605 = vector.broadcast %cst_251 : f32 to vector<16x128xf32>
    %606 = arith.addf %604, %605 : vector<16x128xf32>
    %607 = vector.extract_strided_slice %598 {offsets = [0, 128], sizes = [16, 128], strides = [1, 1]} : vector<16x512xf32> to vector<16x128xf32>
    %cst_252 = arith.constant 5.000000e-01 : f32
    %608 = vector.broadcast %cst_252 : f32 to vector<16x128xf32>
    %609 = arith.mulf %608, %607 : vector<16x128xf32>
    %610 = math.tanh %609 : vector<16x128xf32>
    %cst_253 = arith.constant 5.000000e-01 : f32
    %611 = vector.broadcast %cst_253 : f32 to vector<16x128xf32>
    %612 = arith.mulf %611, %610 : vector<16x128xf32>
    %cst_254 = arith.constant 5.000000e-01 : f32
    %613 = vector.broadcast %cst_254 : f32 to vector<16x128xf32>
    %614 = arith.addf %612, %613 : vector<16x128xf32>
    %615 = vector.extract_strided_slice %598 {offsets = [0, 256], sizes = [16, 128], strides = [1, 1]} : vector<16x512xf32> to vector<16x128xf32>
    %616 = math.tanh %615 : vector<16x128xf32>
    %617 = vector.extract_strided_slice %598 {offsets = [0, 384], sizes = [16, 128], strides = [1, 1]} : vector<16x512xf32> to vector<16x128xf32>
    %cst_255 = arith.constant 5.000000e-01 : f32
    %618 = vector.broadcast %cst_255 : f32 to vector<16x128xf32>
    %619 = arith.mulf %618, %617 : vector<16x128xf32>
    %620 = math.tanh %619 : vector<16x128xf32>
    %cst_256 = arith.constant 5.000000e-01 : f32
    %621 = vector.broadcast %cst_256 : f32 to vector<16x128xf32>
    %622 = arith.mulf %621, %620 : vector<16x128xf32>
    %cst_257 = arith.constant 5.000000e-01 : f32
    %623 = vector.broadcast %cst_257 : f32 to vector<16x128xf32>
    %624 = arith.addf %622, %623 : vector<16x128xf32>
    %625 = arith.mulf %614, %591 : vector<16x128xf32>
    %626 = arith.mulf %606, %616 : vector<16x128xf32>
    %627 = arith.addf %625, %626 : vector<16x128xf32>
    %628 = math.tanh %627 : vector<16x128xf32>
    %629 = arith.mulf %624, %628 : vector<16x128xf32>
    %630 = arith.truncf %629 : vector<16x128xf32> to vector<16x128xbf16>
    %c0_258 = arith.constant 0 : index
    %c0_259 = arith.constant 0 : index
    %631 = vector.load %arg7[%c0_258, %c0_259] : memref<128x128xbf16, #tpu.memory_space<vmem>>, vector<128x128xbf16>
    %cst_260 = arith.constant dense<0.000000e+00> : vector<16x128xf32>
    %632 = tpu.matmul %630, %631, %cst_260 {dimension_numbers = #tpu.dot_dimension_numbers<[1], [0], [0], [1], [0, 0, 1, 1], [], []>} : vector<16x128xbf16>, vector<128x128xbf16>, vector<16x128xf32> -> vector<16x128xf32>
    %c0_261 = arith.constant 0 : index
    %c0_262 = arith.constant 0 : index
    %633 = vector.load %arg8[%c0_261, %c0_262] : memref<1x128xf32, #tpu.memory_space<vmem>>, vector<1x128xf32>
    %634 = vector.broadcast %633 : vector<1x128xf32> to vector<16x128xf32>
    %635 = arith.addf %632, %634 : vector<16x128xf32>
    %c0_263 = arith.constant 0 : index
    %c0_264 = arith.constant 0 : index
    %636 = vector.load %arg9[%c0_263, %c0_264] : memref<16x128xf32, #tpu.memory_space<vmem>>, vector<16x128xf32>
    tpu.vector_store %arg9[%c0_263, %c0_264], %635 {strides = array<i32>} : memref<16x128xf32, #tpu.memory_space<vmem>>, vector<16x128xf32>,
    return
  }
  func.func @transform_0(%arg0: i32) -> (i32, i32, i32) {
    %c0_i32 = arith.constant 0 : i32
    %c0_i32_0 = arith.constant 0 : i32
    %c0_i32_1 = arith.constant 0 : i32
    return %c0_i32, %arg0, %c0_i32_0 : i32, i32, i32
  }
  func.func @transform_1(%arg0: i32) -> (i32, i32, i32) {
    %c0_i32 = arith.constant 0 : i32
    %c0_i32_0 = arith.constant 0 : i32
    %c0_i32_1 = arith.constant 0 : i32
    return %c0_i32, %arg0, %c0_i32_0 : i32, i32, i32
  }
  func.func @transform_2(%arg0: i32) -> (i32, i32) {
    %c0_i32 = arith.constant 0 : i32
    %c0_i32_0 = arith.constant 0 : i32
    %c0_i32_1 = arith.constant 0 : i32
    return %c0_i32, %c0_i32_0 : i32, i32
  }
  func.func @transform_3(%arg0: i32) -> (i32, i32) {
    %c0_i32 = arith.constant 0 : i32
    %c0_i32_0 = arith.constant 0 : i32
    %c0_i32_1 = arith.constant 0 : i32
    return %c0_i32, %c0_i32_0 : i32, i32
  }
  func.func @transform_4(%arg0: i32) -> (i32, i32) {
    %c0_i32 = arith.constant 0 : i32
    %c0_i32_0 = arith.constant 0 : i32
    %c0_i32_1 = arith.constant 0 : i32
    return %c0_i32, %c0_i32_0 : i32, i32
  }
  func.func @transform_5(%arg0: i32) -> (i32, i32) {
    %c0_i32 = arith.constant 0 : i32
    %c0_i32_0 = arith.constant 0 : i32
    %c0_i32_1 = arith.constant 0 : i32
    return %c0_i32, %c0_i32_0 : i32, i32
  }
  func.func @transform_6(%arg0: i32) -> (i32, i32) {
    %c0_i32 = arith.constant 0 : i32
    %c0_i32_0 = arith.constant 0 : i32
    %c0_i32_1 = arith.constant 0 : i32
    return %c0_i32, %c0_i32_0 : i32, i32
  }
  func.func @transform_7(%arg0: i32) -> (i32, i32) {
    %c0_i32 = arith.constant 0 : i32
    %c0_i32_0 = arith.constant 0 : i32
    %c0_i32_1 = arith.constant 0 : i32
    return %c0_i32, %c0_i32_0 : i32, i32
  }
  func.func @transform_8(%arg0: i32) -> (i32, i32) {
    %c0_i32 = arith.constant 0 : i32
    %c0_i32_0 = arith.constant 0 : i32
    return %arg0, %c0_i32 : i32, i32
  }
}

</mosaic_0001>

<bundles_post_ra>
// kernel: tpu_custom_call.1
= control target key start
LH: loop header
LB: loop body
LE: loop exit
PB: predicated region body
PF: predicated region fallthrough
CT: control target
= control target key end

     0   :  { %13 = vsyncpa [#allocation5], 0  ;;  %s7170_s0 = inlined_call_operand.hbm [shape: f32[8,16,512], index: 0, kind: input, shape index: {}]   ;;  %s7171_s1 = inlined_call_operand.hbm [shape: f32[2,16,128], index: 1, kind: input, shape index: {}]   ;;  %s7172_s2 = inlined_call_operand.hbm [shape: bf16[128,512], index: 2, kind: input, shape index: {}]   ;;  %s7173_s3 = inlined_call_operand.hbm [shape: bf16[128,512], index: 3, kind: input, shape index: {}]   ;;  %s7174_s4 = inlined_call_operand.hbm [shape: bf16[128,512], index: 4, kind: input, shape index: {}]   ;;  %s7175_s5 = inlined_call_operand.vmem [shape: f32[1,512], index: 5, kind: input, shape index: {}]   ;;  %s7176_s6 = inlined_call_operand.hbm [shape: bf16[128,128], index: 6, kind: input, shape index: {}]   ;;  %s7177_s7 = inlined_call_operand.vmem [shape: f32[1,128], index: 7, kind: input, shape index: {}]   ;;  %s7178_s8 = inlined_call_operand.hbm [shape: f32[16,128], index: 8, kind: output, shape index: {}]  }
   0x1   :  { %14 = vsyncpa [#allocation8], 0 }
   0x2   :  { %15 = vsyncpa [#allocation11], 0 }
   0x3   :  { %16 = vsyncpa [#allocation14], 0 }
   0x4   :  { %17 = vsyncpa [#allocation6], 0  ;;  %s5960_s27 = smov [#allocation7]   ;;  %s5796_s9 = scalar_lea.hbm %s7171_s1, 512 }
   0x5   :  { %s35_s28 = sshll.u32 %s5960_s27, 4  ;;  %p5797_p0 = scmp.ne.s32.totalorder %s7171_s1, %s5796_s9  ;;  %s36_s28 = int_to_ptr.vmem [resolvable:$true] %s35_s28 }
   0x6   :  { %p5800_p1 = scmp.lt.u32.totalorder %s5796_s9, %s7171_s1 }
   0x8   :  { %p5802_p2 = pnand %p5800_p1, %p5797_p0 }
   0xa   :  { %5805 = shalt.err (!%p5802_p2)
}
   0xb   :  { %s5806_s14 = scalar_lea.vmem %s36_s28, 512  ;;  %p5811_p4 = scmp.lt.s32.totalorder %s36_s28, %s36_s28 }
   0xc   :  { %p5807_p3 = scmp.ne.s32.totalorder %s36_s28, %s5806_s14  ;;  %p5812_p5 = scmp.lt.s32.totalorder %s5806_s14, %s5806_s14 }
   0xe   :  { %p5813_p6 = por %p5812_p5, %p5811_p4 }
  0x10   :  { %p5814_p7 = pnand %p5813_p6, %p5807_p3 }
  0x12   :  { %5817 = shalt.err (!%p5814_p7)
}
  0x13   :  { %s5961_s15 = smov 128   ;;  %s5962_s16 = smov 8  }
  0x14   :  { %41 = dma.hbm_to_vmem [thread:$0]  %s7171_s1, 512, %s36_s28, [#allocation8], %s5961_s15, %s5961_s15, %s5962_s16  }
  0x15   :  { %s5963_s19 = smov [#allocation10]   ;;  %s5964_s21 = smov [#allocation4]  }
  0x16   :  { %s59_s20 = sshll.u32 %s5963_s19, 4  ;;  %s23_s22 = sshll.u32 %s5964_s21, 4  ;;  %s60_s20 = int_to_ptr.vmem [resolvable:$true] %s59_s20  ;;  %s24_s22 = int_to_ptr.vmem [resolvable:$true] %s23_s22 }
  0x17   :  { %s5818_s25 = scalar_lea.hbm %s7173_s3, 4096 }
  0x18   :  { %p5819_p8 = scmp.ne.s32.totalorder %s7173_s3, %s5818_s25  ;;  %p5822_p9 = scmp.lt.u32.totalorder %s5818_s25, %s7173_s3 }
  0x1a   :  { %p5824_p10 = pnand %p5822_p9, %p5819_p8 }
  0x1c   :  { %5827 = shalt.err (!%p5824_p10)
}
  0x1d   :  { %s5828_s1 = scalar_lea.vmem %s60_s20, 4096  ;;  %p5833_p12 = scmp.lt.s32.totalorder %s60_s20, %s60_s20 }
  0x1e   :  { %p5829_p11 = scmp.ne.s32.totalorder %s60_s20, %s5828_s1  ;;  %p5834_p13 = scmp.lt.s32.totalorder %s5828_s1, %s5828_s1 }
  0x20   :  { %p5835_p0 = por %p5834_p13, %p5833_p12 }
  0x22   :  { %p5836_p1 = pnand %p5835_p0, %p5829_p11 }
  0x24   :  { %5839 = shalt.err (!%p5836_p1)
}
  0x25   :  { %s5965_s28 = smov 256   ;;  %s5966_s9 = smov 16  }
  0x26   :  { %65 = dma.hbm_to_vmem [thread:$0]  %s7173_s3, 4096, %s60_s20, [#allocation11], %s5965_s28, %s5965_s28, %s5966_s9  }
  0x27   :  { %s5840_s14 = scalar_lea.hbm %s7170_s0, 8192 }
  0x28   :  { %p5841_p2 = scmp.ne.s32.totalorder %s7170_s0, %s5840_s14  ;;  %p5844_p3 = scmp.lt.u32.totalorder %s5840_s14, %s7170_s0 }
  0x2a   :  { %p5846_p4 = pnand %p5844_p3, %p5841_p2 }
  0x2c   :  { %5849 = shalt.err (!%p5846_p4)
}
  0x2d   :  { %s5850_s23 = scalar_lea.vmem %s24_s22, 8192  ;;  %p5855_p6 = scmp.lt.s32.totalorder %s24_s22, %s24_s22 }
  0x2e   :  { %p5851_p5 = scmp.ne.s32.totalorder %s24_s22, %s5850_s23  ;;  %p5856_p7 = scmp.lt.s32.totalorder %s5850_s23, %s5850_s23 }
  0x30   :  { %p5857_p8 = por %p5856_p7, %p5855_p6 }
  0x32   :  { %p5858_p9 = pnand %p5857_p8, %p5851_p5 }
  0x34   :  { %5861 = shalt.err (!%p5858_p9)
}
  0x35   :  { %s5967_s3 = smov 512   ;;  %s5968_s20 = smov 32  }
  0x36   :  { %29 = dma.hbm_to_vmem [thread:$0]  %s7170_s0, 8192, %s24_s22, [#allocation5], %s5967_s3, %s5967_s3, %s5968_s20  }
  0x37   :  { %s5969_s26 = smov [#allocation9]   ;;  %s5970_s29 = smov [#allocation12]  }
  0x38   :  { %s47_s27 = sshll.u32 %s5969_s26, 4  ;;  %s71_s30 = sshll.u32 %s5970_s29, 4  ;;  %s48_s27 = int_to_ptr.vmem [resolvable:$true] %s47_s27  ;;  %s72_s30 = int_to_ptr.vmem [resolvable:$true] %s71_s30 }
  0x39   :  { %s5862_s11 = scalar_lea.hbm %s7172_s2, 4096 }
  0x3a   :  { %p5863_p10 = scmp.ne.s32.totalorder %s7172_s2, %s5862_s11  ;;  %p5866_p11 = scmp.lt.u32.totalorder %s5862_s11, %s7172_s2 }
  0x3c   :  { %p5868_p12 = pnand %p5866_p11, %p5863_p10 }
  0x3e   :  { %5871 = shalt.err (!%p5868_p12)
}
  0x3f   :  { %s5872_s0 = scalar_lea.vmem %s48_s27, 4096  ;;  %p5877_p0 = scmp.lt.s32.totalorder %s48_s27, %s48_s27 }
  0x40   :  { %p5873_p13 = scmp.ne.s32.totalorder %s48_s27, %s5872_s0  ;;  %p5878_p1 = scmp.lt.s32.totalorder %s5872_s0, %s5872_s0 }
  0x42   :  { %p5879_p2 = por %p5878_p1, %p5877_p0 }
  0x44   :  { %p5880_p3 = pnand %p5879_p2, %p5873_p13 }
  0x46   :  { %5883 = shalt.err (!%p5880_p3)
}
  0x47   :  { %53 = dma.hbm_to_vmem [thread:$0]  %s7172_s2, 4096, %s48_s27, [#allocation8], %s5965_s28, %s5965_s28, %s5966_s9  }
  0x48   :  { %s5884_s23 = scalar_lea.hbm %s7174_s4, 4096 }
  0x49   :  { %p5885_p4 = scmp.ne.s32.totalorder %s7174_s4, %s5884_s23  ;;  %p5888_p5 = scmp.lt.u32.totalorder %s5884_s23, %s7174_s4 }
  0x4b   :  { %p5890_p6 = pnand %p5888_p5, %p5885_p4 }
  0x4d   :  { %5893 = shalt.err (!%p5890_p6)
}
  0x4e   :  { %s5894_s26 = scalar_lea.vmem %s72_s30, 4096  ;;  %p5899_p8 = scmp.lt.s32.totalorder %s72_s30, %s72_s30 }
  0x4f   :  { %p5895_p7 = scmp.ne.s32.totalorder %s72_s30, %s5894_s26  ;;  %p5900_p9 = scmp.lt.s32.totalorder %s5894_s26, %s5894_s26 }
  0x51   :  { %p5901_p10 = por %p5900_p9, %p5899_p8 }
  0x53   :  { %p5902_p11 = pnand %p5901_p10, %p5895_p7 }
  0x55   :  { %5905 = shalt.err (!%p5902_p11)
}
  0x56   :  { %77 = dma.hbm_to_vmem [thread:$0]  %s7174_s4, 4096, %s72_s30, [#allocation11], %s5965_s28, %s5965_s28, %s5966_s9  }
  0x57   :  { %s5971_s29 = smov [#allocation13]   ;;  %s5906_s12 = scalar_lea.hbm %s7176_s6, 1024 }
  0x58   :  { %s85_s1 = sshll.u32 %s5971_s29, 4  ;;  %p5907_p12 = scmp.ne.s32.totalorder %s7176_s6, %s5906_s12  ;;  %s86_s1 = int_to_ptr.vmem [resolvable:$true] %s85_s1 }
  0x59   :  { %p5910_p13 = scmp.lt.u32.totalorder %s5906_s12, %s7176_s6 }
  0x5b   :  { %p5912_p0 = pnand %p5910_p13, %p5907_p12 }
  0x5d   :  { %5915 = shalt.err (!%p5912_p0)
}
  0x5e   :  { %s5916_s22 = scalar_lea.vmem %s86_s1, 1024  ;;  %p5921_p2 = scmp.lt.s32.totalorder %s86_s1, %s86_s1 }
  0x5f   :  { %p5917_p1 = scmp.ne.s32.totalorder %s86_s1, %s5916_s22  ;;  %p5922_p3 = scmp.lt.s32.totalorder %s5916_s22, %s5916_s22 }
  0x61   :  { %p5923_p4 = por %p5922_p3, %p5921_p2 }
  0x63   :  { %p5924_p5 = pnand %p5923_p4, %p5917_p1 }
  0x65   :  { %5927 = shalt.err (!%p5924_p5)
}
  0x66   :  { %s5972_s4 = smov 64   ;;  %s5973_s28 = smov 4  }
  0x67   :  { %91 = dma.hbm_to_vmem [thread:$0]  %s7176_s6, 1024, %s86_s1, [#allocation14], %s5972_s4, %s5972_s4, %s5973_s28  }
  0x68   :  { %5950 = dma.done.wait [#allocation5], 8192  }
  0x69   :  { %5951 = vsyncadd [#allocation5], 4294959104 }
  0x6a   :  { %5952 = dma.done.wait [#allocation8], 4608  }
  0x6b   :  { %5953 = vsyncadd [#allocation8], 4294962688 }
  0x6c   :  { %5954 = dma.done.wait [#allocation11], 8192  }
  0x6d   :  { %5955 = vsyncadd [#allocation11], 4294959104 }
  0x6e   :  { %5956 = dma.done.wait [#allocation14], 1024  }
  0x6f   :  { %5957 = vsyncadd [#allocation14], 4294966272  ;;  %v5974_v0 = vmov 0   ;;  %v6109_v1 = vld [vmem:[#allocation9 + $0x4] ss:$16 sps:$4 sm:$0xff]   ;;  %v114_v32 = vld [vmem:[#allocation7 + $0x8] sm:$0xff] }
  0x70   :  { %348 = vmatprep.mubr.bf16.mxu0 %v5974_v0  ;;  %391 = vmatprep.mubr.bf16.mxu1 %v5974_v0  ;;  %v6111_v2 = vld [vmem:[#allocation9] ss:$16 sps:$4 sm:$0xff]   ;;  %v6114_v3 = vld [vmem:[#allocation9 + $0x24] ss:$16 sps:$4 sm:$0xff]   ;;  %v6117_v4 = vld [vmem:[#allocation9 + $0xc] ss:$16 sps:$4 sm:$0xff]  }
  0x71   :  { %316 = vmatprep.subr.bf16.mxu0 %v6109_v1  ;;  %v6119_v5 = vld [vmem:[#allocation9 + $0x20] ss:$16 sps:$4 sm:$0xff]   ;;  %v6121_v6 = vld [vmem:[#allocation9 + $0x8] ss:$16 sps:$4 sm:$0xff]   ;;  %v6124_v7 = vld [vmem:[#allocation9 + $0x44] ss:$16 sps:$4 sm:$0xff]   ;;  %359 = vmatprep.subr.bf16.mxu1 %v6117_v4 }
  0x72   :  { %317 = vmatpush1.bf16.msra.mxu0 %v6111_v2  ;;  %v6127_v8 = vld [vmem:[#allocation9 + $0x2c] ss:$16 sps:$4 sm:$0xff]   ;;  %360 = vmatpush1.bf16.msra.mxu1 %v6121_v6  ;;  %v6130_v9 = vld [vmem:[#allocation9 + $0x28] ss:$16 sps:$4 sm:$0xff]   ;;  %v6134_v10 = vld [vmem:[#allocation9 + $0x40] ss:$16 sps:$4 sm:$0xff]  }
  0x73   :  { %318 = vmatprep.subr.bf16.mxu0 %v6114_v3  ;;  %361 = vmatprep.subr.bf16.mxu1 %v6127_v8  ;;  %v6137_v11 = vld [vmem:[#allocation9 + $0x64] ss:$16 sps:$4 sm:$0xff]   ;;  %v6139_v12 = vld [vmem:[#allocation9 + $0x4c] ss:$16 sps:$4 sm:$0xff]   ;;  %v6142_v13 = vld [vmem:[#allocation9 + $0x48] ss:$16 sps:$4 sm:$0xff]  }
  0x74   :  { %v6146_v14 = vld [vmem:[#allocation9 + $0x60] ss:$16 sps:$4 sm:$0xff]   ;;  %v6148_v15 = vld [vmem:[#allocation9 + $0x6c] ss:$16 sps:$4 sm:$0xff]   ;;  %v6151_v16 = vld [vmem:[#allocation9 + $0x84] ss:$16 sps:$4 sm:$0xff]  }
  0x75   :  { %v6154_v17 = vld [vmem:[#allocation9 + $0x80] ss:$16 sps:$4 sm:$0xff]   ;;  %v6156_v18 = vld [vmem:[#allocation9 + $0x68] ss:$16 sps:$4 sm:$0xff]   ;;  %v6160_v19 = vld [vmem:[#allocation9 + $0x8c] ss:$16 sps:$4 sm:$0xff]  }
  0x76   :  { %319 = vmatpush1.bf16.msra.mxu0 %v6119_v5  ;;  %362 = vmatpush1.bf16.msra.mxu1 %v6130_v9  ;;  %v6163_v20 = vld [vmem:[#allocation9 + $0xa4] ss:$16 sps:$4 sm:$0xff]   ;;  %v6166_v21 = vld [vmem:[#allocation9 + $0x88] ss:$16 sps:$4 sm:$0xff]   ;;  %v6170_v22 = vld [vmem:[#allocation9 + $0xa0] ss:$16 sps:$4 sm:$0xff]  }
  0x77   :  { %320 = vmatprep.subr.bf16.mxu0 %v6124_v7  ;;  %363 = vmatprep.subr.bf16.mxu1 %v6139_v12  ;;  %v6172_v23 = vld [vmem:[#allocation9 + $0xac] ss:$16 sps:$4 sm:$0xff]   ;;  %v6175_v24 = vld [vmem:[#allocation9 + $0xc4] ss:$16 sps:$4 sm:$0xff]   ;;  %v6177_v25 = vld [vmem:[#allocation9 + $0xc0] ss:$16 sps:$4 sm:$0xff]  }
  0x78   :  { %v6179_v26 = vld [vmem:[#allocation9 + $0xa8] ss:$16 sps:$4 sm:$0xff]   ;;  %v6182_v27 = vld [vmem:[#allocation9 + $0xe4] ss:$16 sps:$4 sm:$0xff]   ;;  %v6184_v28 = vld [vmem:[#allocation9 + $0xcc] ss:$16 sps:$4 sm:$0xff]  }
  0x79   :  { %v6189_v29 = vld [vmem:[#allocation9 + $0xc8] ss:$16 sps:$4 sm:$0xff]   ;;  %v6191_v30 = vld [vmem:[#allocation9 + $0xe0] ss:$16 sps:$4 sm:$0xff]   ;;  %v6193_v33 = vld [vmem:[#allocation9 + $0xec] ss:$16 sps:$4 sm:$0xff]  }
  0x7a   :  { %321 = vmatpush1.bf16.msra.mxu0 %v6134_v10  ;;  %364 = vmatpush1.bf16.msra.mxu1 %v6142_v13  ;;  %v113_v31 = vld [vmem:[#allocation7] sm:$0xff]  ;;  %v6199_v34 = vld [vmem:[#allocation9 + $0xe8] ss:$16 sps:$4 sm:$0xff]   ;;  %v117_v45 = vld [vmem:[#allocation4 + $0x10] sm:$0xff]  ;;  %vm5976_vm0 = vmmov 0   ;;  %s5977_s21 = smov [#allocation15]  }
  0x7b   :  { %322 = vmatprep.subr.bf16.mxu0 %v6137_v11  ;;  %365 = vmatprep.subr.bf16.mxu1 %v6148_v15  ;;  %v123_v35 = vpack.c.bf16 %v114_v32, %v113_v31  ;;  %v115_v36 = vld [vmem:[#allocation4] sm:$0xff]  ;;  %v116_v37 = vld [vmem:[#allocation4 + $0x8] sm:$0xff]  ;;  %v121_v53 = vld [vmem:[#allocation4 + $0x30] sm:$0xff]  ;;  %s4725_s23 = sshll.u32 %s5977_s21, 4  ;;  %s4726_s23 = int_to_ptr.vmem [resolvable:$true] %s4725_s23 }
  0x7c   :  { %v119_v39 = vld [vmem:[#allocation4 + $0x20] sm:$0xff]  ;;  %v120_v42 = vld [vmem:[#allocation4 + $0x28] sm:$0xff]  ;;  %v118_v59 = vld [vmem:[#allocation4 + $0x18] sm:$0xff]  ;;  %s5928_s3 = scalar_lea.vmem %s4726_s23, 256  ;;  %p5933_p7 = scmp.lt.s32.totalorder %s4726_s23, %s4726_s23 }
  0x7d   :  { %v122_v61 = vld [vmem:[#allocation4 + $0x38] sm:$0xff]  ;;  %p5929_p6 = scmp.ne.s32.totalorder %s4726_s23, %s5928_s3  ;;  %p5934_p8 = scmp.lt.s32.totalorder %s5928_s3, %s5928_s3 }
  0x7e   :  { %323 = vmatpush1.bf16.msra.mxu0 %v6146_v14  ;;  %366 = vmatpush1.bf16.msra.mxu1 %v6156_v18 }
  0x7f   :  { %324 = vmatprep.subr.bf16.mxu0 %v6151_v16  ;;  %367 = vmatprep.subr.bf16.mxu1 %v6160_v19  ;;  %p5935_p9 = por %p5934_p8, %p5933_p7 }
  0x81   :  { %p5936_p10 = pnand %p5935_p9, %p5929_p6 }
  0x82   :  { %325 = vmatpush1.bf16.msra.mxu0 %v6154_v17  ;;  %368 = vmatpush1.bf16.msra.mxu1 %v6166_v21 }
  0x83   :  { %326 = vmatprep.subr.bf16.mxu0 %v6163_v20  ;;  %369 = vmatprep.subr.bf16.mxu1 %v6172_v23 }
  0x86   :  { %327 = vmatpush1.bf16.msra.mxu0 %v6170_v22  ;;  %370 = vmatpush1.bf16.msra.mxu1 %v6179_v26 }
  0x87   :  { %328 = vmatprep.subr.bf16.mxu0 %v6175_v24  ;;  %371 = vmatprep.subr.bf16.mxu1 %v6184_v28 }
  0x8a   :  { %329 = vmatpush1.bf16.msra.mxu0 %v6177_v25  ;;  %372 = vmatpush1.bf16.msra.mxu1 %v6189_v29 }
  0x8b   :  { %330 = vmatprep.subr.bf16.mxu0 %v6182_v27  ;;  %373 = vmatprep.subr.bf16.mxu1 %v6193_v33 }
  0x8e   :  { %331 = vmatpush1.bf16.msra.mxu0 %v6191_v30  ;;  %374 = vmatpush1.bf16.msra.mxu1 %v6199_v34 }
  0x8f   :  { %649 = vmatprep.subr.bf16.mxu0 %v6109_v1  ;;  %692 = vmatprep.subr.bf16.mxu1 %v6117_v4 }
  0x91   :  { %349 = vmatmul.mubr.bf16.vlgmr.msra.gmra.mrb[0].mxu0 %v123_v35  ;;  %392 = vmatmul.mubr.bf16.vlgmr.msra.gmra.mrb[0].mxu1 %v123_v35 }
  0x92   :  { %650 = vmatpush1.bf16.msra.mxu0 %v6111_v2  ;;  %681 = vmatprep.mubr.bf16.mxu0 %v5974_v0 }
  0x93   :  { %651 = vmatprep.subr.bf16.mxu0 %v6114_v3  ;;  %693 = vmatpush1.bf16.msra.mxu1 %v6121_v6 }
  0x94   :  { %724 = vmatprep.mubr.bf16.mxu1 %v5974_v0  ;;  %694 = vmatprep.subr.bf16.mxu1 %v6127_v8 }
  0x96   :  { %652 = vmatpush1.bf16.msra.mxu0 %v6119_v5 }
  0x97   :  { %653 = vmatprep.subr.bf16.mxu0 %v6124_v7  ;;  %695 = vmatpush1.bf16.msra.mxu1 %v6130_v9 }
  0x98   :  { %696 = vmatprep.subr.bf16.mxu1 %v6139_v12 }
  0x9a   :  { %654 = vmatpush1.bf16.msra.mxu0 %v6134_v10 }
  0x9b   :  { %655 = vmatprep.subr.bf16.mxu0 %v6137_v11  ;;  %697 = vmatpush1.bf16.msra.mxu1 %v6142_v13 }
  0x9c   :  { %698 = vmatprep.subr.bf16.mxu1 %v6148_v15 }
  0x9e   :  { %656 = vmatpush1.bf16.msra.mxu0 %v6146_v14 }
  0x9f   :  { %657 = vmatprep.subr.bf16.mxu0 %v6151_v16  ;;  %699 = vmatpush1.bf16.msra.mxu1 %v6156_v18 }
  0xa0   :  { %700 = vmatprep.subr.bf16.mxu1 %v6160_v19 }
  0xa2   :  { %658 = vmatpush1.bf16.msra.mxu0 %v6154_v17 }
  0xa3   :  { %659 = vmatprep.subr.bf16.mxu0 %v6163_v20  ;;  %701 = vmatpush1.bf16.msra.mxu1 %v6166_v21 }
  0xa4   :  { %702 = vmatprep.subr.bf16.mxu1 %v6172_v23 }
  0xa6   :  { %660 = vmatpush1.bf16.msra.mxu0 %v6170_v22 }
  0xa7   :  { %661 = vmatprep.subr.bf16.mxu0 %v6175_v24  ;;  %703 = vmatpush1.bf16.msra.mxu1 %v6179_v26 }
  0xa8   :  { %704 = vmatprep.subr.bf16.mxu1 %v6184_v28 }
  0xaa   :  { %662 = vmatpush1.bf16.msra.mxu0 %v6177_v25 }
  0xab   :  { %663 = vmatprep.subr.bf16.mxu0 %v6182_v27  ;;  %705 = vmatpush1.bf16.msra.mxu1 %v6189_v29 }
  0xac   :  { %706 = vmatprep.subr.bf16.mxu1 %v6193_v33 }
  0xae   :  { %664 = vmatpush1.bf16.msra.mxu0 %v6191_v30 }
  0xaf   :  { %983 = vmatprep.subr.bf16.mxu0 %v6109_v1  ;;  %707 = vmatpush1.bf16.msra.mxu1 %v6199_v34 }
  0xb0   :  { %1026 = vmatprep.subr.bf16.mxu1 %v6117_v4 }
 0x164   :  { %v350_v38 = vpop.f32.mrb[0].mxu0  ;;  %v393_v49 = vpop.f32.mrb[0].mxu1 }
 0x165   :  { %v402_v40 = vadd.f32 %v350_v38, %v115_v36  ;;  %v352_v41 = vpop.f32.mrb[1].mxu0  ;;  %v395_v52 = vpop.f32.mrb[1].mxu1  ;;  %v404_v55 = vadd.f32 %v393_v49, %v117_v45 }
 0x166   :  { %v403_v43 = vadd.f32 %v352_v41, %v116_v37  ;;  %v354_v44 = vpop.f32.mrb[2].mxu0  ;;  %v397_v56 = vpop.f32.mrb[2].mxu1  ;;  %v405_v62 = vadd.f32 %v395_v52, %v118_v59 }
 0x167   :  { %v410_v46 = vmul.f32 0.5, %v402_v40  ;;  %v406_v47 = vadd.f32 %v354_v44, %v119_v39  ;;  %v356_v48 = vpop.f32.mrb[3].mxu0  ;;  %v399_v58 = vpop.f32.mrb[3].mxu1  ;;  %v408_v60 = vadd.f32 %v397_v56, %v121_v53 }
 0x168   :  { %v418_v50 = vmul.f32 0.5, %v403_v43  ;;  %v407_v51 = vadd.f32 %v356_v48, %v120_v42  ;;  %v409_v63 = vadd.f32 %v399_v58, %v122_v61  ;;  %v428_v31 = vmul.f32 0.5, %v405_v62 }
 0x169   :  { %5444 = vtanh.f32 %v410_v46  ;;  %v411_v54 = vmul.f32 0.5, %v406_v47 }
 0x16a   :  { %5446 = vtanh.f32 %v418_v50  ;;  %v419_v57 = vmul.f32 0.5, %v407_v51  ;;  %v429_v35 = vmul.f32 0.5, %v409_v63 }
 0x16b   :  { %5448 = vtanh.f32 %v411_v54 }
 0x16c   :  { %5450 = vtanh.f32 %v419_v57 }
 0x16d   :  { %5452 = vtanh.f32 %v404_v55 }
 0x16e   :  { %5454 = vtanh.f32 %v408_v60 }
 0x16f   :  { %5456 = vtanh.f32 %v428_v31 }
 0x170   :  { %5458 = vtanh.f32 %v429_v35  ;;  %v449_v35 = vld [vmem:[#allocation4 + $0x40] sm:$0xff] }
 0x173   :  { %v5445_v32 = vpop.eup %5444 }
 0x174   :  { %v5447_v36 = vpop.eup %5446  ;;  %v414_v37 = vmul.f32 0.5, %v5445_v32 }
 0x175   :  { %v5449_v38 = vpop.eup %5448  ;;  %v422_v39 = vmul.f32 0.5, %v5447_v36  ;;  %v450_v36 = vld [vmem:[#allocation4 + $0x48] sm:$0xff] }
 0x176   :  { %v5451_v40 = vpop.eup %5450  ;;  %v416_v41 = vadd.f32 0.5, %v414_v37  ;;  %v415_v42 = vmul.f32 0.5, %v5449_v38 }
 0x177   :  { %v5453_v43 = vpop.eup %5452  ;;  %v424_v44 = vadd.f32 0.5, %v422_v39  ;;  %v423_v45 = vmul.f32 0.5, %v5451_v40  ;;  %v453_v39 = vld [vmem:[#allocation4 + $0x60] sm:$0xff] }
 0x178   :  { %v417_v46 = vadd.f32 0.5, %v415_v42  ;;  %v438_v47 = vmul.f32 %v5453_v43, %v416_v41  ;;  %v5455_v48 = vpop.eup %5454  ;;  %v454_v43 = vld [vmem:[#allocation4 + $0x68] sm:$0xff] }
 0x179   :  { %v436_v49 = vmul.f32 0.0, %v424_v44  ;;  %v425_v50 = vadd.f32 0.5, %v423_v45  ;;  %v5457_v55 = vpop.eup %5456  ;;  %v451_v44 = vld [vmem:[#allocation4 + $0x50] sm:$0xff] }
 0x17a   :  { %v439_v51 = vmul.f32 %v5455_v48, %v417_v46  ;;  %v5459_v56 = vpop.eup %5458  ;;  %v432_v57 = vmul.f32 0.5, %v5457_v55 }
 0x17b   :  { %v437_v52 = vmul.f32 0.0, %v425_v50  ;;  %v6241_v53 = vadd.f32 %v438_v47, %v436_v49  ;;  %v433_v58 = vmul.f32 0.5, %v5459_v56  ;;  %v455_v56 = vld [vmem:[#allocation4 + $0x70] sm:$0xff] }
 0x17c   :  { %v434_v60 = vadd.f32 0.5, %v432_v57 }
 0x17d   :  { %5460 = vtanh.f32 %v6241_v53  ;;  %v6244_v54 = vadd.f32 %v439_v51, %v437_v52  ;;  %v435_v61 = vadd.f32 0.5, %v433_v58 }
 0x17f   :  { %5462 = vtanh.f32 %v6244_v54 }
 0x187   :  { %v5461_v59 = vpop.eup %5460 }
 0x188   :  { %v444_v63 = vmul.f32 %v5461_v59, %v434_v60  ;;  %v452_v59 = vld [vmem:[#allocation4 + $0x58] sm:$0xff] }
 0x189   :  { %v5463_v62 = vpop.eup %5462  ;;  %v456_v60 = vld [vmem:[#allocation4 + $0x78] sm:$0xff] }
 0x18a   :  { %v445_v31 = vmul.f32 %v5463_v62, %v435_v61 }
 0x18c   :  { %v6247_v32 = vpack.c.bf16 %v445_v31, %v444_v63 }
 0x18e   :  { %682 = vmatmul.mubr.bf16.vlgmr.msra.gmra.mrb[4].mxu0 %v6247_v32  ;;  %725 = vmatmul.mubr.bf16.vlgmr.msra.gmra.mrb[4].mxu1 %v6247_v32 }
 0x18f   :  { %984 = vmatpush1.bf16.msra.mxu0 %v6111_v2  ;;  %1027 = vmatpush1.bf16.msra.mxu1 %v6121_v6 }
 0x190   :  { %985 = vmatprep.subr.bf16.mxu0 %v6114_v3  ;;  %1028 = vmatprep.subr.bf16.mxu1 %v6127_v8 }
 0x191   :  { %1015 = vmatprep.mubr.bf16.mxu0 %v5974_v0  ;;  %1058 = vmatprep.mubr.bf16.mxu1 %v5974_v0 }
 0x193   :  { %986 = vmatpush1.bf16.msra.mxu0 %v6119_v5  ;;  %1029 = vmatpush1.bf16.msra.mxu1 %v6130_v9 }
 0x194   :  { %987 = vmatprep.subr.bf16.mxu0 %v6124_v7  ;;  %1030 = vmatprep.subr.bf16.mxu1 %v6139_v12 }
 0x197   :  { %988 = vmatpush1.bf16.msra.mxu0 %v6134_v10  ;;  %1031 = vmatpush1.bf16.msra.mxu1 %v6142_v13 }
 0x198   :  { %989 = vmatprep.subr.bf16.mxu0 %v6137_v11  ;;  %1032 = vmatprep.subr.bf16.mxu1 %v6148_v15 }
 0x19b   :  { %990 = vmatpush1.bf16.msra.mxu0 %v6146_v14  ;;  %1033 = vmatpush1.bf16.msra.mxu1 %v6156_v18 }
 0x19c   :  { %991 = vmatprep.subr.bf16.mxu0 %v6151_v16  ;;  %1034 = vmatprep.subr.bf16.mxu1 %v6160_v19 }
 0x19f   :  { %992 = vmatpush1.bf16.msra.mxu0 %v6154_v17  ;;  %1035 = vmatpush1.bf16.msra.mxu1 %v6166_v21 }
 0x1a0   :  { %993 = vmatprep.subr.bf16.mxu0 %v6163_v20  ;;  %1036 = vmatprep.subr.bf16.mxu1 %v6172_v23 }
 0x1a3   :  { %994 = vmatpush1.bf16.msra.mxu0 %v6170_v22  ;;  %1037 = vmatpush1.bf16.msra.mxu1 %v6179_v26 }
 0x1a4   :  { %995 = vmatprep.subr.bf16.mxu0 %v6175_v24  ;;  %1038 = vmatprep.subr.bf16.mxu1 %v6184_v28 }
 0x1a7   :  { %996 = vmatpush1.bf16.msra.mxu0 %v6177_v25  ;;  %1039 = vmatpush1.bf16.msra.mxu1 %v6189_v29 }
 0x1a8   :  { %997 = vmatprep.subr.bf16.mxu0 %v6182_v27  ;;  %1040 = vmatprep.subr.bf16.mxu1 %v6193_v33 }
 0x1ab   :  { %998 = vmatpush1.bf16.msra.mxu0 %v6191_v30  ;;  %1041 = vmatpush1.bf16.msra.mxu1 %v6199_v34 }
 0x1ac   :  { %1317 = vmatprep.subr.bf16.mxu0 %v6109_v1  ;;  %1360 = vmatprep.subr.bf16.mxu1 %v6117_v4 }
 0x261   :  { %v683_v37 = vpop.f32.mrb[4].mxu0  ;;  %v726_v38 = vpop.f32.mrb[4].mxu1 }
 0x262   :  { %v735_v40 = vadd.f32 %v683_v37, %v449_v35  ;;  %v685_v41 = vpop.f32.mrb[5].mxu0  ;;  %v728_v42 = vpop.f32.mrb[5].mxu1  ;;  %v737_v4 = vadd.f32 %v726_v38, %v451_v44 }
 0x263   :  { %v736_v45 = vadd.f32 %v685_v41, %v450_v36  ;;  %v687_v46 = vpop.f32.mrb[6].mxu0  ;;  %v730_v47 = vpop.f32.mrb[6].mxu1  ;;  %v738_v61 = vadd.f32 %v728_v42, %v452_v59 }
 0x264   :  { %v743_v48 = vmul.f32 0.5, %v735_v40  ;;  %v739_v49 = vadd.f32 %v687_v46, %v453_v39  ;;  %v689_v50 = vpop.f32.mrb[7].mxu0  ;;  %v732_v51 = vpop.f32.mrb[7].mxu1  ;;  %v741_v58 = vadd.f32 %v730_v47, %v455_v56 }
 0x265   :  { %v751_v1 = vmul.f32 0.5, %v736_v45  ;;  %v740_v52 = vadd.f32 %v689_v50, %v454_v43  ;;  %v742_v62 = vadd.f32 %v732_v51, %v456_v60  ;;  %v761_v36 = vmul.f32 0.5, %v738_v61 }
 0x266   :  { %5464 = vtanh.f32 %v743_v48  ;;  %v744_v55 = vmul.f32 0.5, %v739_v49 }
 0x267   :  { %5466 = vtanh.f32 %v751_v1  ;;  %v752_v57 = vmul.f32 0.5, %v740_v52  ;;  %v762_v39 = vmul.f32 0.5, %v742_v62 }
 0x268   :  { %5468 = vtanh.f32 %v744_v55 }
 0x269   :  { %5470 = vtanh.f32 %v737_v4 }
 0x26a   :  { %5472 = vtanh.f32 %v752_v57 }
 0x26b   :  { %5474 = vtanh.f32 %v741_v58 }
 0x26c   :  { %5476 = vtanh.f32 %v761_v36 }
 0x26d   :  { %5478 = vtanh.f32 %v762_v39 }
 0x270   :  { %v5465_v63 = vpop.eup %5464 }
 0x271   :  { %v5467_v31 = vpop.eup %5466  ;;  %v747_v35 = vmul.f32 0.5, %v5465_v63 }
 0x272   :  { %v755_v37 = vmul.f32 0.5, %v5467_v31  ;;  %v5469_v38 = vpop.eup %5468 }
 0x273   :  { %v749_v40 = vadd.f32 0.5, %v747_v35  ;;  %v5471_v41 = vpop.eup %5470  ;;  %v748_v44 = vmul.f32 0.5, %v5469_v38 }
 0x274   :  { %v757_v43 = vadd.f32 0.5, %v755_v37  ;;  %v5473_v45 = vpop.eup %5472 }
 0x275   :  { %v771_v46 = vmul.f32 %v5471_v41, %v749_v40  ;;  %v750_v48 = vadd.f32 0.5, %v748_v44  ;;  %v756_v42 = vmul.f32 0.5, %v5473_v45  ;;  %v5475_v49 = vpop.eup %5474 }
 0x276   :  { %v769_v47 = vmul.f32 %v757_v43, %v6241_v53  ;;  %v5477_v55 = vpop.eup %5476 }
 0x277   :  { %v758_v51 = vadd.f32 0.5, %v756_v42  ;;  %v772_v1 = vmul.f32 %v5475_v49, %v750_v48  ;;  %v5479_v56 = vpop.eup %5478  ;;  %v765_v57 = vmul.f32 0.5, %v5477_v55 }
 0x278   :  { %v6286_v50 = vadd.f32 %v771_v46, %v769_v47  ;;  %v766_v53 = vmul.f32 0.5, %v5479_v56 }
 0x279   :  { %v770_v52 = vmul.f32 %v758_v51, %v6244_v54  ;;  %v767_v59 = vadd.f32 0.5, %v765_v57 }
 0x27a   :  { %5480 = vtanh.f32 %v6286_v50  ;;  %v768_v60 = vadd.f32 0.5, %v766_v53 }
 0x27b   :  { %v6290_v4 = vadd.f32 %v772_v1, %v770_v52 }
 0x27d   :  { %5482 = vtanh.f32 %v6290_v4 }
 0x284   :  { %v5481_v58 = vpop.eup %5480 }
 0x285   :  { %v777_v62 = vmul.f32 %v5481_v58, %v767_v59 }
 0x287   :  { %v5483_v61 = vpop.eup %5482 }
 0x288   :  { %v778_v63 = vmul.f32 %v5483_v61, %v768_v60 }
 0x28a   :  { %v6293_v31 = vpack.c.bf16 %v778_v63, %v777_v62 }
 0x28c   :  { %1016 = vmatmul.mubr.bf16.vlgmr.msra.gmra.mrb[8].mxu0 %v6293_v31  ;;  %1059 = vmatmul.mubr.bf16.vlgmr.msra.gmra.mrb[8].mxu1 %v6293_v31 }
 0x28d   :  { %1318 = vmatpush1.bf16.msra.mxu0 %v6111_v2  ;;  %1361 = vmatpush1.bf16.msra.mxu1 %v6121_v6  ;;  %v783_v2 = vld [vmem:[#allocation4 + $0x80] sm:$0xff] }
 0x28e   :  { %1319 = vmatprep.subr.bf16.mxu0 %v6114_v3  ;;  %1362 = vmatprep.subr.bf16.mxu1 %v6127_v8  ;;  %v784_v3 = vld [vmem:[#allocation4 + $0x88] sm:$0xff] }
 0x28f   :  { %1349 = vmatprep.mubr.bf16.mxu0 %v5974_v0  ;;  %1392 = vmatprep.mubr.bf16.mxu1 %v5974_v0 }
 0x291   :  { %1320 = vmatpush1.bf16.msra.mxu0 %v6119_v5  ;;  %1363 = vmatpush1.bf16.msra.mxu1 %v6130_v9 }
 0x292   :  { %1321 = vmatprep.subr.bf16.mxu0 %v6124_v7  ;;  %1364 = vmatprep.subr.bf16.mxu1 %v6139_v12  ;;  %v787_v7 = vld [vmem:[#allocation4 + $0xa0] sm:$0xff]  ;;  %v785_v12 = vld [vmem:[#allocation4 + $0x90] sm:$0xff] }
 0x295   :  { %1322 = vmatpush1.bf16.msra.mxu0 %v6134_v10  ;;  %1365 = vmatpush1.bf16.msra.mxu1 %v6142_v13 }
 0x296   :  { %1323 = vmatprep.subr.bf16.mxu0 %v6137_v11  ;;  %1366 = vmatprep.subr.bf16.mxu1 %v6148_v15  ;;  %v788_v11 = vld [vmem:[#allocation4 + $0xa8] sm:$0xff] }
 0x299   :  { %1324 = vmatpush1.bf16.msra.mxu0 %v6146_v14  ;;  %1367 = vmatpush1.bf16.msra.mxu1 %v6156_v18 }
 0x29a   :  { %1325 = vmatprep.subr.bf16.mxu0 %v6151_v16  ;;  %1368 = vmatprep.subr.bf16.mxu1 %v6160_v19 }
 0x29d   :  { %1326 = vmatpush1.bf16.msra.mxu0 %v6154_v17  ;;  %1369 = vmatpush1.bf16.msra.mxu1 %v6166_v21 }
 0x29e   :  { %1327 = vmatprep.subr.bf16.mxu0 %v6163_v20  ;;  %1370 = vmatprep.subr.bf16.mxu1 %v6172_v23 }
 0x2a1   :  { %1328 = vmatpush1.bf16.msra.mxu0 %v6170_v22  ;;  %1371 = vmatpush1.bf16.msra.mxu1 %v6179_v26 }
 0x2a2   :  { %1329 = vmatprep.subr.bf16.mxu0 %v6175_v24  ;;  %1372 = vmatprep.subr.bf16.mxu1 %v6184_v28  ;;  %v789_v24 = vld [vmem:[#allocation4 + $0xb0] sm:$0xff]  ;;  %v790_v28 = vld [vmem:[#allocation4 + $0xb8] sm:$0xff] }
 0x2a5   :  { %1330 = vmatpush1.bf16.msra.mxu0 %v6177_v25  ;;  %1373 = vmatpush1.bf16.msra.mxu1 %v6189_v29 }
 0x2a6   :  { %1331 = vmatprep.subr.bf16.mxu0 %v6182_v27  ;;  %1374 = vmatprep.subr.bf16.mxu1 %v6193_v33  ;;  %v786_v27 = vld [vmem:[#allocation4 + $0x98] sm:$0xff] }
 0x2a9   :  { %1332 = vmatpush1.bf16.msra.mxu0 %v6191_v30  ;;  %1375 = vmatpush1.bf16.msra.mxu1 %v6199_v34 }
 0x35f   :  { %v1017_v5 = vpop.f32.mrb[8].mxu0  ;;  %v1060_v6 = vpop.f32.mrb[8].mxu1 }
 0x360   :  { %v1069_v8 = vadd.f32 %v1017_v5, %v783_v2  ;;  %v1019_v9 = vpop.f32.mrb[9].mxu0  ;;  %v1062_v10 = vpop.f32.mrb[9].mxu1  ;;  %v1071_v22 = vadd.f32 %v1060_v6, %v785_v12  ;;  %v6347_v5 = vld [vmem:[#allocation9] ss:$16 sps:$4 sm:$0xff]   ;;  %v6349_v6 = vld [vmem:[#allocation9 + $0x8] ss:$16 sps:$4 sm:$0xff]  }
 0x361   :  { %v1070_v13 = vadd.f32 %v1019_v9, %v784_v3  ;;  %v1021_v14 = vpop.f32.mrb[10].mxu0  ;;  %v1064_v15 = vpop.f32.mrb[10].mxu1  ;;  %v1072_v29 = vadd.f32 %v1062_v10, %v786_v27  ;;  %v6345_v3 = vld [vmem:[#allocation9 + $0xc] ss:$16 sps:$4 sm:$0xff]   ;;  %v6359_v9 = vld [vmem:[#allocation9 + $0x20] ss:$16 sps:$4 sm:$0xff]  }
 0x362   :  { %v1077_v16 = vmul.f32 0.5, %v1069_v8  ;;  %v1073_v17 = vadd.f32 %v1021_v14, %v787_v7  ;;  %v1023_v18 = vpop.f32.mrb[11].mxu0  ;;  %v1066_v19 = vpop.f32.mrb[11].mxu1  ;;  %v1075_v26 = vadd.f32 %v1064_v15, %v789_v24  ;;  %1694 = vmatprep.subr.bf16.mxu1 %v6345_v3  ;;  %v6355_v7 = vld [vmem:[#allocation9 + $0x24] ss:$16 sps:$4 sm:$0xff]  }
 0x363   :  { %v1085_v20 = vmul.f32 0.5, %v1070_v13  ;;  %v1074_v21 = vadd.f32 %v1023_v18, %v788_v11  ;;  %v1076_v30 = vadd.f32 %v1066_v19, %v790_v28  ;;  %v1095_v35 = vmul.f32 0.5, %v1072_v29  ;;  %v6357_v8 = vld [vmem:[#allocation9 + $0x2c] ss:$16 sps:$4 sm:$0xff]   ;;  %v6361_v10 = vld [vmem:[#allocation9 + $0x28] ss:$16 sps:$4 sm:$0xff]  }
 0x364   :  { %5484 = vtanh.f32 %v1077_v16  ;;  %v1078_v23 = vmul.f32 0.5, %v1073_v17  ;;  %v6367_v11 = vld [vmem:[#allocation9 + $0x44] ss:$16 sps:$4 sm:$0xff]   ;;  %v6369_v12 = vld [vmem:[#allocation9 + $0x4c] ss:$16 sps:$4 sm:$0xff]  }
 0x365   :  { %5486 = vtanh.f32 %v1085_v20  ;;  %v1086_v25 = vmul.f32 0.5, %v1074_v21  ;;  %v1096_v37 = vmul.f32 0.5, %v1076_v30  ;;  %v6371_v13 = vld [vmem:[#allocation9 + $0x40] ss:$16 sps:$4 sm:$0xff]   ;;  %v6373_v14 = vld [vmem:[#allocation9 + $0x48] ss:$16 sps:$4 sm:$0xff]  }
 0x366   :  { %5488 = vtanh.f32 %v1078_v23  ;;  %v6379_v15 = vld [vmem:[#allocation9 + $0x64] ss:$16 sps:$4 sm:$0xff]   ;;  %v6381_v16 = vld [vmem:[#allocation9 + $0x6c] ss:$16 sps:$4 sm:$0xff]   ;;  %v6383_v17 = vld [vmem:[#allocation9 + $0x60] ss:$16 sps:$4 sm:$0xff]  }
 0x367   :  { %5490 = vtanh.f32 %v1071_v22  ;;  %v6385_v18 = vld [vmem:[#allocation9 + $0x68] ss:$16 sps:$4 sm:$0xff]   ;;  %v6391_v19 = vld [vmem:[#allocation9 + $0x84] ss:$16 sps:$4 sm:$0xff]   ;;  %v6393_v20 = vld [vmem:[#allocation9 + $0x8c] ss:$16 sps:$4 sm:$0xff]  }
 0x368   :  { %5492 = vtanh.f32 %v1086_v25  ;;  %v6395_v21 = vld [vmem:[#allocation9 + $0x80] ss:$16 sps:$4 sm:$0xff]   ;;  %v6397_v22 = vld [vmem:[#allocation9 + $0x88] ss:$16 sps:$4 sm:$0xff]   ;;  %v6403_v23 = vld [vmem:[#allocation9 + $0xa4] ss:$16 sps:$4 sm:$0xff]  }
 0x369   :  { %5494 = vtanh.f32 %v1075_v26  ;;  %v6405_v24 = vld [vmem:[#allocation9 + $0xac] ss:$16 sps:$4 sm:$0xff]   ;;  %v6407_v25 = vld [vmem:[#allocation9 + $0xa0] ss:$16 sps:$4 sm:$0xff]   ;;  %v6409_v26 = vld [vmem:[#allocation9 + $0xa8] ss:$16 sps:$4 sm:$0xff]  }
 0x36a   :  { %5496 = vtanh.f32 %v1095_v35  ;;  %v6415_v27 = vld [vmem:[#allocation9 + $0xc4] ss:$16 sps:$4 sm:$0xff]   ;;  %v6417_v28 = vld [vmem:[#allocation9 + $0xcc] ss:$16 sps:$4 sm:$0xff]   ;;  %v6419_v29 = vld [vmem:[#allocation9 + $0xc0] ss:$16 sps:$4 sm:$0xff]  }
 0x36b   :  { %5498 = vtanh.f32 %v1096_v37  ;;  %v6421_v30 = vld [vmem:[#allocation9 + $0xc8] ss:$16 sps:$4 sm:$0xff]   ;;  %v6433_v35 = vld [vmem:[#allocation9 + $0xec] ss:$16 sps:$4 sm:$0xff]  }
 0x36c   :  { %v1118_v37 = vld [vmem:[#allocation4 + $0xc8] sm:$0xff] }
 0x36e   :  { %v5485_v33 = vpop.eup %5484 }
 0x36f   :  { %v5487_v34 = vpop.eup %5486  ;;  %v1081_v54 = vmul.f32 0.5, %v5485_v33  ;;  %v6427_v33 = vld [vmem:[#allocation9 + $0xe0] ss:$16 sps:$4 sm:$0xff]  }
 0x370   :  { %v1089_v36 = vmul.f32 0.5, %v5487_v34  ;;  %v5489_v39 = vpop.eup %5488  ;;  %v6429_v34 = vld [vmem:[#allocation9 + $0xe4] ss:$16 sps:$4 sm:$0xff]  }
 0x371   :  { %v1083_v38 = vadd.f32 0.5, %v1081_v54  ;;  %v5491_v40 = vpop.eup %5490  ;;  %v1082_v43 = vmul.f32 0.5, %v5489_v39  ;;  %v6431_v54 = vld [vmem:[#allocation9 + $0xe8] ss:$16 sps:$4 sm:$0xff]  }
 0x372   :  { %v1091_v41 = vadd.f32 0.5, %v1089_v36  ;;  %v5493_v44 = vpop.eup %5492  ;;  %v1117_v36 = vld [vmem:[#allocation4 + $0xc0] sm:$0xff] }
 0x373   :  { %v1105_v45 = vmul.f32 %v5491_v40, %v1083_v38  ;;  %v1084_v47 = vadd.f32 0.5, %v1082_v43  ;;  %v1090_v48 = vmul.f32 0.5, %v5493_v44  ;;  %v5495_v42 = vpop.eup %5494  ;;  %v1121_v40 = vld [vmem:[#allocation4 + $0xe0] sm:$0xff] }
 0x374   :  { %v1103_v46 = vmul.f32 %v1091_v41, %v6286_v50  ;;  %v5497_v56 = vpop.eup %5496 }
 0x375   :  { %v1092_v51 = vadd.f32 0.5, %v1090_v48  ;;  %v1106_v1 = vmul.f32 %v5495_v42, %v1084_v47  ;;  %v5499_v57 = vpop.eup %5498  ;;  %v1099_v53 = vmul.f32 0.5, %v5497_v56 }
 0x376   :  { %v6330_v49 = vadd.f32 %v1105_v45, %v1103_v46  ;;  %v1100_v50 = vmul.f32 0.5, %v5499_v57  ;;  %v1122_v45 = vld [vmem:[#allocation4 + $0xe8] sm:$0xff]  ;;  %v1119_v46 = vld [vmem:[#allocation4 + $0xd0] sm:$0xff] }
 0x377   :  { %v1104_v52 = vmul.f32 %v1092_v51, %v6290_v4  ;;  %v1101_v59 = vadd.f32 0.5, %v1099_v53  ;;  %v6343_v4 = vld [vmem:[#allocation9 + $0x4] ss:$16 sps:$4 sm:$0xff]  }
 0x378   :  { %5500 = vtanh.f32 %v6330_v49  ;;  %v1102_v60 = vadd.f32 0.5, %v1100_v50  ;;  %1651 = vmatprep.subr.bf16.mxu0 %v6343_v4 }
 0x379   :  { %v6334_v55 = vadd.f32 %v1106_v1, %v1104_v52 }
 0x37b   :  { %5502 = vtanh.f32 %v6334_v55 }
 0x382   :  { %v5501_v58 = vpop.eup %5500 }
 0x383   :  { %v1111_v62 = vmul.f32 %v5501_v58, %v1101_v59  ;;  %v1123_v59 = vld [vmem:[#allocation4 + $0xf0] sm:$0xff] }
 0x385   :  { %v5503_v61 = vpop.eup %5502 }
 0x386   :  { %v1112_v63 = vmul.f32 %v5503_v61, %v1102_v60 }
 0x388   :  { %v6337_v2 = vpack.c.bf16 %v1112_v63, %v1111_v62  ;;  %v1120_v62 = vld [vmem:[#allocation4 + $0xd8] sm:$0xff] }
 0x389   :  { %v1124_v63 = vld [vmem:[#allocation4 + $0xf8] sm:$0xff] }
 0x38a   :  { %1350 = vmatmul.mubr.bf16.vlgmr.msra.gmra.mrb[12].mxu0 %v6337_v2  ;;  %1393 = vmatmul.mubr.bf16.vlgmr.msra.gmra.mrb[12].mxu1 %v6337_v2 }
 0x38b   :  { %1683 = vmatprep.mubr.bf16.mxu0 %v5974_v0  ;;  %1726 = vmatprep.mubr.bf16.mxu1 %v5974_v0 }
 0x38c   :  { %1652 = vmatpush1.bf16.msra.mxu0 %v6347_v5  ;;  %1695 = vmatpush1.bf16.msra.mxu1 %v6349_v6 }
 0x38d   :  { %1653 = vmatprep.subr.bf16.mxu0 %v6355_v7  ;;  %1696 = vmatprep.subr.bf16.mxu1 %v6357_v8 }
 0x390   :  { %1654 = vmatpush1.bf16.msra.mxu0 %v6359_v9  ;;  %1697 = vmatpush1.bf16.msra.mxu1 %v6361_v10 }
 0x391   :  { %1655 = vmatprep.subr.bf16.mxu0 %v6367_v11  ;;  %1698 = vmatprep.subr.bf16.mxu1 %v6369_v12 }
 0x394   :  { %1656 = vmatpush1.bf16.msra.mxu0 %v6371_v13  ;;  %1699 = vmatpush1.bf16.msra.mxu1 %v6373_v14 }
 0x395   :  { %1657 = vmatprep.subr.bf16.mxu0 %v6379_v15  ;;  %1700 = vmatprep.subr.bf16.mxu1 %v6381_v16 }
 0x398   :  { %1658 = vmatpush1.bf16.msra.mxu0 %v6383_v17  ;;  %1701 = vmatpush1.bf16.msra.mxu1 %v6385_v18 }
 0x399   :  { %1659 = vmatprep.subr.bf16.mxu0 %v6391_v19  ;;  %1702 = vmatprep.subr.bf16.mxu1 %v6393_v20 }
 0x39c   :  { %1660 = vmatpush1.bf16.msra.mxu0 %v6395_v21  ;;  %1703 = vmatpush1.bf16.msra.mxu1 %v6397_v22 }
 0x39d   :  { %1661 = vmatprep.subr.bf16.mxu0 %v6403_v23  ;;  %1704 = vmatprep.subr.bf16.mxu1 %v6405_v24 }
 0x3a0   :  { %1662 = vmatpush1.bf16.msra.mxu0 %v6407_v25  ;;  %1705 = vmatpush1.bf16.msra.mxu1 %v6409_v26 }
 0x3a1   :  { %1663 = vmatprep.subr.bf16.mxu0 %v6415_v27  ;;  %1706 = vmatprep.subr.bf16.mxu1 %v6417_v28 }
 0x3a4   :  { %1664 = vmatpush1.bf16.msra.mxu0 %v6419_v29  ;;  %1707 = vmatpush1.bf16.msra.mxu1 %v6421_v30 }
 0x3a5   :  { %1665 = vmatprep.subr.bf16.mxu0 %v6429_v34  ;;  %1708 = vmatprep.subr.bf16.mxu1 %v6433_v35 }
 0x3a8   :  { %1666 = vmatpush1.bf16.msra.mxu0 %v6427_v33  ;;  %1709 = vmatpush1.bf16.msra.mxu1 %v6431_v54 }
 0x3a9   :  { %1985 = vmatprep.subr.bf16.mxu0 %v6343_v4  ;;  %2028 = vmatprep.subr.bf16.mxu1 %v6345_v3 }
 0x45d   :  { %v1351_v39 = vpop.f32.mrb[12].mxu0  ;;  %v1394_v38 = vpop.f32.mrb[12].mxu1 }
 0x45e   :  { %v1403_v41 = vadd.f32 %v1351_v39, %v1117_v36  ;;  %v1353_v43 = vpop.f32.mrb[13].mxu0  ;;  %v1396_v44 = vpop.f32.mrb[13].mxu1  ;;  %v1405_v50 = vadd.f32 %v1394_v38, %v1119_v46 }
 0x45f   :  { %v1404_v47 = vadd.f32 %v1353_v43, %v1118_v37  ;;  %v1355_v48 = vpop.f32.mrb[14].mxu0  ;;  %v1398_v42 = vpop.f32.mrb[14].mxu1  ;;  %v1406_v36 = vadd.f32 %v1396_v44, %v1120_v62 }
 0x460   :  { %v1411_v51 = vmul.f32 0.5, %v1403_v41  ;;  %v1407_v1 = vadd.f32 %v1355_v48, %v1121_v40  ;;  %v1357_v52 = vpop.f32.mrb[15].mxu0  ;;  %v1400_v56 = vpop.f32.mrb[15].mxu1  ;;  %v1409_v61 = vadd.f32 %v1398_v42, %v1123_v59 }
 0x461   :  { %v1419_v57 = vmul.f32 0.5, %v1404_v47  ;;  %v1408_v53 = vadd.f32 %v1357_v52, %v1122_v45  ;;  %v1410_v37 = vadd.f32 %v1400_v56, %v1124_v63  ;;  %v1429_v43 = vmul.f32 0.5, %v1406_v36 }
 0x462   :  { %5504 = vtanh.f32 %v1411_v51  ;;  %v1412_v58 = vmul.f32 0.5, %v1407_v1 }
 0x463   :  { %5506 = vtanh.f32 %v1419_v57  ;;  %v1420_v60 = vmul.f32 0.5, %v1408_v53  ;;  %v1430_v47 = vmul.f32 0.5, %v1410_v37 }
 0x464   :  { %5508 = vtanh.f32 %v1412_v58 }
 0x465   :  { %5510 = vtanh.f32 %v1405_v50 }
 0x466   :  { %5512 = vtanh.f32 %v1420_v60 }
 0x467   :  { %5514 = vtanh.f32 %v1409_v61 }
 0x468   :  { %5516 = vtanh.f32 %v1429_v43 }
 0x469   :  { %5518 = vtanh.f32 %v1430_v47 }
 0x46c   :  { %v5505_v39 = vpop.eup %5504 }
 0x46d   :  { %v5507_v40 = vpop.eup %5506  ;;  %v1415_v41 = vmul.f32 0.5, %v5505_v39 }
 0x46e   :  { %v1423_v45 = vmul.f32 0.5, %v5507_v40  ;;  %v5509_v38 = vpop.eup %5508 }
 0x46f   :  { %v1417_v46 = vadd.f32 0.5, %v1415_v41  ;;  %v5511_v48 = vpop.eup %5510  ;;  %v1416_v1 = vmul.f32 0.5, %v5509_v38  ;;  %v1452_v38 = vld [vmem:[#allocation4 + $0x108] sm:$0xff] }
 0x470   :  { %v1425_v51 = vadd.f32 0.5, %v1423_v45  ;;  %v5513_v52 = vpop.eup %5512 }
 0x471   :  { %v1439_v42 = vmul.f32 %v5511_v48, %v1417_v46  ;;  %v1418_v53 = vadd.f32 0.5, %v1416_v1  ;;  %v1424_v44 = vmul.f32 0.5, %v5513_v52  ;;  %v5515_v56 = vpop.eup %5514 }
 0x472   :  { %v1437_v57 = vmul.f32 %v1425_v51, %v6330_v49  ;;  %v5517_v62 = vpop.eup %5516  ;;  %v1455_v51 = vld [vmem:[#allocation4 + $0x120] sm:$0xff] }
 0x473   :  { %v1426_v58 = vadd.f32 0.5, %v1424_v44  ;;  %v1440_v59 = vmul.f32 %v5515_v56, %v1418_v53  ;;  %v5519_v63 = vpop.eup %5518  ;;  %v1433_v36 = vmul.f32 0.5, %v5517_v62  ;;  %v1453_v53 = vld [vmem:[#allocation4 + $0x110] sm:$0xff] }
 0x474   :  { %v6442_v50 = vadd.f32 %v1439_v42, %v1437_v57  ;;  %v1434_v49 = vmul.f32 0.5, %v5519_v63  ;;  %v1456_v57 = vld [vmem:[#allocation4 + $0x128] sm:$0xff] }
 0x475   :  { %v1438_v60 = vmul.f32 %v1426_v58, %v6334_v55  ;;  %v1435_v39 = vadd.f32 0.5, %v1433_v36  ;;  %v1451_v55 = vld [vmem:[#allocation4 + $0x100] sm:$0xff] }
 0x476   :  { %5520 = vtanh.f32 %v6442_v50  ;;  %v1436_v40 = vadd.f32 0.5, %v1434_v49 }
 0x477   :  { %v6446_v61 = vadd.f32 %v1440_v59, %v1438_v60 }
 0x479   :  { %5522 = vtanh.f32 %v6446_v61 }
 0x480   :  { %v5521_v37 = vpop.eup %5520 }
 0x481   :  { %v1445_v43 = vmul.f32 %v5521_v37, %v1435_v39 }
 0x483   :  { %v5523_v41 = vpop.eup %5522 }
 0x484   :  { %v1446_v45 = vmul.f32 %v5523_v41, %v1436_v40  ;;  %v1457_v40 = vld [vmem:[#allocation4 + $0x130] sm:$0xff] }
 0x486   :  { %v6449_v47 = vpack.c.bf16 %v1446_v45, %v1445_v43  ;;  %v1454_v45 = vld [vmem:[#allocation4 + $0x118] sm:$0xff] }
 0x488   :  { %1684 = vmatmul.mubr.bf16.vlgmr.msra.gmra.mrb[16].mxu0 %v6449_v47  ;;  %1727 = vmatmul.mubr.bf16.vlgmr.msra.gmra.mrb[16].mxu1 %v6449_v47 }
 0x489   :  { %1986 = vmatpush1.bf16.msra.mxu0 %v6347_v5  ;;  %2029 = vmatpush1.bf16.msra.mxu1 %v6349_v6 }
 0x48a   :  { %1987 = vmatprep.subr.bf16.mxu0 %v6355_v7  ;;  %2030 = vmatprep.subr.bf16.mxu1 %v6357_v8 }
 0x48b   :  { %2017 = vmatprep.mubr.bf16.mxu0 %v5974_v0  ;;  %2060 = vmatprep.mubr.bf16.mxu1 %v5974_v0 }
 0x48d   :  { %1988 = vmatpush1.bf16.msra.mxu0 %v6359_v9  ;;  %2031 = vmatpush1.bf16.msra.mxu1 %v6361_v10 }
 0x48e   :  { %1989 = vmatprep.subr.bf16.mxu0 %v6367_v11  ;;  %2032 = vmatprep.subr.bf16.mxu1 %v6369_v12 }
 0x491   :  { %1990 = vmatpush1.bf16.msra.mxu0 %v6371_v13  ;;  %2033 = vmatpush1.bf16.msra.mxu1 %v6373_v14 }
 0x492   :  { %1991 = vmatprep.subr.bf16.mxu0 %v6379_v15  ;;  %2034 = vmatprep.subr.bf16.mxu1 %v6381_v16 }
 0x495   :  { %1992 = vmatpush1.bf16.msra.mxu0 %v6383_v17  ;;  %2035 = vmatpush1.bf16.msra.mxu1 %v6385_v18 }
 0x496   :  { %1993 = vmatprep.subr.bf16.mxu0 %v6391_v19  ;;  %2036 = vmatprep.subr.bf16.mxu1 %v6393_v20 }
 0x499   :  { %1994 = vmatpush1.bf16.msra.mxu0 %v6395_v21  ;;  %2037 = vmatpush1.bf16.msra.mxu1 %v6397_v22 }
 0x49a   :  { %1995 = vmatprep.subr.bf16.mxu0 %v6403_v23  ;;  %2038 = vmatprep.subr.bf16.mxu1 %v6405_v24 }
 0x49d   :  { %1996 = vmatpush1.bf16.msra.mxu0 %v6407_v25  ;;  %2039 = vmatpush1.bf16.msra.mxu1 %v6409_v26 }
 0x49e   :  { %1997 = vmatprep.subr.bf16.mxu0 %v6415_v27  ;;  %2040 = vmatprep.subr.bf16.mxu1 %v6417_v28 }
 0x4a1   :  { %1998 = vmatpush1.bf16.msra.mxu0 %v6419_v29  ;;  %2041 = vmatpush1.bf16.msra.mxu1 %v6421_v30 }
 0x4a2   :  { %1999 = vmatprep.subr.bf16.mxu0 %v6429_v34  ;;  %2042 = vmatprep.subr.bf16.mxu1 %v6433_v35 }
 0x4a5   :  { %2000 = vmatpush1.bf16.msra.mxu0 %v6427_v33  ;;  %2043 = vmatpush1.bf16.msra.mxu1 %v6431_v54 }
 0x4a6   :  { %2319 = vmatprep.subr.bf16.mxu0 %v6343_v4  ;;  %2362 = vmatprep.subr.bf16.mxu1 %v6345_v3 }
 0x55b   :  { %v1685_v46 = vpop.f32.mrb[16].mxu0  ;;  %v1728_v48 = vpop.f32.mrb[16].mxu1 }
 0x55c   :  { %v1737_v1 = vadd.f32 %v1685_v46, %v1451_v55  ;;  %v1687_v52 = vpop.f32.mrb[17].mxu0  ;;  %v1730_v42 = vpop.f32.mrb[17].mxu1  ;;  %v1739_v37 = vadd.f32 %v1728_v48, %v1453_v53  ;;  %v1458_v55 = vld [vmem:[#allocation4 + $0x138] sm:$0xff] }
 0x55d   :  { %v1738_v44 = vadd.f32 %v1687_v52, %v1452_v38  ;;  %v1689_v56 = vpop.f32.mrb[18].mxu0  ;;  %v1732_v58 = vpop.f32.mrb[18].mxu1  ;;  %v1740_v38 = vadd.f32 %v1730_v42, %v1454_v45 }
 0x55e   :  { %v1745_v59 = vmul.f32 0.5, %v1737_v1  ;;  %v1741_v60 = vadd.f32 %v1689_v56, %v1455_v51  ;;  %v1691_v62 = vpop.f32.mrb[19].mxu0  ;;  %v1734_v63 = vpop.f32.mrb[19].mxu1  ;;  %v1743_v43 = vadd.f32 %v1732_v58, %v1457_v40 }
 0x55f   :  { %v1753_v36 = vmul.f32 0.5, %v1738_v44  ;;  %v1742_v49 = vadd.f32 %v1691_v62, %v1456_v57  ;;  %v1744_v46 = vadd.f32 %v1734_v63, %v1458_v55  ;;  %v1763_v44 = vmul.f32 0.5, %v1740_v38 }
 0x560   :  { %5524 = vtanh.f32 %v1745_v59  ;;  %v1746_v39 = vmul.f32 0.5, %v1741_v60 }
 0x561   :  { %5526 = vtanh.f32 %v1753_v36  ;;  %v1754_v41 = vmul.f32 0.5, %v1742_v49  ;;  %v1764_v56 = vmul.f32 0.5, %v1744_v46 }
 0x562   :  { %5528 = vtanh.f32 %v1746_v39 }
 0x563   :  { %5530 = vtanh.f32 %v1739_v37 }
 0x564   :  { %5532 = vtanh.f32 %v1754_v41 }
 0x565   :  { %5534 = vtanh.f32 %v1743_v43 }
 0x566   :  { %5536 = vtanh.f32 %v1763_v44 }
 0x567   :  { %5538 = vtanh.f32 %v1764_v56 }
 0x56a   :  { %v5525_v51 = vpop.eup %5524 }
 0x56b   :  { %v5527_v1 = vpop.eup %5526  ;;  %v1749_v52 = vmul.f32 0.5, %v5525_v51 }
 0x56c   :  { %v1757_v57 = vmul.f32 0.5, %v5527_v1  ;;  %v5529_v48 = vpop.eup %5528 }
 0x56d   :  { %v1751_v53 = vadd.f32 0.5, %v1749_v52  ;;  %v5531_v59 = vpop.eup %5530  ;;  %v1750_v62 = vmul.f32 0.5, %v5529_v48 }
 0x56e   :  { %v1759_v60 = vadd.f32 0.5, %v1757_v57  ;;  %v5533_v36 = vpop.eup %5532 }
 0x56f   :  { %v1773_v58 = vmul.f32 %v5531_v59, %v1751_v53  ;;  %v1752_v37 = vadd.f32 0.5, %v1750_v62  ;;  %v1758_v42 = vmul.f32 0.5, %v5533_v36  ;;  %v5535_v63 = vpop.eup %5534  ;;  %v1786_v53 = vld [vmem:[#allocation4 + $0x148] sm:$0xff]  ;;  %v1789_v62 = vld [vmem:[#allocation4 + $0x160] sm:$0xff] }
 0x570   :  { %v1771_v49 = vmul.f32 %v1759_v60, %v6442_v50  ;;  %v5537_v55 = vpop.eup %5536 }
 0x571   :  { %v1760_v40 = vadd.f32 0.5, %v1758_v42  ;;  %v1774_v41 = vmul.f32 %v5535_v63, %v1752_v37  ;;  %v5539_v38 = vpop.eup %5538  ;;  %v1767_v46 = vmul.f32 0.5, %v5537_v55  ;;  %v1790_v37 = vld [vmem:[#allocation4 + $0x168] sm:$0xff]  ;;  %v1787_v42 = vld [vmem:[#allocation4 + $0x150] sm:$0xff] }
 0x572   :  { %v6488_v39 = vadd.f32 %v1773_v58, %v1771_v49  ;;  %v1768_v50 = vmul.f32 0.5, %v5539_v38 }
 0x573   :  { %v1772_v43 = vmul.f32 %v1760_v40, %v6446_v61  ;;  %v1769_v1 = vadd.f32 0.5, %v1767_v46  ;;  %v1785_v61 = vld [vmem:[#allocation4 + $0x140] sm:$0xff] }
 0x574   :  { %5540 = vtanh.f32 %v6488_v39  ;;  %v1770_v52 = vadd.f32 0.5, %v1768_v50 }
 0x575   :  { %v6492_v45 = vadd.f32 %v1774_v41, %v1772_v43 }
 0x577   :  { %5542 = vtanh.f32 %v6492_v45 }
 0x57e   :  { %v5541_v51 = vpop.eup %5540 }
 0x57f   :  { %v1779_v57 = vmul.f32 %v5541_v51, %v1769_v1  ;;  %v1791_v1 = vld [vmem:[#allocation4 + $0x170] sm:$0xff] }
 0x581   :  { %v5543_v44 = vpop.eup %5542 }
 0x582   :  { %v1780_v56 = vmul.f32 %v5543_v44, %v1770_v52 }
 0x584   :  { %v6495_v48 = vpack.c.bf16 %v1780_v56, %v1779_v57  ;;  %v1788_v57 = vld [vmem:[#allocation4 + $0x158] sm:$0xff] }
 0x585   :  { %v1792_v56 = vld [vmem:[#allocation4 + $0x178] sm:$0xff] }
 0x586   :  { %2018 = vmatmul.mubr.bf16.vlgmr.msra.gmra.mrb[20].mxu0 %v6495_v48  ;;  %2061 = vmatmul.mubr.bf16.vlgmr.msra.gmra.mrb[20].mxu1 %v6495_v48 }
 0x587   :  { %2320 = vmatpush1.bf16.msra.mxu0 %v6347_v5  ;;  %2363 = vmatpush1.bf16.msra.mxu1 %v6349_v6 }
 0x588   :  { %2321 = vmatprep.subr.bf16.mxu0 %v6355_v7  ;;  %2364 = vmatprep.subr.bf16.mxu1 %v6357_v8 }
 0x589   :  { %2351 = vmatprep.mubr.bf16.mxu0 %v5974_v0  ;;  %2394 = vmatprep.mubr.bf16.mxu1 %v5974_v0 }
 0x58b   :  { %2322 = vmatpush1.bf16.msra.mxu0 %v6359_v9  ;;  %2365 = vmatpush1.bf16.msra.mxu1 %v6361_v10 }
 0x58c   :  { %2323 = vmatprep.subr.bf16.mxu0 %v6367_v11  ;;  %2366 = vmatprep.subr.bf16.mxu1 %v6369_v12 }
 0x58f   :  { %2324 = vmatpush1.bf16.msra.mxu0 %v6371_v13  ;;  %2367 = vmatpush1.bf16.msra.mxu1 %v6373_v14 }
 0x590   :  { %2325 = vmatprep.subr.bf16.mxu0 %v6379_v15  ;;  %2368 = vmatprep.subr.bf16.mxu1 %v6381_v16 }
 0x593   :  { %2326 = vmatpush1.bf16.msra.mxu0 %v6383_v17  ;;  %2369 = vmatpush1.bf16.msra.mxu1 %v6385_v18 }
 0x594   :  { %2327 = vmatprep.subr.bf16.mxu0 %v6391_v19  ;;  %2370 = vmatprep.subr.bf16.mxu1 %v6393_v20 }
 0x597   :  { %2328 = vmatpush1.bf16.msra.mxu0 %v6395_v21  ;;  %2371 = vmatpush1.bf16.msra.mxu1 %v6397_v22 }
 0x598   :  { %2329 = vmatprep.subr.bf16.mxu0 %v6403_v23  ;;  %2372 = vmatprep.subr.bf16.mxu1 %v6405_v24 }
 0x59b   :  { %2330 = vmatpush1.bf16.msra.mxu0 %v6407_v25  ;;  %2373 = vmatpush1.bf16.msra.mxu1 %v6409_v26 }
 0x59c   :  { %2331 = vmatprep.subr.bf16.mxu0 %v6415_v27  ;;  %2374 = vmatprep.subr.bf16.mxu1 %v6417_v28 }
 0x59f   :  { %2332 = vmatpush1.bf16.msra.mxu0 %v6419_v29  ;;  %2375 = vmatpush1.bf16.msra.mxu1 %v6421_v30 }
 0x5a0   :  { %2333 = vmatprep.subr.bf16.mxu0 %v6429_v34  ;;  %2376 = vmatprep.subr.bf16.mxu1 %v6433_v35 }
 0x5a3   :  { %2334 = vmatpush1.bf16.msra.mxu0 %v6427_v33  ;;  %2377 = vmatpush1.bf16.msra.mxu1 %v6431_v54 }
 0x5a4   :  { %2653 = vmatprep.subr.bf16.mxu0 %v6343_v4  ;;  %2696 = vmatprep.subr.bf16.mxu1 %v6345_v3 }
 0x659   :  { %v2019_v59 = vpop.f32.mrb[20].mxu0  ;;  %v2062_v60 = vpop.f32.mrb[20].mxu1 }
 0x65a   :  { %v2071_v36 = vadd.f32 %v2019_v59, %v1785_v61  ;;  %v2021_v58 = vpop.f32.mrb[21].mxu0  ;;  %v2064_v49 = vpop.f32.mrb[21].mxu1  ;;  %v2073_v3 = vadd.f32 %v2062_v60, %v1787_v42 }
 0x65b   :  { %v2072_v63 = vadd.f32 %v2021_v58, %v1786_v53  ;;  %v2023_v40 = vpop.f32.mrb[22].mxu0  ;;  %v2066_v41 = vpop.f32.mrb[22].mxu1  ;;  %v2074_v61 = vadd.f32 %v2064_v49, %v1788_v57 }
 0x65c   :  { %v2079_v43 = vmul.f32 0.5, %v2071_v36  ;;  %v2075_v55 = vadd.f32 %v2023_v40, %v1789_v62  ;;  %v2025_v38 = vpop.f32.mrb[23].mxu0  ;;  %v2068_v46 = vpop.f32.mrb[23].mxu1  ;;  %v2077_v44 = vadd.f32 %v2066_v41, %v1791_v1 }
 0x65d   :  { %v2087_v4 = vmul.f32 0.5, %v2072_v63  ;;  %v2076_v50 = vadd.f32 %v2025_v38, %v1790_v37  ;;  %v2078_v53 = vadd.f32 %v2068_v46, %v1792_v56  ;;  %v2097_v58 = vmul.f32 0.5, %v2074_v61 }
 0x65e   :  { %5544 = vtanh.f32 %v2079_v43  ;;  %v2080_v51 = vmul.f32 0.5, %v2075_v55 }
 0x65f   :  { %5546 = vtanh.f32 %v2087_v4  ;;  %v2088_v52 = vmul.f32 0.5, %v2076_v50  ;;  %v2098_v63 = vmul.f32 0.5, %v2078_v53 }
 0x660   :  { %5548 = vtanh.f32 %v2080_v51 }
 0x661   :  { %5550 = vtanh.f32 %v2073_v3 }
 0x662   :  { %5552 = vtanh.f32 %v2088_v52 }
 0x663   :  { %5554 = vtanh.f32 %v2077_v44 }
 0x664   :  { %5556 = vtanh.f32 %v2097_v58 }
 0x665   :  { %5558 = vtanh.f32 %v2098_v63 }
 0x668   :  { %v5545_v59 = vpop.eup %5544 }
 0x669   :  { %v5547_v62 = vpop.eup %5546  ;;  %v2083_v36 = vmul.f32 0.5, %v5545_v59 }
 0x66a   :  { %v2091_v37 = vmul.f32 0.5, %v5547_v62  ;;  %v5549_v60 = vpop.eup %5548 }
 0x66b   :  { %v2085_v42 = vadd.f32 0.5, %v2083_v36  ;;  %v5551_v40 = vpop.eup %5550  ;;  %v2084_v55 = vmul.f32 0.5, %v5549_v60 }
 0x66c   :  { %v2093_v43 = vadd.f32 0.5, %v2091_v37  ;;  %v5553_v38 = vpop.eup %5552 }
 0x66d   :  { %v2107_v41 = vmul.f32 %v5551_v40, %v2085_v42  ;;  %v2086_v50 = vadd.f32 0.5, %v2084_v55  ;;  %v2092_v49 = vmul.f32 0.5, %v5553_v38  ;;  %v5555_v46 = vpop.eup %5554 }
 0x66e   :  { %v2105_v4 = vmul.f32 %v2093_v43, %v6488_v39  ;;  %v5557_v57 = vpop.eup %5556 }
 0x66f   :  { %v2094_v51 = vadd.f32 0.5, %v2092_v49  ;;  %v2108_v1 = vmul.f32 %v5555_v46, %v2086_v50  ;;  %v5559_v56 = vpop.eup %5558  ;;  %v2101_v61 = vmul.f32 0.5, %v5557_v57 }
 0x670   :  { %v6534_v3 = vadd.f32 %v2107_v41, %v2105_v4  ;;  %v2102_v39 = vmul.f32 0.5, %v5559_v56 }
 0x671   :  { %v2106_v52 = vmul.f32 %v2094_v51, %v6492_v45  ;;  %v2103_v59 = vadd.f32 0.5, %v2101_v61 }
 0x672   :  { %5560 = vtanh.f32 %v6534_v3  ;;  %v2104_v62 = vadd.f32 0.5, %v2102_v39 }
 0x673   :  { %v6538_v44 = vadd.f32 %v2108_v1, %v2106_v52 }
 0x675   :  { %5562 = vtanh.f32 %v6538_v44 }
 0x67c   :  { %v5561_v53 = vpop.eup %5560 }
 0x67d   :  { %v2113_v58 = vmul.f32 %v5561_v53, %v2103_v59 }
 0x67f   :  { %v5563_v36 = vpop.eup %5562 }
 0x680   :  { %v2114_v37 = vmul.f32 %v5563_v36, %v2104_v62 }
 0x682   :  { %v6541_v63 = vpack.c.bf16 %v2114_v37, %v2113_v58 }
 0x684   :  { %2352 = vmatmul.mubr.bf16.vlgmr.msra.gmra.mrb[24].mxu0 %v6541_v63  ;;  %2395 = vmatmul.mubr.bf16.vlgmr.msra.gmra.mrb[24].mxu1 %v6541_v63 }
 0x685   :  { %2654 = vmatpush1.bf16.msra.mxu0 %v6347_v5  ;;  %2697 = vmatpush1.bf16.msra.mxu1 %v6349_v6  ;;  %v5342_v5 = vld [vmem:[#allocation12 + $0x4] ss:$16 sps:$4 sm:$0xff]   ;;  %v5345_v6 = vld [vmem:[#allocation12 + $0xc] ss:$16 sps:$4 sm:$0xff]  }
 0x686   :  { %2655 = vmatprep.subr.bf16.mxu0 %v6355_v7  ;;  %2698 = vmatprep.subr.bf16.mxu1 %v6357_v8  ;;  %v2119_v7 = vld [vmem:[#allocation4 + $0x180] sm:$0xff]  ;;  %v2120_v8 = vld [vmem:[#allocation4 + $0x188] sm:$0xff] }
 0x687   :  { %2685 = vmatprep.mubr.bf16.mxu0 %v5974_v0  ;;  %2728 = vmatprep.mubr.bf16.mxu1 %v5974_v0 }
 0x689   :  { %2656 = vmatpush1.bf16.msra.mxu0 %v6359_v9  ;;  %2699 = vmatpush1.bf16.msra.mxu1 %v6361_v10 }
 0x68a   :  { %2657 = vmatprep.subr.bf16.mxu0 %v6367_v11  ;;  %2700 = vmatprep.subr.bf16.mxu1 %v6369_v12  ;;  %v2123_v11 = vld [vmem:[#allocation4 + $0x1a0] sm:$0xff] }
 0x68d   :  { %2658 = vmatpush1.bf16.msra.mxu0 %v6371_v13  ;;  %2701 = vmatpush1.bf16.msra.mxu1 %v6373_v14 }
 0x68e   :  { %2659 = vmatprep.subr.bf16.mxu0 %v6379_v15  ;;  %2702 = vmatprep.subr.bf16.mxu1 %v6381_v16  ;;  %v2124_v15 = vld [vmem:[#allocation4 + $0x1a8] sm:$0xff]  ;;  %v2121_v16 = vld [vmem:[#allocation4 + $0x190] sm:$0xff] }
 0x691   :  { %2660 = vmatpush1.bf16.msra.mxu0 %v6383_v17  ;;  %2703 = vmatpush1.bf16.msra.mxu1 %v6385_v18 }
 0x692   :  { %2661 = vmatprep.subr.bf16.mxu0 %v6391_v19  ;;  %2704 = vmatprep.subr.bf16.mxu1 %v6393_v20 }
 0x695   :  { %2662 = vmatpush1.bf16.msra.mxu0 %v6395_v21  ;;  %2705 = vmatpush1.bf16.msra.mxu1 %v6397_v22 }
 0x696   :  { %2663 = vmatprep.subr.bf16.mxu0 %v6403_v23  ;;  %2706 = vmatprep.subr.bf16.mxu1 %v6405_v24 }
 0x699   :  { %2664 = vmatpush1.bf16.msra.mxu0 %v6407_v25  ;;  %2707 = vmatpush1.bf16.msra.mxu1 %v6409_v26 }
 0x69a   :  { %2665 = vmatprep.subr.bf16.mxu0 %v6415_v27  ;;  %2708 = vmatprep.subr.bf16.mxu1 %v6417_v28  ;;  %v2125_v28 = vld [vmem:[#allocation4 + $0x1b0] sm:$0xff] }
 0x69d   :  { %2666 = vmatpush1.bf16.msra.mxu0 %v6419_v29  ;;  %2709 = vmatpush1.bf16.msra.mxu1 %v6421_v30 }
 0x69e   :  { %2667 = vmatprep.subr.bf16.mxu0 %v6429_v34  ;;  %2710 = vmatprep.subr.bf16.mxu1 %v6433_v35  ;;  %v2126_v34 = vld [vmem:[#allocation4 + $0x1b8] sm:$0xff] }
 0x6a1   :  { %2668 = vmatpush1.bf16.msra.mxu0 %v6427_v33  ;;  %2711 = vmatpush1.bf16.msra.mxu1 %v6431_v54  ;;  %v2122_v33 = vld [vmem:[#allocation4 + $0x198] sm:$0xff] }
 0x6a2   :  { %3008 = vmatprep.subr.bf16.mxu0 %v5342_v5  ;;  %3121 = vmatprep.subr.bf16.mxu1 %v5345_v6 }
 0x757   :  { %v2353_v9 = vpop.f32.mrb[24].mxu0  ;;  %v2396_v10 = vpop.f32.mrb[24].mxu1 }
 0x758   :  { %v2405_v12 = vadd.f32 %v2353_v9, %v2119_v7  ;;  %v2355_v13 = vpop.f32.mrb[25].mxu0  ;;  %v2398_v14 = vpop.f32.mrb[25].mxu1  ;;  %v2407_v26 = vadd.f32 %v2396_v10, %v2121_v16  ;;  %v5349_v16 = vld [vmem:[#allocation12 + $0x28] ss:$16 sps:$4 sm:$0xff]  }
 0x759   :  { %v2406_v17 = vadd.f32 %v2355_v13, %v2120_v8  ;;  %v2357_v18 = vpop.f32.mrb[26].mxu0  ;;  %v2400_v19 = vpop.f32.mrb[26].mxu1  ;;  %v2408_v54 = vadd.f32 %v2398_v14, %v2122_v33  ;;  %v5351_v14 = vld [vmem:[#allocation12 + $0x2c] ss:$16 sps:$4 sm:$0xff]   ;;  %v5370_v33 = vld [vmem:[#allocation12 + $0xa0] ss:$16 sps:$4 sm:$0xff]  }
 0x75a   :  { %v2413_v20 = vmul.f32 0.5, %v2405_v12  ;;  %v2409_v21 = vadd.f32 %v2357_v18, %v2123_v11  ;;  %v2359_v22 = vpop.f32.mrb[27].mxu0  ;;  %v2402_v23 = vpop.f32.mrb[27].mxu1  ;;  %v2411_v30 = vadd.f32 %v2400_v19, %v2125_v28  ;;  %v5340_v11 = vld [vmem:[#allocation12] ss:$16 sps:$4 sm:$0xff]  }
 0x75b   :  { %v2421_v24 = vmul.f32 0.5, %v2406_v17  ;;  %v2410_v25 = vadd.f32 %v2359_v22, %v2124_v15  ;;  %v2412_v35 = vadd.f32 %v2402_v23, %v2126_v34  ;;  %v2431_v40 = vmul.f32 0.5, %v2408_v54  ;;  %v5343_v12 = vld [vmem:[#allocation12 + $0x8] ss:$16 sps:$4 sm:$0xff]   ;;  %v5346_v15 = vld [vmem:[#allocation12 + $0x20] ss:$16 sps:$4 sm:$0xff]  }
 0x75c   :  { %5564 = vtanh.f32 %v2413_v20  ;;  %v2414_v27 = vmul.f32 0.5, %v2409_v21  ;;  %v5354_v17 = vld [vmem:[#allocation12 + $0x44] ss:$16 sps:$4 sm:$0xff]   ;;  %v5357_v18 = vld [vmem:[#allocation12 + $0x4c] ss:$16 sps:$4 sm:$0xff]  }
 0x75d   :  { %5566 = vtanh.f32 %v2421_v24  ;;  %v2422_v29 = vmul.f32 0.5, %v2410_v25  ;;  %v2432_v55 = vmul.f32 0.5, %v2412_v35  ;;  %v5352_v19 = vld [vmem:[#allocation12 + $0x40] ss:$16 sps:$4 sm:$0xff]   ;;  %v5355_v20 = vld [vmem:[#allocation12 + $0x48] ss:$16 sps:$4 sm:$0xff]  }
 0x75e   :  { %5568 = vtanh.f32 %v2414_v27  ;;  %v5360_v21 = vld [vmem:[#allocation12 + $0x64] ss:$16 sps:$4 sm:$0xff]   ;;  %v5363_v22 = vld [vmem:[#allocation12 + $0x6c] ss:$16 sps:$4 sm:$0xff]   ;;  %v5358_v23 = vld [vmem:[#allocation12 + $0x60] ss:$16 sps:$4 sm:$0xff]  }
 0x75f   :  { %5570 = vtanh.f32 %v2407_v26  ;;  %v5361_v24 = vld [vmem:[#allocation12 + $0x68] ss:$16 sps:$4 sm:$0xff]   ;;  %v5366_v25 = vld [vmem:[#allocation12 + $0x84] ss:$16 sps:$4 sm:$0xff]   ;;  %v5369_v26 = vld [vmem:[#allocation12 + $0x8c] ss:$16 sps:$4 sm:$0xff]  }
 0x760   :  { %5572 = vtanh.f32 %v2422_v29  ;;  %v5364_v27 = vld [vmem:[#allocation12 + $0x80] ss:$16 sps:$4 sm:$0xff]   ;;  %v5367_v28 = vld [vmem:[#allocation12 + $0x88] ss:$16 sps:$4 sm:$0xff]   ;;  %v5372_v29 = vld [vmem:[#allocation12 + $0xa4] ss:$16 sps:$4 sm:$0xff]  }
 0x761   :  { %5574 = vtanh.f32 %v2411_v30  ;;  %v5375_v30 = vld [vmem:[#allocation12 + $0xac] ss:$16 sps:$4 sm:$0xff]   ;;  %v5373_v34 = vld [vmem:[#allocation12 + $0xa8] ss:$16 sps:$4 sm:$0xff]   ;;  %v5378_v54 = vld [vmem:[#allocation12 + $0xc4] ss:$16 sps:$4 sm:$0xff]  }
 0x762   :  { %5576 = vtanh.f32 %v2431_v40  ;;  %v5381_v35 = vld [vmem:[#allocation12 + $0xcc] ss:$16 sps:$4 sm:$0xff]  }
 0x763   :  { %5578 = vtanh.f32 %v2432_v55  ;;  %v5387_v40 = vld [vmem:[#allocation12 + $0xec] ss:$16 sps:$4 sm:$0xff]   ;;  %v5385_v55 = vld [vmem:[#allocation12 + $0xe8] ss:$16 sps:$4 sm:$0xff]  }
 0x766   :  { %v5565_v45 = vpop.eup %5564 }
 0x767   :  { %v5567_v60 = vpop.eup %5566  ;;  %v2417_v42 = vmul.f32 0.5, %v5565_v45  ;;  %v5376_v45 = vld [vmem:[#allocation12 + $0xc0] ss:$16 sps:$4 sm:$0xff]  }
 0x768   :  { %v2425_v43 = vmul.f32 0.5, %v5567_v60  ;;  %v5569_v38 = vpop.eup %5568  ;;  %v5379_v60 = vld [vmem:[#allocation12 + $0xc8] ss:$16 sps:$4 sm:$0xff]  }
 0x769   :  { %v2419_v41 = vadd.f32 0.5, %v2417_v42  ;;  %v5571_v4 = vpop.eup %5570  ;;  %v2418_v49 = vmul.f32 0.5, %v5569_v38  ;;  %v5384_v42 = vld [vmem:[#allocation12 + $0xe4] ss:$16 sps:$4 sm:$0xff]  }
 0x76a   :  { %v2427_v50 = vadd.f32 0.5, %v2425_v43  ;;  %v5573_v46 = vpop.eup %5572  ;;  %v5382_v43 = vld [vmem:[#allocation12 + $0xe0] ss:$16 sps:$4 sm:$0xff]   ;;  %v6591_v38 = vld [vmem:[#allocation10 + $0x4] ss:$16 sps:$4 sm:$0xff]  }
 0x76b   :  { %v2441_v51 = vmul.f32 %v5571_v4, %v2419_v41  ;;  %v2420_v52 = vadd.f32 0.5, %v2418_v49  ;;  %v2426_v57 = vmul.f32 0.5, %v5573_v46  ;;  %v5575_v56 = vpop.eup %5574  ;;  %v6593_v41 = vld [vmem:[#allocation10 + $0xc] ss:$16 sps:$4 sm:$0xff]   ;;  %v6596_v4 = vld [vmem:[#allocation10] ss:$16 sps:$4 sm:$0xff]  }
 0x76c   :  { %v2439_v1 = vmul.f32 %v2427_v50, %v6534_v3  ;;  %v5577_v36 = vpop.eup %5576  ;;  %v6599_v50 = vld [vmem:[#allocation10 + $0x8] ss:$16 sps:$4 sm:$0xff]   ;;  %v6601_v49 = vld [vmem:[#allocation10 + $0x24] ss:$16 sps:$4 sm:$0xff]   ;;  %v6609_v46 = vld [vmem:[#allocation10 + $0x20] ss:$16 sps:$4 sm:$0xff]  }
 0x76d   :  { %v2428_v39 = vadd.f32 0.5, %v2426_v57  ;;  %v2442_v53 = vmul.f32 %v5575_v56, %v2420_v52  ;;  %v5579_v58 = vpop.eup %5578  ;;  %v2435_v37 = vmul.f32 0.5, %v5577_v36  ;;  %v6658_v52 = vld [vmem:[#allocation10 + $0x6c] ss:$16 sps:$4 sm:$0xff]   ;;  %v6660_v57 = vld [vmem:[#allocation10 + $0x84] ss:$16 sps:$4 sm:$0xff]  }
 0x76e   :  { %v6578_v61 = vadd.f32 %v2441_v51, %v2439_v1  ;;  %v2436_v3 = vmul.f32 0.5, %v5579_v58  ;;  %v6653_v51 = vld [vmem:[#allocation10 + $0x48] ss:$16 sps:$4 sm:$0xff]   ;;  %v6655_v1 = vld [vmem:[#allocation10 + $0x60] ss:$16 sps:$4 sm:$0xff]  }
 0x76f   :  { %v2440_v59 = vmul.f32 %v2428_v39, %v6538_v44  ;;  %v2437_v6 = vadd.f32 0.5, %v2435_v37  ;;  %v5348_v44 = vld [vmem:[#allocation12 + $0x24] ss:$16 sps:$4 sm:$0xff]   ;;  %v6664_v56 = vld [vmem:[#allocation10 + $0x68] ss:$16 sps:$4 sm:$0xff]  }
 0x770   :  { %5580 = vtanh.f32 %v6578_v61  ;;  %v2438_v7 = vadd.f32 0.5, %v2436_v3  ;;  %v6668_v39 = vld [vmem:[#allocation10 + $0x80] ss:$16 sps:$4 sm:$0xff]   ;;  %v6676_v36 = vld [vmem:[#allocation10 + $0x88] ss:$16 sps:$4 sm:$0xff]  }
 0x771   :  { %v6582_v62 = vadd.f32 %v2442_v53, %v2440_v59  ;;  %v6670_v53 = vld [vmem:[#allocation10 + $0x8c] ss:$16 sps:$4 sm:$0xff]   ;;  %v6673_v59 = vld [vmem:[#allocation10 + $0xa4] ss:$16 sps:$4 sm:$0xff]   ;;  %v6680_v58 = vld [vmem:[#allocation10 + $0xa0] ss:$16 sps:$4 sm:$0xff]  }
 0x772   :  { %v6682_v37 = vld [vmem:[#allocation10 + $0xac] ss:$16 sps:$4 sm:$0xff]   ;;  %v6685_v3 = vld [vmem:[#allocation10 + $0xc4] ss:$16 sps:$4 sm:$0xff]  }
 0x773   :  { %5582 = vtanh.f32 %v6582_v62 }
 0x77a   :  { %v5581_v5 = vpop.eup %5580 }
 0x77b   :  { %v2447_v9 = vmul.f32 %v5581_v5, %v2437_v6  ;;  %v6688_v5 = vld [vmem:[#allocation10 + $0xa8] ss:$16 sps:$4 sm:$0xff]   ;;  %v6692_v6 = vld [vmem:[#allocation10 + $0xc0] ss:$16 sps:$4 sm:$0xff]  }
 0x77d   :  { %v5583_v8 = vpop.eup %5582 }
 0x77e   :  { %v2448_v10 = vmul.f32 %v5583_v8, %v2438_v7  ;;  %v6694_v7 = vld [vmem:[#allocation10 + $0xcc] ss:$16 sps:$4 sm:$0xff]   ;;  %v6697_v8 = vld [vmem:[#allocation10 + $0xe4] ss:$16 sps:$4 sm:$0xff]  }
 0x780   :  { %v6585_v13 = vpack.c.bf16 %v2448_v10, %v2447_v9  ;;  %v6700_v9 = vld [vmem:[#allocation10 + $0xc8] ss:$16 sps:$4 sm:$0xff]   ;;  %v6704_v10 = vld [vmem:[#allocation10 + $0xe0] ss:$16 sps:$4 sm:$0xff]  }
 0x782   :  { %2686 = vmatmul.mubr.bf16.vlgmr.msra.gmra.mrb[28].mxu0 %v6585_v13  ;;  %2729 = vmatmul.mubr.bf16.vlgmr.msra.gmra.mrb[28].mxu1 %v6585_v13 }
 0x783   :  { %3009 = vmatpush1.bf16.msra.mxu0 %v5340_v11  ;;  %3122 = vmatpush1.bf16.msra.mxu1 %v5343_v12  ;;  %v6706_v11 = vld [vmem:[#allocation10 + $0xec] ss:$16 sps:$4 sm:$0xff]   ;;  %v6710_v12 = vld [vmem:[#allocation10 + $0xe8] ss:$16 sps:$4 sm:$0xff]  }
 0x784   :  { %3010 = vmatprep.subr.bf16.mxu0 %v5348_v44  ;;  %3123 = vmatprep.subr.bf16.mxu1 %v5351_v14  ;;  %v2454_v44 = vld [vmem:[#allocation4 + $0x1c8] sm:$0xff] }
 0x785   :  { %3040 = vmatprep.mubr.bf16.mxu0 %v5974_v0  ;;  %3153 = vmatprep.mubr.bf16.mxu1 %v5974_v0 }
 0x787   :  { %3011 = vmatpush1.bf16.msra.mxu0 %v5346_v15  ;;  %3124 = vmatpush1.bf16.msra.mxu1 %v5349_v16  ;;  %v2457_v16 = vld [vmem:[#allocation4 + $0x1e0] sm:$0xff] }
 0x788   :  { %3012 = vmatprep.subr.bf16.mxu0 %v5354_v17  ;;  %3125 = vmatprep.subr.bf16.mxu1 %v5357_v18 }
 0x78b   :  { %3013 = vmatpush1.bf16.msra.mxu0 %v5352_v19  ;;  %3126 = vmatpush1.bf16.msra.mxu1 %v5355_v20  ;;  %v2458_v20 = vld [vmem:[#allocation4 + $0x1e8] sm:$0xff] }
 0x78c   :  { %3014 = vmatprep.subr.bf16.mxu0 %v5360_v21  ;;  %3127 = vmatprep.subr.bf16.mxu1 %v5363_v22  ;;  %v2455_v21 = vld [vmem:[#allocation4 + $0x1d0] sm:$0xff] }
 0x78f   :  { %3015 = vmatpush1.bf16.msra.mxu0 %v5358_v23  ;;  %3128 = vmatpush1.bf16.msra.mxu1 %v5361_v24 }
 0x790   :  { %3016 = vmatprep.subr.bf16.mxu0 %v5366_v25  ;;  %3129 = vmatprep.subr.bf16.mxu1 %v5369_v26 }
 0x793   :  { %3017 = vmatpush1.bf16.msra.mxu0 %v5364_v27  ;;  %3130 = vmatpush1.bf16.msra.mxu1 %v5367_v28 }
 0x794   :  { %3018 = vmatprep.subr.bf16.mxu0 %v5372_v29  ;;  %3131 = vmatprep.subr.bf16.mxu1 %v5375_v30 }
 0x797   :  { %3019 = vmatpush1.bf16.msra.mxu0 %v5370_v33  ;;  %3132 = vmatpush1.bf16.msra.mxu1 %v5373_v34 }
 0x798   :  { %3020 = vmatprep.subr.bf16.mxu0 %v5378_v54  ;;  %3133 = vmatprep.subr.bf16.mxu1 %v5381_v35  ;;  %v2459_v54 = vld [vmem:[#allocation4 + $0x1f0] sm:$0xff]  ;;  %v2456_v35 = vld [vmem:[#allocation4 + $0x1d8] sm:$0xff] }
 0x79b   :  { %3021 = vmatpush1.bf16.msra.mxu0 %v5376_v45  ;;  %3134 = vmatpush1.bf16.msra.mxu1 %v5379_v60 }
 0x79c   :  { %3022 = vmatprep.subr.bf16.mxu0 %v5384_v42  ;;  %3135 = vmatprep.subr.bf16.mxu1 %v5387_v40  ;;  %v2460_v40 = vld [vmem:[#allocation4 + $0x1f8] sm:$0xff] }
 0x79f   :  { %3023 = vmatpush1.bf16.msra.mxu0 %v5382_v43  ;;  %3136 = vmatpush1.bf16.msra.mxu1 %v5385_v55 }
 0x7a0   :  { %3502 = vmatprep.subr.bf16.mxu0 %v6591_v38  ;;  %3545 = vmatprep.subr.bf16.mxu1 %v6593_v41 }
 0x7a2   :  { %3041 = vmatmul.mubr.bf16.vlgmr.msra.gmra.mrb[32].mxu0 %v6247_v32  ;;  %3154 = vmatmul.mubr.bf16.vlgmr.msra.gmra.mrb[32].mxu1 %v6247_v32  ;;  %v6637_v32 = vld [vmem:[#allocation10 + $0x2c] ss:$16 sps:$4 sm:$0xff]  }
 0x7a3   :  { %3050 = vmatprep.mubr.bf16.mxu0 %v5974_v0  ;;  %3163 = vmatprep.mubr.bf16.mxu1 %v5974_v0 }
 0x7a4   :  { %3503 = vmatpush1.bf16.msra.mxu0 %v6596_v4  ;;  %3546 = vmatpush1.bf16.msra.mxu1 %v6599_v50 }
 0x7a5   :  { %3504 = vmatprep.subr.bf16.mxu0 %v6601_v49  ;;  %3547 = vmatprep.subr.bf16.mxu1 %v6637_v32 }
 0x7a8   :  { %3505 = vmatpush1.bf16.msra.mxu0 %v6609_v46 }
 0x7aa   :  { %3051 = vmatmul.mubr.bf16.gmra.mrb[36].mxu0 %v6293_v31  ;;  %3164 = vmatmul.mubr.bf16.gmra.mrb[36].mxu1 %v6293_v31  ;;  %v6640_v31 = vld [vmem:[#allocation10 + $0x28] ss:$16 sps:$4 sm:$0xff]  }
 0x7ab   :  { %3060 = vmatprep.mubr.bf16.mxu0 %v5974_v0  ;;  %3173 = vmatprep.mubr.bf16.mxu1 %v5974_v0 }
 0x7ac   :  { %3548 = vmatpush1.bf16.msra.mxu1 %v6640_v31 }
 0x7b2   :  { %3061 = vmatmul.mubr.bf16.gmra.mrb[40].mxu0 %v6337_v2  ;;  %3174 = vmatmul.mubr.bf16.gmra.mrb[40].mxu1 %v6337_v2  ;;  %v6642_v2 = vld [vmem:[#allocation10 + $0x44] ss:$16 sps:$4 sm:$0xff]  }
 0x7b3   :  { %3070 = vmatprep.mubr.bf16.mxu0 %v5974_v0  ;;  %3183 = vmatprep.mubr.bf16.mxu1 %v5974_v0 }
 0x7b4   :  { %3506 = vmatprep.subr.bf16.mxu0 %v6642_v2 }
 0x7ba   :  { %3071 = vmatmul.mubr.bf16.gmra.mrb[44].mxu0 %v6449_v47  ;;  %3184 = vmatmul.mubr.bf16.gmra.mrb[44].mxu1 %v6449_v47  ;;  %v6645_v47 = vld [vmem:[#allocation10 + $0x40] ss:$16 sps:$4 sm:$0xff]  }
 0x7bb   :  { %3080 = vmatprep.mubr.bf16.mxu0 %v5974_v0  ;;  %3193 = vmatprep.mubr.bf16.mxu1 %v5974_v0 }
 0x7bc   :  { %3507 = vmatpush1.bf16.msra.mxu0 %v6645_v47 }
 0x7c2   :  { %3081 = vmatmul.mubr.bf16.gmra.mrb[48].mxu0 %v6495_v48  ;;  %3194 = vmatmul.mubr.bf16.gmra.mrb[48].mxu1 %v6495_v48  ;;  %v6649_v48 = vld [vmem:[#allocation10 + $0x4c] ss:$16 sps:$4 sm:$0xff]  }
 0x7c3   :  { %3090 = vmatprep.mubr.bf16.mxu0 %v5974_v0  ;;  %3203 = vmatprep.mubr.bf16.mxu1 %v5974_v0 }
 0x7c4   :  { %3549 = vmatprep.subr.bf16.mxu1 %v6649_v48 }
 0x7c5   :  { %3550 = vmatpush1.bf16.msra.mxu1 %v6653_v51 }
 0x7c6   :  { %3551 = vmatprep.subr.bf16.mxu1 %v6658_v52 }
 0x7c9   :  { %3552 = vmatpush1.bf16.msra.mxu1 %v6664_v56 }
 0x7ca   :  { %3091 = vmatmul.mubr.bf16.gmra.mrb[52].mxu0 %v6541_v63  ;;  %3204 = vmatmul.mubr.bf16.gmra.mrb[52].mxu1 %v6541_v63  ;;  %v6651_v63 = vld [vmem:[#allocation10 + $0x64] ss:$16 sps:$4 sm:$0xff]  }
 0x7cb   :  { %3100 = vmatprep.mubr.bf16.mxu0 %v5974_v0  ;;  %3213 = vmatprep.mubr.bf16.mxu1 %v5974_v0 }
 0x7cc   :  { %3508 = vmatprep.subr.bf16.mxu0 %v6651_v63  ;;  %3553 = vmatprep.subr.bf16.mxu1 %v6670_v53 }
 0x7cd   :  { %3509 = vmatpush1.bf16.msra.mxu0 %v6655_v1  ;;  %3554 = vmatpush1.bf16.msra.mxu1 %v6676_v36 }
 0x7ce   :  { %3510 = vmatprep.subr.bf16.mxu0 %v6660_v57  ;;  %3555 = vmatprep.subr.bf16.mxu1 %v6682_v37 }
 0x7d1   :  { %3511 = vmatpush1.bf16.msra.mxu0 %v6668_v39  ;;  %3556 = vmatpush1.bf16.msra.mxu1 %v6688_v5 }
 0x7d2   :  { %3101 = vmatmul.mubr.bf16.gmra.mrb[56].mxu0 %v6585_v13  ;;  %3214 = vmatmul.mubr.bf16.gmra.mrb[56].mxu1 %v6585_v13  ;;  %v2453_v13 = vld [vmem:[#allocation4 + $0x1c0] sm:$0xff] }
 0x7d3   :  { %3110 = vmatprep.mubr.bf16.mxu0 %v5974_v0  ;;  %3223 = vmatprep.mubr.bf16.mxu1 %v5974_v0 }
 0x7d4   :  { %3512 = vmatprep.subr.bf16.mxu0 %v6673_v59  ;;  %3557 = vmatprep.subr.bf16.mxu1 %v6694_v7 }
 0x7d5   :  { %3513 = vmatpush1.bf16.msra.mxu0 %v6680_v58  ;;  %3558 = vmatpush1.bf16.msra.mxu1 %v6700_v9 }
 0x7d6   :  { %3514 = vmatprep.subr.bf16.mxu0 %v6685_v3  ;;  %3559 = vmatprep.subr.bf16.mxu1 %v6706_v11 }
 0x7d9   :  { %3515 = vmatpush1.bf16.msra.mxu0 %v6692_v6  ;;  %3560 = vmatpush1.bf16.msra.mxu1 %v6710_v12 }
 0x7da   :  { %3516 = vmatprep.subr.bf16.mxu0 %v6697_v8  ;;  %3684 = vmatprep.subr.bf16.mxu1 %v6593_v41 }
 0x7dd   :  { %3517 = vmatpush1.bf16.msra.mxu0 %v6704_v10 }
 0x7de   :  { %3641 = vmatprep.subr.bf16.mxu0 %v6591_v38 }
 0x855   :  { %v2687_v14 = vpop.f32.mrb[28].mxu0  ;;  %v2730_v15 = vpop.f32.mrb[28].mxu1 }
 0x856   :  { %v2739_v17 = vadd.f32 %v2687_v14, %v2453_v13  ;;  %v2689_v18 = vpop.f32.mrb[29].mxu0  ;;  %v2732_v19 = vpop.f32.mrb[29].mxu1  ;;  %v2741_v33 = vadd.f32 %v2730_v15, %v2455_v21 }
 0x857   :  { %v2740_v22 = vadd.f32 %v2689_v18, %v2454_v44  ;;  %v2691_v23 = vpop.f32.mrb[30].mxu0  ;;  %v2734_v24 = vpop.f32.mrb[30].mxu1  ;;  %v2742_v42 = vadd.f32 %v2732_v19, %v2456_v35 }
 0x858   :  { %v2747_v25 = vmul.f32 0.5, %v2739_v17  ;;  %v2743_v26 = vadd.f32 %v2691_v23, %v2457_v16  ;;  %v2693_v27 = vpop.f32.mrb[31].mxu0  ;;  %v2736_v28 = vpop.f32.mrb[31].mxu1  ;;  %v2745_v60 = vadd.f32 %v2734_v24, %v2459_v54 }
 0x859   :  { %v2755_v29 = vmul.f32 0.5, %v2740_v22  ;;  %v2744_v30 = vadd.f32 %v2693_v27, %v2458_v20  ;;  %v2765_v43 = vmul.f32 0.5, %v2742_v42  ;;  %v2746_v55 = vadd.f32 %v2736_v28, %v2460_v40 }
 0x85a   :  { %5584 = vtanh.f32 %v2747_v25  ;;  %v2748_v34 = vmul.f32 0.5, %v2743_v26 }
 0x85b   :  { %5586 = vtanh.f32 %v2755_v29  ;;  %v2756_v45 = vmul.f32 0.5, %v2744_v30  ;;  %v2766_v15 = vmul.f32 0.5, %v2746_v55 }
 0x85c   :  { %5588 = vtanh.f32 %v2748_v34 }
 0x85d   :  { %5590 = vtanh.f32 %v2741_v33 }
 0x85e   :  { %5592 = vtanh.f32 %v2756_v45 }
 0x85f   :  { %5594 = vtanh.f32 %v2745_v60 }
 0x860   :  { %5596 = vtanh.f32 %v2765_v43 }
 0x861   :  { %5598 = vtanh.f32 %v2766_v15  ;;  %v2828_v15 = vlaneseq }
 0x864   :  { %v5585_v13 = vpop.eup %5584 }
 0x865   :  { %v5587_v44 = vpop.eup %5586  ;;  %v2751_v14 = vmul.f32 0.5, %v5585_v13 }
 0x866   :  { %v2759_v16 = vmul.f32 0.5, %v5587_v44  ;;  %v5589_v17 = vpop.eup %5588 }
 0x867   :  { %v2753_v18 = vadd.f32 0.5, %v2751_v14  ;;  %v5591_v20 = vpop.eup %5590  ;;  %v2752_v22 = vmul.f32 0.5, %v5589_v17  ;;  %v3300_v14 = vld [vmem:[#allocation7 + $0x18] sm:$0xff]  ;;  %v2829_v17 = vshrl.u32 %v2828_v15, 7 }
 0x868   :  { %v2761_v21 = vadd.f32 0.5, %v2759_v16  ;;  %v5593_v23 = vpop.eup %5592 }
 0x869   :  { %v2775_v24 = vmul.f32 %v5591_v20, %v2753_v18  ;;  %v2754_v25 = vadd.f32 0.5, %v2752_v22  ;;  %v2760_v26 = vmul.f32 0.5, %v5593_v23  ;;  %v5595_v27 = vpop.eup %5594  ;;  %v2830_v18 = vsub.s32 0, %v2829_v17  ;;  %v2826_v20 = vld [vmem:[%s7175_s5] sm:$0xf] }
 0x86a   :  { %v2773_v19 = vmul.f32 %v2761_v21, %v6578_v61  ;;  %v5597_v34 = vpop.eup %5596  ;;  %v2834_v21 = vsub.s32 1, %v2829_v17  ;;  %v2838_v23 = vsub.s32 2, %v2829_v17 }
 0x86b   :  { %v2762_v29 = vadd.f32 0.5, %v2760_v26  ;;  %v2776_v30 = vmul.f32 %v5595_v27, %v2754_v25  ;;  %v2769_v35 = vmul.f32 0.5, %v5597_v34  ;;  %v5599_v45 = vpop.eup %5598  ;;  %v6758_v22 = vrot.slane %v2826_v20, %v2830_v18 }
 0x86c   :  { %v2777_v28 = vadd.f32 %v2775_v24, %v2773_v19  ;;  %v2770_v42 = vmul.f32 0.5, %v5599_v45  ;;  %v6760_v24 = vrot.slane %v2826_v20, %v2834_v21  ;;  %v6763_v27 = vrot.slane %v2826_v20, %v2838_v23 }
 0x86d   :  { %v2774_v33 = vmul.f32 %v2762_v29, %v6582_v62  ;;  %v2771_v60 = vadd.f32 0.5, %v2769_v35  ;;  %v3299_v62 = vld [vmem:[#allocation7 + $0x10] sm:$0xff] }
 0x86e   :  { %5600 = vtanh.f32 %v2777_v28  ;;  %v2772_v61 = vadd.f32 0.5, %v2770_v42  ;;  %v3309_v16 = vpack.c.bf16 %v3300_v14, %v3299_v62 }
 0x86f   :  { %v2778_v54 = vadd.f32 %v2776_v30, %v2774_v33 }
 0x871   :  { %5602 = vtanh.f32 %v2778_v54 }
 0x878   :  { %v5601_v40 = vpop.eup %5600 }
 0x879   :  { %v2781_v43 = vmul.f32 %v5601_v40, %v2771_v60  ;;  %v2842_v40 = vsub.s32 3, %v2829_v17 }
 0x87b   :  { %v5603_v55 = vpop.eup %5602 }
 0x87c   :  { %v2782_v13 = vmul.f32 %v5603_v55, %v2772_v61 }
 0x87e   :  { %v2783_v44 = vpack.c.bf16 %v2782_v13, %v2781_v43 }
 0x880   :  { %3111 = vmatmul.mubr.bf16.gmra.mrb[60].mxu0 %v2783_v44  ;;  %3224 = vmatmul.mubr.bf16.gmra.mrb[60].mxu1 %v2783_v44  ;;  %v6769_v44 = vrot.slane %v2826_v20, %v2842_v40 }
 0x881   :  { %3534 = vmatprep.mubr.bf16.mxu0 %v5974_v0  ;;  %3577 = vmatprep.mubr.bf16.mxu1 %v5974_v0 }
 0x888   :  { %3535 = vmatmul.mubr.bf16.vlgmr.msra.gmra.mrb[32].mxu0 %v3309_v16  ;;  %3578 = vmatmul.mubr.bf16.vlgmr.msra.gmra.mrb[32].mxu1 %v3309_v16 }
 0x889   :  { %3642 = vmatpush1.bf16.msra.mxu0 %v6596_v4  ;;  %3685 = vmatpush1.bf16.msra.mxu1 %v6599_v50 }
 0x88a   :  { %3643 = vmatprep.subr.bf16.mxu0 %v6601_v49  ;;  %3686 = vmatprep.subr.bf16.mxu1 %v6637_v32 }
 0x88b   :  { %3673 = vmatprep.mubr.bf16.mxu0 %v5974_v0  ;;  %3716 = vmatprep.mubr.bf16.mxu1 %v5974_v0 }
 0x88d   :  { %3644 = vmatpush1.bf16.msra.mxu0 %v6609_v46  ;;  %3687 = vmatpush1.bf16.msra.mxu1 %v6640_v31 }
 0x88e   :  { %3645 = vmatprep.subr.bf16.mxu0 %v6642_v2  ;;  %3688 = vmatprep.subr.bf16.mxu1 %v6649_v48 }
 0x891   :  { %3646 = vmatpush1.bf16.msra.mxu0 %v6645_v47  ;;  %3689 = vmatpush1.bf16.msra.mxu1 %v6653_v51 }
 0x892   :  { %3647 = vmatprep.subr.bf16.mxu0 %v6651_v63  ;;  %3690 = vmatprep.subr.bf16.mxu1 %v6658_v52 }
 0x895   :  { %3648 = vmatpush1.bf16.msra.mxu0 %v6655_v1  ;;  %3691 = vmatpush1.bf16.msra.mxu1 %v6664_v56 }
 0x896   :  { %3649 = vmatprep.subr.bf16.mxu0 %v6660_v57  ;;  %3692 = vmatprep.subr.bf16.mxu1 %v6670_v53 }
 0x899   :  { %3650 = vmatpush1.bf16.msra.mxu0 %v6668_v39  ;;  %3693 = vmatpush1.bf16.msra.mxu1 %v6676_v36 }
 0x89a   :  { %3651 = vmatprep.subr.bf16.mxu0 %v6673_v59  ;;  %3694 = vmatprep.subr.bf16.mxu1 %v6682_v37 }
 0x89d   :  { %3652 = vmatpush1.bf16.msra.mxu0 %v6680_v58  ;;  %3695 = vmatpush1.bf16.msra.mxu1 %v6688_v5 }
 0x89e   :  { %3653 = vmatprep.subr.bf16.mxu0 %v6685_v3  ;;  %3696 = vmatprep.subr.bf16.mxu1 %v6694_v7 }
 0x8a1   :  { %3654 = vmatpush1.bf16.msra.mxu0 %v6692_v6  ;;  %3697 = vmatpush1.bf16.msra.mxu1 %v6700_v9 }
 0x8a2   :  { %3655 = vmatprep.subr.bf16.mxu0 %v6697_v8  ;;  %3698 = vmatprep.subr.bf16.mxu1 %v6706_v11 }
 0x8a5   :  { %3656 = vmatpush1.bf16.msra.mxu0 %v6704_v10  ;;  %3699 = vmatpush1.bf16.msra.mxu1 %v6710_v12 }
 0x8a6   :  { %3780 = vmatprep.subr.bf16.mxu0 %v6591_v38  ;;  %3823 = vmatprep.subr.bf16.mxu1 %v6593_v41 }
 0x95b   :  { %v3536_v19 = vpop.f32.mrb[32].mxu0  ;;  %v3579_v25 = vpop.f32.mrb[32].mxu1 }
 0x95c   :  { %v5098_v26 = vadd.f32 %v3536_v19, %v6758_v22  ;;  %v3538_v28 = vpop.f32.mrb[33].mxu0  ;;  %v3581_v29 = vpop.f32.mrb[33].mxu1  ;;  %v5130_v61 = vadd.f32 %v3579_v25, %v6763_v27 }
 0x95d   :  { %v5099_v30 = vadd.f32 %v3538_v28, %v6760_v24  ;;  %v3540_v33 = vpop.f32.mrb[34].mxu0  ;;  %v3583_v34 = vpop.f32.mrb[34].mxu1  ;;  %v5131_v14 = vadd.f32 %v3581_v29, %v6769_v44 }
 0x95e   :  { %v3596_v54 = vmul.f32 0.5, %v5098_v26  ;;  %v5100_v35 = vadd.f32 %v3540_v33, %v6758_v22  ;;  %v3542_v45 = vpop.f32.mrb[35].mxu0  ;;  %v3585_v60 = vpop.f32.mrb[35].mxu1  ;;  %v5132_v62 = vadd.f32 %v3583_v34, %v6763_v27 }
 0x95f   :  { %v3604_v42 = vmul.f32 0.5, %v5099_v30  ;;  %v5101_v43 = vadd.f32 %v3542_v45, %v6760_v24  ;;  %v5133_v16 = vadd.f32 %v3585_v60, %v6769_v44  ;;  %v3614_v21 = vmul.f32 0.5, %v5131_v14 }
 0x960   :  { %5604 = vtanh.f32 %v3596_v54  ;;  %v3597_v55 = vmul.f32 0.5, %v5100_v35 }
 0x961   :  { %5606 = vtanh.f32 %v3604_v42  ;;  %v3605_v13 = vmul.f32 0.5, %v5101_v43  ;;  %v3615_v19 = vmul.f32 0.5, %v5133_v16 }
 0x962   :  { %5608 = vtanh.f32 %v3597_v55 }
 0x963   :  { %5610 = vtanh.f32 %v5130_v61 }
 0x964   :  { %5612 = vtanh.f32 %v3605_v13 }
 0x965   :  { %5614 = vtanh.f32 %v5132_v62 }
 0x966   :  { %5616 = vtanh.f32 %v3614_v21 }
 0x967   :  { %5618 = vtanh.f32 %v3615_v19 }
 0x96a   :  { %v5605_v15 = vpop.eup %5604 }
 0x96b   :  { %v5607_v17 = vpop.eup %5606  ;;  %v3600_v18 = vmul.f32 0.5, %v5605_v15 }
 0x96c   :  { %v3608_v23 = vmul.f32 0.5, %v5607_v17  ;;  %v5609_v25 = vpop.eup %5608 }
 0x96d   :  { %v3602_v26 = vadd.f32 0.5, %v3600_v18  ;;  %v5611_v20 = vpop.eup %5610  ;;  %v3601_v30 = vmul.f32 0.5, %v5609_v25 }
 0x96e   :  { %v3610_v28 = vadd.f32 0.5, %v3608_v23  ;;  %v5613_v33 = vpop.eup %5612 }
 0x96f   :  { %v3624_v34 = vmul.f32 %v5611_v20, %v3602_v26  ;;  %v3603_v35 = vadd.f32 0.5, %v3601_v30  ;;  %v3609_v29 = vmul.f32 0.5, %v5613_v33  ;;  %v5615_v45 = vpop.eup %5614 }
 0x970   :  { %v3622_v54 = vmul.f32 0.0, %v3610_v28  ;;  %v5617_v55 = vpop.eup %5616 }
 0x971   :  { %v3611_v42 = vadd.f32 0.5, %v3609_v29  ;;  %v3625_v40 = vmul.f32 %v5615_v45, %v3603_v35  ;;  %v5619_v13 = vpop.eup %5618  ;;  %v3618_v62 = vmul.f32 0.5, %v5617_v55 }
 0x972   :  { %v6774_v60 = vadd.f32 %v3624_v34, %v3622_v54  ;;  %v3619_v14 = vmul.f32 0.5, %v5619_v13 }
 0x973   :  { %v3623_v43 = vmul.f32 0.0, %v3611_v42  ;;  %v3620_v15 = vadd.f32 0.5, %v3618_v62 }
 0x974   :  { %5620 = vtanh.f32 %v6774_v60  ;;  %v3621_v17 = vadd.f32 0.5, %v3619_v14 }
 0x975   :  { %v6777_v61 = vadd.f32 %v3625_v40, %v3623_v43 }
 0x977   :  { %5622 = vtanh.f32 %v6777_v61 }
 0x97e   :  { %v5621_v16 = vpop.eup %5620 }
 0x97f   :  { %v3630_v21 = vmul.f32 %v5621_v16, %v3620_v15 }
 0x981   :  { %v5623_v18 = vpop.eup %5622 }
 0x982   :  { %v3631_v23 = vmul.f32 %v5623_v18, %v3621_v17 }
 0x984   :  { %v3640_v19 = vpack.c.bf16 %v3631_v23, %v3630_v21 }
 0x986   :  { %3674 = vmatmul.mubr.bf16.vlgmr.msra.gmra.mrb[36].mxu0 %v3640_v19  ;;  %3717 = vmatmul.mubr.bf16.vlgmr.msra.gmra.mrb[36].mxu1 %v3640_v19 }
 0x987   :  { %3781 = vmatpush1.bf16.msra.mxu0 %v6596_v4  ;;  %3824 = vmatpush1.bf16.msra.mxu1 %v6599_v50 }
 0x988   :  { %3782 = vmatprep.subr.bf16.mxu0 %v6601_v49  ;;  %3825 = vmatprep.subr.bf16.mxu1 %v6637_v32 }
 0x989   :  { %3812 = vmatprep.mubr.bf16.mxu0 %v5974_v0  ;;  %3855 = vmatprep.mubr.bf16.mxu1 %v5974_v0 }
 0x98b   :  { %3783 = vmatpush1.bf16.msra.mxu0 %v6609_v46  ;;  %3826 = vmatpush1.bf16.msra.mxu1 %v6640_v31 }
 0x98c   :  { %3784 = vmatprep.subr.bf16.mxu0 %v6642_v2  ;;  %3827 = vmatprep.subr.bf16.mxu1 %v6649_v48 }
 0x98f   :  { %3785 = vmatpush1.bf16.msra.mxu0 %v6645_v47  ;;  %3828 = vmatpush1.bf16.msra.mxu1 %v6653_v51 }
 0x990   :  { %3786 = vmatprep.subr.bf16.mxu0 %v6651_v63  ;;  %3829 = vmatprep.subr.bf16.mxu1 %v6658_v52 }
 0x993   :  { %3787 = vmatpush1.bf16.msra.mxu0 %v6655_v1  ;;  %3830 = vmatpush1.bf16.msra.mxu1 %v6664_v56 }
 0x994   :  { %3788 = vmatprep.subr.bf16.mxu0 %v6660_v57  ;;  %3831 = vmatprep.subr.bf16.mxu1 %v6670_v53 }
 0x997   :  { %3789 = vmatpush1.bf16.msra.mxu0 %v6668_v39  ;;  %3832 = vmatpush1.bf16.msra.mxu1 %v6676_v36 }
 0x998   :  { %3790 = vmatprep.subr.bf16.mxu0 %v6673_v59  ;;  %3833 = vmatprep.subr.bf16.mxu1 %v6682_v37 }
 0x99b   :  { %3791 = vmatpush1.bf16.msra.mxu0 %v6680_v58  ;;  %3834 = vmatpush1.bf16.msra.mxu1 %v6688_v5 }
 0x99c   :  { %3792 = vmatprep.subr.bf16.mxu0 %v6685_v3  ;;  %3835 = vmatprep.subr.bf16.mxu1 %v6694_v7 }
 0x99f   :  { %3793 = vmatpush1.bf16.msra.mxu0 %v6692_v6  ;;  %3836 = vmatpush1.bf16.msra.mxu1 %v6700_v9 }
 0x9a0   :  { %3794 = vmatprep.subr.bf16.mxu0 %v6697_v8  ;;  %3837 = vmatprep.subr.bf16.mxu1 %v6706_v11 }
 0x9a3   :  { %3795 = vmatpush1.bf16.msra.mxu0 %v6704_v10  ;;  %3838 = vmatpush1.bf16.msra.mxu1 %v6710_v12 }
 0x9a4   :  { %3919 = vmatprep.subr.bf16.mxu0 %v6591_v38  ;;  %3962 = vmatprep.subr.bf16.mxu1 %v6593_v41 }
 0xa59   :  { %v3675_v25 = vpop.f32.mrb[36].mxu0  ;;  %v3718_v26 = vpop.f32.mrb[36].mxu1 }
 0xa5a   :  { %v5102_v20 = vadd.f32 %v3675_v25, %v6758_v22  ;;  %v3677_v28 = vpop.f32.mrb[37].mxu0  ;;  %v3720_v30 = vpop.f32.mrb[37].mxu1  ;;  %v5134_v55 = vadd.f32 %v3718_v26, %v6763_v27 }
 0xa5b   :  { %v5103_v33 = vadd.f32 %v3677_v28, %v6760_v24  ;;  %v3679_v34 = vpop.f32.mrb[38].mxu0  ;;  %v3722_v54 = vpop.f32.mrb[38].mxu1  ;;  %v5135_v16 = vadd.f32 %v3720_v30, %v6769_v44 }
 0xa5c   :  { %v3735_v35 = vmul.f32 0.5, %v5102_v20  ;;  %v5104_v29 = vadd.f32 %v3679_v34, %v6758_v22  ;;  %v3681_v45 = vpop.f32.mrb[39].mxu0  ;;  %v3724_v42 = vpop.f32.mrb[39].mxu1  ;;  %v5136_v14 = vadd.f32 %v3722_v54, %v6763_v27 }
 0xa5d   :  { %v3743_v40 = vmul.f32 0.5, %v5103_v33  ;;  %v5105_v43 = vadd.f32 %v3681_v45, %v6760_v24  ;;  %v5137_v15 = vadd.f32 %v3724_v42, %v6769_v44  ;;  %v3753_v23 = vmul.f32 0.5, %v5135_v16 }
 0xa5e   :  { %5624 = vtanh.f32 %v3735_v35  ;;  %v3736_v13 = vmul.f32 0.5, %v5104_v29 }
 0xa5f   :  { %5626 = vtanh.f32 %v3743_v40  ;;  %v3744_v62 = vmul.f32 0.5, %v5105_v43  ;;  %v3754_v25 = vmul.f32 0.5, %v5137_v15 }
 0xa60   :  { %5628 = vtanh.f32 %v3736_v13 }
 0xa61   :  { %5630 = vtanh.f32 %v5134_v55 }
 0xa62   :  { %5632 = vtanh.f32 %v3744_v62 }
 0xa63   :  { %5634 = vtanh.f32 %v5136_v14 }
 0xa64   :  { %5636 = vtanh.f32 %v3753_v23 }
 0xa65   :  { %5638 = vtanh.f32 %v3754_v25 }
 0xa68   :  { %v5625_v17 = vpop.eup %5624 }
 0xa69   :  { %v5627_v18 = vpop.eup %5626  ;;  %v3739_v21 = vmul.f32 0.5, %v5625_v17 }
 0xa6a   :  { %v3747_v19 = vmul.f32 0.5, %v5627_v18  ;;  %v5629_v26 = vpop.eup %5628 }
 0xa6b   :  { %v3741_v20 = vadd.f32 0.5, %v3739_v21  ;;  %v5631_v28 = vpop.eup %5630  ;;  %v3740_v34 = vmul.f32 0.5, %v5629_v26 }
 0xa6c   :  { %v3749_v33 = vadd.f32 0.5, %v3747_v19  ;;  %v5633_v35 = vpop.eup %5632 }
 0xa6d   :  { %v3763_v54 = vmul.f32 %v5631_v28, %v3741_v20  ;;  %v3742_v30 = vadd.f32 0.5, %v3740_v34  ;;  %v3748_v45 = vmul.f32 0.5, %v5633_v35  ;;  %v5635_v42 = vpop.eup %5634 }
 0xa6e   :  { %v3761_v29 = vmul.f32 %v3749_v33, %v6774_v60  ;;  %v5637_v14 = vpop.eup %5636 }
 0xa6f   :  { %v3750_v43 = vadd.f32 0.5, %v3748_v45  ;;  %v3764_v55 = vmul.f32 %v5635_v42, %v3742_v30  ;;  %v5639_v16 = vpop.eup %5638  ;;  %v3757_v15 = vmul.f32 0.5, %v5637_v14 }
 0xa70   :  { %v6823_v40 = vadd.f32 %v3763_v54, %v3761_v29  ;;  %v3758_v60 = vmul.f32 0.5, %v5639_v16 }
 0xa71   :  { %v3762_v13 = vmul.f32 %v3750_v43, %v6777_v61  ;;  %v3759_v18 = vadd.f32 0.5, %v3757_v15 }
 0xa72   :  { %5640 = vtanh.f32 %v6823_v40  ;;  %v3760_v21 = vadd.f32 0.5, %v3758_v60 }
 0xa73   :  { %v6827_v62 = vadd.f32 %v3764_v55, %v3762_v13 }
 0xa75   :  { %5642 = vtanh.f32 %v6827_v62 }
 0xa7c   :  { %v5641_v17 = vpop.eup %5640 }
 0xa7d   :  { %v3769_v19 = vmul.f32 %v5641_v17, %v3759_v18 }
 0xa7f   :  { %v5643_v23 = vpop.eup %5642 }
 0xa80   :  { %v3770_v25 = vmul.f32 %v5643_v23, %v3760_v21 }
 0xa82   :  { %v3779_v26 = vpack.c.bf16 %v3770_v25, %v3769_v19 }
 0xa84   :  { %3813 = vmatmul.mubr.bf16.vlgmr.msra.gmra.mrb[40].mxu0 %v3779_v26  ;;  %3856 = vmatmul.mubr.bf16.vlgmr.msra.gmra.mrb[40].mxu1 %v3779_v26 }
 0xa85   :  { %3920 = vmatpush1.bf16.msra.mxu0 %v6596_v4  ;;  %3963 = vmatpush1.bf16.msra.mxu1 %v6599_v50 }
 0xa86   :  { %3921 = vmatprep.subr.bf16.mxu0 %v6601_v49  ;;  %3964 = vmatprep.subr.bf16.mxu1 %v6637_v32 }
 0xa87   :  { %3951 = vmatprep.mubr.bf16.mxu0 %v5974_v0  ;;  %3994 = vmatprep.mubr.bf16.mxu1 %v5974_v0 }
 0xa89   :  { %3922 = vmatpush1.bf16.msra.mxu0 %v6609_v46  ;;  %3965 = vmatpush1.bf16.msra.mxu1 %v6640_v31 }
 0xa8a   :  { %3923 = vmatprep.subr.bf16.mxu0 %v6642_v2  ;;  %3966 = vmatprep.subr.bf16.mxu1 %v6649_v48 }
 0xa8d   :  { %3924 = vmatpush1.bf16.msra.mxu0 %v6645_v47  ;;  %3967 = vmatpush1.bf16.msra.mxu1 %v6653_v51 }
 0xa8e   :  { %3925 = vmatprep.subr.bf16.mxu0 %v6651_v63  ;;  %3968 = vmatprep.subr.bf16.mxu1 %v6658_v52 }
 0xa91   :  { %3926 = vmatpush1.bf16.msra.mxu0 %v6655_v1  ;;  %3969 = vmatpush1.bf16.msra.mxu1 %v6664_v56 }
 0xa92   :  { %3927 = vmatprep.subr.bf16.mxu0 %v6660_v57  ;;  %3970 = vmatprep.subr.bf16.mxu1 %v6670_v53 }
 0xa95   :  { %3928 = vmatpush1.bf16.msra.mxu0 %v6668_v39  ;;  %3971 = vmatpush1.bf16.msra.mxu1 %v6676_v36 }
 0xa96   :  { %3929 = vmatprep.subr.bf16.mxu0 %v6673_v59  ;;  %3972 = vmatprep.subr.bf16.mxu1 %v6682_v37 }
 0xa99   :  { %3930 = vmatpush1.bf16.msra.mxu0 %v6680_v58  ;;  %3973 = vmatpush1.bf16.msra.mxu1 %v6688_v5 }
 0xa9a   :  { %3931 = vmatprep.subr.bf16.mxu0 %v6685_v3  ;;  %3974 = vmatprep.subr.bf16.mxu1 %v6694_v7 }
 0xa9d   :  { %3932 = vmatpush1.bf16.msra.mxu0 %v6692_v6  ;;  %3975 = vmatpush1.bf16.msra.mxu1 %v6700_v9 }
 0xa9e   :  { %3933 = vmatprep.subr.bf16.mxu0 %v6697_v8  ;;  %3976 = vmatprep.subr.bf16.mxu1 %v6706_v11 }
 0xaa1   :  { %3934 = vmatpush1.bf16.msra.mxu0 %v6704_v10  ;;  %3977 = vmatpush1.bf16.msra.mxu1 %v6710_v12 }
 0xaa2   :  { %4058 = vmatprep.subr.bf16.mxu0 %v6591_v38  ;;  %4101 = vmatprep.subr.bf16.mxu1 %v6593_v41 }
 0xb57   :  { %v3814_v61 = vpop.f32.mrb[40].mxu0  ;;  %v3857_v20 = vpop.f32.mrb[40].mxu1 }
 0xb58   :  { %v5106_v28 = vadd.f32 %v3814_v61, %v6758_v22  ;;  %v3816_v33 = vpop.f32.mrb[41].mxu0  ;;  %v3859_v34 = vpop.f32.mrb[41].mxu1  ;;  %v5138_v41 = vadd.f32 %v3857_v20, %v6763_v27 }
 0xb59   :  { %v5107_v35 = vadd.f32 %v3816_v33, %v6760_v24  ;;  %v3818_v54 = vpop.f32.mrb[42].mxu0  ;;  %v3861_v29 = vpop.f32.mrb[42].mxu1  ;;  %v5139_v15 = vadd.f32 %v3859_v34, %v6769_v44 }
 0xb5a   :  { %v3874_v30 = vmul.f32 0.5, %v5106_v28  ;;  %v5108_v45 = vadd.f32 %v3818_v54, %v6758_v22  ;;  %v3820_v42 = vpop.f32.mrb[43].mxu0  ;;  %v3863_v43 = vpop.f32.mrb[43].mxu1  ;;  %v5140_v16 = vadd.f32 %v3861_v29, %v6763_v27 }
 0xb5b   :  { %v3882_v55 = vmul.f32 0.5, %v5107_v35  ;;  %v5109_v38 = vadd.f32 %v3820_v42, %v6760_v24  ;;  %v5141_v60 = vadd.f32 %v3863_v43, %v6769_v44  ;;  %v3892_v23 = vmul.f32 0.5, %v5139_v15 }
 0xb5c   :  { %5644 = vtanh.f32 %v3874_v30  ;;  %v3875_v13 = vmul.f32 0.5, %v5108_v45 }
 0xb5d   :  { %5646 = vtanh.f32 %v3882_v55  ;;  %v3883_v14 = vmul.f32 0.5, %v5109_v38  ;;  %v3893_v25 = vmul.f32 0.5, %v5141_v60 }
 0xb5e   :  { %5648 = vtanh.f32 %v3875_v13 }
 0xb5f   :  { %5650 = vtanh.f32 %v5138_v41 }
 0xb60   :  { %5652 = vtanh.f32 %v3883_v14 }
 0xb61   :  { %5654 = vtanh.f32 %v5140_v16 }
 0xb62   :  { %5656 = vtanh.f32 %v3892_v23 }
 0xb63   :  { %5658 = vtanh.f32 %v3893_v25 }
 0xb66   :  { %v5645_v17 = vpop.eup %5644 }
 0xb67   :  { %v5647_v18 = vpop.eup %5646  ;;  %v3878_v21 = vmul.f32 0.5, %v5645_v17 }
 0xb68   :  { %v3886_v19 = vmul.f32 0.5, %v5647_v18  ;;  %v5649_v26 = vpop.eup %5648 }
 0xb69   :  { %v3880_v61 = vadd.f32 0.5, %v3878_v21  ;;  %v5651_v20 = vpop.eup %5650  ;;  %v3879_v33 = vmul.f32 0.5, %v5649_v26 }
 0xb6a   :  { %v3888_v28 = vadd.f32 0.5, %v3886_v19  ;;  %v5653_v35 = vpop.eup %5652 }
 0xb6b   :  { %v3902_v54 = vmul.f32 %v5651_v20, %v3880_v61  ;;  %v3881_v34 = vadd.f32 0.5, %v3879_v33  ;;  %v3887_v30 = vmul.f32 0.5, %v5653_v35  ;;  %v5655_v45 = vpop.eup %5654 }
 0xb6c   :  { %v3900_v29 = vmul.f32 %v3888_v28, %v6823_v40  ;;  %v5657_v13 = vpop.eup %5656 }
 0xb6d   :  { %v3889_v43 = vadd.f32 0.5, %v3887_v30  ;;  %v3903_v55 = vmul.f32 %v5655_v45, %v3881_v34  ;;  %v5659_v14 = vpop.eup %5658  ;;  %v3896_v16 = vmul.f32 0.5, %v5657_v13 }
 0xb6e   :  { %v6873_v42 = vadd.f32 %v3902_v54, %v3900_v29  ;;  %v3897_v40 = vmul.f32 0.5, %v5659_v14 }
 0xb6f   :  { %v3901_v38 = vmul.f32 %v3889_v43, %v6827_v62  ;;  %v3898_v60 = vadd.f32 0.5, %v3896_v16 }
 0xb70   :  { %5660 = vtanh.f32 %v6873_v42  ;;  %v3899_v17 = vadd.f32 0.5, %v3897_v40 }
 0xb71   :  { %v6877_v41 = vadd.f32 %v3903_v55, %v3901_v38 }
 0xb73   :  { %5662 = vtanh.f32 %v6877_v41 }
 0xb7a   :  { %v5661_v15 = vpop.eup %5660 }
 0xb7b   :  { %v3908_v21 = vmul.f32 %v5661_v15, %v3898_v60 }
 0xb7d   :  { %v5663_v18 = vpop.eup %5662 }
 0xb7e   :  { %v3909_v23 = vmul.f32 %v5663_v18, %v3899_v17 }
 0xb80   :  { %v3918_v19 = vpack.c.bf16 %v3909_v23, %v3908_v21  ;;  %v6937_v21 = vld [vmem:[#allocation10 + $0x8] ss:$16 sps:$4 sm:$0xff]   ;;  %v6940_v23 = vld [vmem:[#allocation10 + $0x24] ss:$16 sps:$4 sm:$0xff]  }
 0xb82   :  { %3952 = vmatmul.mubr.bf16.vlgmr.msra.gmra.mrb[44].mxu0 %v3918_v19  ;;  %3995 = vmatmul.mubr.bf16.vlgmr.msra.gmra.mrb[44].mxu1 %v3918_v19  ;;  %v6943_v19 = vld [vmem:[#allocation10 + $0x2c] ss:$16 sps:$4 sm:$0xff]  }
 0xb83   :  { %4059 = vmatpush1.bf16.msra.mxu0 %v6596_v4  ;;  %4102 = vmatpush1.bf16.msra.mxu1 %v6599_v50  ;;  %v6912_v4 = vld [vmem:[#allocation10 + $0x4] ss:$16 sps:$4 sm:$0xff]   ;;  %v6915_v50 = vld [vmem:[#allocation10 + $0xc] ss:$16 sps:$4 sm:$0xff]  }
 0xb84   :  { %4060 = vmatprep.subr.bf16.mxu0 %v6601_v49  ;;  %4103 = vmatprep.subr.bf16.mxu1 %v6637_v32 }
 0xb85   :  { %4090 = vmatprep.mubr.bf16.mxu0 %v5974_v0  ;;  %4133 = vmatprep.mubr.bf16.mxu1 %v5974_v0 }
 0xb87   :  { %4061 = vmatpush1.bf16.msra.mxu0 %v6609_v46  ;;  %4104 = vmatpush1.bf16.msra.mxu1 %v6640_v31 }
 0xb88   :  { %4062 = vmatprep.subr.bf16.mxu0 %v6642_v2  ;;  %4105 = vmatprep.subr.bf16.mxu1 %v6649_v48 }
 0xb8b   :  { %4063 = vmatpush1.bf16.msra.mxu0 %v6645_v47  ;;  %4106 = vmatpush1.bf16.msra.mxu1 %v6653_v51 }
 0xb8c   :  { %4064 = vmatprep.subr.bf16.mxu0 %v6651_v63  ;;  %4107 = vmatprep.subr.bf16.mxu1 %v6658_v52 }
 0xb8f   :  { %4065 = vmatpush1.bf16.msra.mxu0 %v6655_v1  ;;  %4108 = vmatpush1.bf16.msra.mxu1 %v6664_v56 }
 0xb90   :  { %4066 = vmatprep.subr.bf16.mxu0 %v6660_v57  ;;  %4109 = vmatprep.subr.bf16.mxu1 %v6670_v53 }
 0xb93   :  { %4067 = vmatpush1.bf16.msra.mxu0 %v6668_v39  ;;  %4110 = vmatpush1.bf16.msra.mxu1 %v6676_v36 }
 0xb94   :  { %4068 = vmatprep.subr.bf16.mxu0 %v6673_v59  ;;  %4111 = vmatprep.subr.bf16.mxu1 %v6682_v37 }
 0xb97   :  { %4069 = vmatpush1.bf16.msra.mxu0 %v6680_v58  ;;  %4112 = vmatpush1.bf16.msra.mxu1 %v6688_v5 }
 0xb98   :  { %4070 = vmatprep.subr.bf16.mxu0 %v6685_v3  ;;  %4113 = vmatprep.subr.bf16.mxu1 %v6694_v7 }
 0xb9b   :  { %4071 = vmatpush1.bf16.msra.mxu0 %v6692_v6  ;;  %4114 = vmatpush1.bf16.msra.mxu1 %v6700_v9 }
 0xb9c   :  { %4072 = vmatprep.subr.bf16.mxu0 %v6697_v8  ;;  %4115 = vmatprep.subr.bf16.mxu1 %v6706_v11 }
 0xb9f   :  { %4073 = vmatpush1.bf16.msra.mxu0 %v6704_v10  ;;  %4116 = vmatpush1.bf16.msra.mxu1 %v6710_v12 }
 0xba0   :  { %4197 = vmatprep.subr.bf16.mxu0 %v6912_v4  ;;  %4240 = vmatprep.subr.bf16.mxu1 %v6915_v50 }
 0xc55   :  { %v3953_v49 = vpop.f32.mrb[44].mxu0  ;;  %v3996_v46 = vpop.f32.mrb[44].mxu1 }
 0xc56   :  { %v5110_v32 = vadd.f32 %v3953_v49, %v6758_v22  ;;  %v3955_v31 = vpop.f32.mrb[45].mxu0  ;;  %v3998_v2 = vpop.f32.mrb[45].mxu1  ;;  %v5142_v53 = vadd.f32 %v3996_v46, %v6763_v27  ;;  %v6948_v49 = vld [vmem:[#allocation10 + $0x20] ss:$16 sps:$4 sm:$0xff]   ;;  %v6951_v46 = vld [vmem:[#allocation10 + $0x28] ss:$16 sps:$4 sm:$0xff]  }
 0xc57   :  { %v5111_v47 = vadd.f32 %v3955_v31, %v6760_v24  ;;  %v3957_v48 = vpop.f32.mrb[46].mxu0  ;;  %v4000_v63 = vpop.f32.mrb[46].mxu1  ;;  %v5143_v37 = vadd.f32 %v3998_v2, %v6769_v44  ;;  %v6957_v31 = vld [vmem:[#allocation10 + $0x4c] ss:$16 sps:$4 sm:$0xff]   ;;  %v6960_v2 = vld [vmem:[#allocation10 + $0x40] ss:$16 sps:$4 sm:$0xff]  }
 0xc58   :  { %v4013_v51 = vmul.f32 0.5, %v5110_v32  ;;  %v5112_v1 = vadd.f32 %v3957_v48, %v6758_v22  ;;  %v3959_v52 = vpop.f32.mrb[47].mxu0  ;;  %v4002_v57 = vpop.f32.mrb[47].mxu1  ;;  %v5144_v58 = vadd.f32 %v4000_v63, %v6763_v27  ;;  %v6954_v32 = vld [vmem:[#allocation10 + $0x44] ss:$16 sps:$4 sm:$0xff]  }
 0xc59   :  { %v4021_v56 = vmul.f32 0.5, %v5111_v47  ;;  %v5113_v39 = vadd.f32 %v3959_v52, %v6760_v24  ;;  %v5145_v3 = vadd.f32 %v4002_v57, %v6769_v44  ;;  %v4031_v8 = vmul.f32 0.5, %v5143_v37  ;;  %v6963_v47 = vld [vmem:[#allocation10 + $0x48] ss:$16 sps:$4 sm:$0xff]   ;;  %v6966_v48 = vld [vmem:[#allocation10 + $0x64] ss:$16 sps:$4 sm:$0xff]  }
 0xc5a   :  { %5664 = vtanh.f32 %v4013_v51  ;;  %v4014_v59 = vmul.f32 0.5, %v5112_v1  ;;  %v6969_v63 = vld [vmem:[#allocation10 + $0x6c] ss:$16 sps:$4 sm:$0xff]   ;;  %v6972_v51 = vld [vmem:[#allocation10 + $0x60] ss:$16 sps:$4 sm:$0xff]  }
 0xc5b   :  { %5666 = vtanh.f32 %v4021_v56  ;;  %v4022_v36 = vmul.f32 0.5, %v5113_v39  ;;  %v4032_v10 = vmul.f32 0.5, %v5145_v3  ;;  %v6975_v1 = vld [vmem:[#allocation10 + $0x68] ss:$16 sps:$4 sm:$0xff]   ;;  %v6978_v52 = vld [vmem:[#allocation10 + $0x84] ss:$16 sps:$4 sm:$0xff]  }
 0xc5c   :  { %5668 = vtanh.f32 %v4014_v59  ;;  %v6981_v57 = vld [vmem:[#allocation10 + $0x8c] ss:$16 sps:$4 sm:$0xff]   ;;  %v6984_v56 = vld [vmem:[#allocation10 + $0x80] ss:$16 sps:$4 sm:$0xff]   ;;  %v6987_v39 = vld [vmem:[#allocation10 + $0x88] ss:$16 sps:$4 sm:$0xff]  }
 0xc5d   :  { %5670 = vtanh.f32 %v5142_v53  ;;  %v6990_v53 = vld [vmem:[#allocation10 + $0xa4] ss:$16 sps:$4 sm:$0xff]   ;;  %v6993_v59 = vld [vmem:[#allocation10 + $0xac] ss:$16 sps:$4 sm:$0xff]  }
 0xc5e   :  { %5672 = vtanh.f32 %v4022_v36  ;;  %v6996_v36 = vld [vmem:[#allocation10 + $0xa0] ss:$16 sps:$4 sm:$0xff]   ;;  %v7002_v37 = vld [vmem:[#allocation10 + $0xc4] ss:$16 sps:$4 sm:$0xff]   ;;  %v7005_v3 = vld [vmem:[#allocation10 + $0xcc] ss:$16 sps:$4 sm:$0xff]  }
 0xc5f   :  { %5674 = vtanh.f32 %v5144_v58  ;;  %v6999_v58 = vld [vmem:[#allocation10 + $0xa8] ss:$16 sps:$4 sm:$0xff]  }
 0xc60   :  { %5676 = vtanh.f32 %v4031_v8  ;;  %v7017_v8 = vld [vmem:[#allocation10 + $0xec] ss:$16 sps:$4 sm:$0xff]  }
 0xc61   :  { %5678 = vtanh.f32 %v4032_v10  ;;  %v7023_v10 = vld [vmem:[#allocation10 + $0xe8] ss:$16 sps:$4 sm:$0xff]  }
 0xc64   :  { %v5665_v5 = vpop.eup %5664 }
 0xc65   :  { %v5667_v6 = vpop.eup %5666  ;;  %v4017_v7 = vmul.f32 0.5, %v5665_v5  ;;  %v7008_v5 = vld [vmem:[#allocation10 + $0xc0] ss:$16 sps:$4 sm:$0xff]  }
 0xc66   :  { %v4025_v9 = vmul.f32 0.5, %v5667_v6  ;;  %v5669_v11 = vpop.eup %5668  ;;  %v7011_v6 = vld [vmem:[#allocation10 + $0xc8] ss:$16 sps:$4 sm:$0xff]  }
 0xc67   :  { %v4019_v12 = vadd.f32 0.5, %v4017_v7  ;;  %v5671_v62 = vpop.eup %5670  ;;  %v4018_v26 = vmul.f32 0.5, %v5669_v11  ;;  %v7014_v7 = vld [vmem:[#allocation10 + $0xe4] ss:$16 sps:$4 sm:$0xff]  }
 0xc68   :  { %v4027_v25 = vadd.f32 0.5, %v4025_v9  ;;  %v5673_v61 = vpop.eup %5672  ;;  %v7020_v9 = vld [vmem:[#allocation10 + $0xe0] ss:$16 sps:$4 sm:$0xff]  }
 0xc69   :  { %v4041_v20 = vmul.f32 %v5671_v62, %v4019_v12  ;;  %v4020_v33 = vadd.f32 0.5, %v4018_v26  ;;  %v4026_v35 = vmul.f32 0.5, %v5673_v61  ;;  %v5675_v54 = vpop.eup %5674 }
 0xc6a   :  { %v4039_v28 = vmul.f32 %v4027_v25, %v6873_v42  ;;  %v5677_v55 = vpop.eup %5676 }
 0xc6b   :  { %v4028_v34 = vadd.f32 0.5, %v4026_v35  ;;  %v4042_v30 = vmul.f32 %v5675_v54, %v4020_v33  ;;  %v5679_v38 = vpop.eup %5678  ;;  %v4035_v13 = vmul.f32 0.5, %v5677_v55 }
 0xc6c   :  { %v6927_v29 = vadd.f32 %v4041_v20, %v4039_v28  ;;  %v4036_v42 = vmul.f32 0.5, %v5679_v38 }
 0xc6d   :  { %v4040_v45 = vmul.f32 %v4028_v34, %v6877_v41  ;;  %v4037_v16 = vadd.f32 0.5, %v4035_v13  ;;  %v6934_v41 = vld [vmem:[#allocation10] ss:$16 sps:$4 sm:$0xff]  }
 0xc6e   :  { %5680 = vtanh.f32 %v6927_v29  ;;  %v4038_v40 = vadd.f32 0.5, %v4036_v42 }
 0xc6f   :  { %v6931_v43 = vadd.f32 %v4042_v30, %v4040_v45 }
 0xc71   :  { %5682 = vtanh.f32 %v6931_v43 }
 0xc78   :  { %v5681_v14 = vpop.eup %5680 }
 0xc79   :  { %v4047_v60 = vmul.f32 %v5681_v14, %v4037_v16 }
 0xc7b   :  { %v5683_v15 = vpop.eup %5682 }
 0xc7c   :  { %v4048_v17 = vmul.f32 %v5683_v15, %v4038_v40 }
 0xc7e   :  { %v4057_v18 = vpack.c.bf16 %v4048_v17, %v4047_v60 }
 0xc80   :  { %4091 = vmatmul.mubr.bf16.vlgmr.msra.gmra.mrb[48].mxu0 %v4057_v18  ;;  %4134 = vmatmul.mubr.bf16.vlgmr.msra.gmra.mrb[48].mxu1 %v4057_v18 }
 0xc81   :  { %4198 = vmatpush1.bf16.msra.mxu0 %v6934_v41  ;;  %4241 = vmatpush1.bf16.msra.mxu1 %v6937_v21 }
 0xc82   :  { %4199 = vmatprep.subr.bf16.mxu0 %v6940_v23  ;;  %4242 = vmatprep.subr.bf16.mxu1 %v6943_v19 }
 0xc83   :  { %4229 = vmatprep.mubr.bf16.mxu0 %v5974_v0  ;;  %4272 = vmatprep.mubr.bf16.mxu1 %v5974_v0 }
 0xc85   :  { %4200 = vmatpush1.bf16.msra.mxu0 %v6948_v49  ;;  %4243 = vmatpush1.bf16.msra.mxu1 %v6951_v46 }
 0xc86   :  { %4201 = vmatprep.subr.bf16.mxu0 %v6954_v32  ;;  %4244 = vmatprep.subr.bf16.mxu1 %v6957_v31 }
 0xc89   :  { %4202 = vmatpush1.bf16.msra.mxu0 %v6960_v2  ;;  %4245 = vmatpush1.bf16.msra.mxu1 %v6963_v47 }
 0xc8a   :  { %4203 = vmatprep.subr.bf16.mxu0 %v6966_v48  ;;  %4246 = vmatprep.subr.bf16.mxu1 %v6969_v63 }
 0xc8d   :  { %4204 = vmatpush1.bf16.msra.mxu0 %v6972_v51  ;;  %4247 = vmatpush1.bf16.msra.mxu1 %v6975_v1 }
 0xc8e   :  { %4205 = vmatprep.subr.bf16.mxu0 %v6978_v52  ;;  %4248 = vmatprep.subr.bf16.mxu1 %v6981_v57 }
 0xc91   :  { %4206 = vmatpush1.bf16.msra.mxu0 %v6984_v56  ;;  %4249 = vmatpush1.bf16.msra.mxu1 %v6987_v39 }
 0xc92   :  { %4207 = vmatprep.subr.bf16.mxu0 %v6990_v53  ;;  %4250 = vmatprep.subr.bf16.mxu1 %v6993_v59 }
 0xc95   :  { %4208 = vmatpush1.bf16.msra.mxu0 %v6996_v36  ;;  %4251 = vmatpush1.bf16.msra.mxu1 %v6999_v58 }
 0xc96   :  { %4209 = vmatprep.subr.bf16.mxu0 %v7002_v37  ;;  %4252 = vmatprep.subr.bf16.mxu1 %v7005_v3 }
 0xc99   :  { %4210 = vmatpush1.bf16.msra.mxu0 %v7008_v5  ;;  %4253 = vmatpush1.bf16.msra.mxu1 %v7011_v6 }
 0xc9a   :  { %4211 = vmatprep.subr.bf16.mxu0 %v7014_v7  ;;  %4254 = vmatprep.subr.bf16.mxu1 %v7017_v8 }
 0xc9d   :  { %4212 = vmatpush1.bf16.msra.mxu0 %v7020_v9  ;;  %4255 = vmatpush1.bf16.msra.mxu1 %v7023_v10 }
 0xc9e   :  { %4336 = vmatprep.subr.bf16.mxu0 %v6912_v4  ;;  %4379 = vmatprep.subr.bf16.mxu1 %v6915_v50 }
 0xd53   :  { %v4092_v11 = vpop.f32.mrb[48].mxu0  ;;  %v4135_v12 = vpop.f32.mrb[48].mxu1 }
 0xd54   :  { %v5114_v62 = vadd.f32 %v4092_v11, %v6758_v22  ;;  %v4094_v25 = vpop.f32.mrb[49].mxu0  ;;  %v4137_v26 = vpop.f32.mrb[49].mxu1  ;;  %v5146_v55 = vadd.f32 %v4135_v12, %v6763_v27 }
 0xd55   :  { %v5115_v61 = vadd.f32 %v4094_v25, %v6760_v24  ;;  %v4096_v20 = vpop.f32.mrb[50].mxu0  ;;  %v4139_v28 = vpop.f32.mrb[50].mxu1  ;;  %v5147_v14 = vadd.f32 %v4137_v26, %v6769_v44 }
 0xd56   :  { %v4152_v33 = vmul.f32 0.5, %v5114_v62  ;;  %v5116_v35 = vadd.f32 %v4096_v20, %v6758_v22  ;;  %v4098_v54 = vpop.f32.mrb[51].mxu0  ;;  %v4141_v34 = vpop.f32.mrb[51].mxu1  ;;  %v5148_v42 = vadd.f32 %v4139_v28, %v6763_v27 }
 0xd57   :  { %v4160_v30 = vmul.f32 0.5, %v5115_v61  ;;  %v5117_v45 = vadd.f32 %v4098_v54, %v6760_v24  ;;  %v5149_v16 = vadd.f32 %v4141_v34, %v6769_v44  ;;  %v4170_v17 = vmul.f32 0.5, %v5147_v14 }
 0xd58   :  { %5684 = vtanh.f32 %v4152_v33  ;;  %v4153_v38 = vmul.f32 0.5, %v5116_v35 }
 0xd59   :  { %5686 = vtanh.f32 %v4160_v30  ;;  %v4161_v13 = vmul.f32 0.5, %v5117_v45  ;;  %v4171_v11 = vmul.f32 0.5, %v5149_v16 }
 0xd5a   :  { %5688 = vtanh.f32 %v4153_v38 }
 0xd5b   :  { %5690 = vtanh.f32 %v5146_v55 }
 0xd5c   :  { %5692 = vtanh.f32 %v4161_v13 }
 0xd5d   :  { %5694 = vtanh.f32 %v5148_v42 }
 0xd5e   :  { %5696 = vtanh.f32 %v4170_v17 }
 0xd5f   :  { %5698 = vtanh.f32 %v4171_v11 }
 0xd62   :  { %v5685_v40 = vpop.eup %5684 }
 0xd63   :  { %v5687_v15 = vpop.eup %5686  ;;  %v4156_v60 = vmul.f32 0.5, %v5685_v40 }
 0xd64   :  { %v4164_v18 = vmul.f32 0.5, %v5687_v15  ;;  %v5689_v12 = vpop.eup %5688 }
 0xd65   :  { %v4158_v62 = vadd.f32 0.5, %v4156_v60  ;;  %v5691_v25 = vpop.eup %5690  ;;  %v4157_v20 = vmul.f32 0.5, %v5689_v12 }
 0xd66   :  { %v4166_v61 = vadd.f32 0.5, %v4164_v18  ;;  %v5693_v33 = vpop.eup %5692 }
 0xd67   :  { %v4180_v28 = vmul.f32 %v5691_v25, %v4158_v62  ;;  %v4159_v26 = vadd.f32 0.5, %v4157_v20  ;;  %v4165_v54 = vmul.f32 0.5, %v5693_v33  ;;  %v5695_v34 = vpop.eup %5694 }
 0xd68   :  { %v4178_v35 = vmul.f32 %v4166_v61, %v6927_v29  ;;  %v5697_v42 = vpop.eup %5696 }
 0xd69   :  { %v4167_v45 = vadd.f32 0.5, %v4165_v54  ;;  %v4181_v55 = vmul.f32 %v5695_v34, %v4159_v26  ;;  %v5699_v14 = vpop.eup %5698  ;;  %v4174_v16 = vmul.f32 0.5, %v5697_v42 }
 0xd6a   :  { %v7037_v30 = vadd.f32 %v4180_v28, %v4178_v35  ;;  %v4175_v29 = vmul.f32 0.5, %v5699_v14 }
 0xd6b   :  { %v4179_v38 = vmul.f32 %v4167_v45, %v6931_v43  ;;  %v4176_v15 = vadd.f32 0.5, %v4174_v16 }
 0xd6c   :  { %5700 = vtanh.f32 %v7037_v30  ;;  %v4177_v60 = vadd.f32 0.5, %v4175_v29 }
 0xd6d   :  { %v7041_v13 = vadd.f32 %v4181_v55, %v4179_v38 }
 0xd6f   :  { %5702 = vtanh.f32 %v7041_v13 }
 0xd76   :  { %v5701_v40 = vpop.eup %5700 }
 0xd77   :  { %v4186_v18 = vmul.f32 %v5701_v40, %v4176_v15 }
 0xd79   :  { %v5703_v17 = vpop.eup %5702 }
 0xd7a   :  { %v4187_v11 = vmul.f32 %v5703_v17, %v4177_v60 }
 0xd7c   :  { %v4196_v12 = vpack.c.bf16 %v4187_v11, %v4186_v18 }
 0xd7e   :  { %4230 = vmatmul.mubr.bf16.vlgmr.msra.gmra.mrb[52].mxu0 %v4196_v12  ;;  %4273 = vmatmul.mubr.bf16.vlgmr.msra.gmra.mrb[52].mxu1 %v4196_v12 }
 0xd7f   :  { %4337 = vmatpush1.bf16.msra.mxu0 %v6934_v41  ;;  %4380 = vmatpush1.bf16.msra.mxu1 %v6937_v21 }
 0xd80   :  { %4338 = vmatprep.subr.bf16.mxu0 %v6940_v23  ;;  %4381 = vmatprep.subr.bf16.mxu1 %v6943_v19 }
 0xd81   :  { %4368 = vmatprep.mubr.bf16.mxu0 %v5974_v0  ;;  %4411 = vmatprep.mubr.bf16.mxu1 %v5974_v0 }
 0xd83   :  { %4339 = vmatpush1.bf16.msra.mxu0 %v6948_v49  ;;  %4382 = vmatpush1.bf16.msra.mxu1 %v6951_v46 }
 0xd84   :  { %4340 = vmatprep.subr.bf16.mxu0 %v6954_v32  ;;  %4383 = vmatprep.subr.bf16.mxu1 %v6957_v31 }
 0xd87   :  { %4341 = vmatpush1.bf16.msra.mxu0 %v6960_v2  ;;  %4384 = vmatpush1.bf16.msra.mxu1 %v6963_v47 }
 0xd88   :  { %4342 = vmatprep.subr.bf16.mxu0 %v6966_v48  ;;  %4385 = vmatprep.subr.bf16.mxu1 %v6969_v63 }
 0xd8b   :  { %4343 = vmatpush1.bf16.msra.mxu0 %v6972_v51  ;;  %4386 = vmatpush1.bf16.msra.mxu1 %v6975_v1 }
 0xd8c   :  { %4344 = vmatprep.subr.bf16.mxu0 %v6978_v52  ;;  %4387 = vmatprep.subr.bf16.mxu1 %v6981_v57 }
 0xd8f   :  { %4345 = vmatpush1.bf16.msra.mxu0 %v6984_v56  ;;  %4388 = vmatpush1.bf16.msra.mxu1 %v6987_v39 }
 0xd90   :  { %4346 = vmatprep.subr.bf16.mxu0 %v6990_v53  ;;  %4389 = vmatprep.subr.bf16.mxu1 %v6993_v59 }
 0xd93   :  { %4347 = vmatpush1.bf16.msra.mxu0 %v6996_v36  ;;  %4390 = vmatpush1.bf16.msra.mxu1 %v6999_v58 }
 0xd94   :  { %4348 = vmatprep.subr.bf16.mxu0 %v7002_v37  ;;  %4391 = vmatprep.subr.bf16.mxu1 %v7005_v3 }
 0xd97   :  { %4349 = vmatpush1.bf16.msra.mxu0 %v7008_v5  ;;  %4392 = vmatpush1.bf16.msra.mxu1 %v7011_v6 }
 0xd98   :  { %4350 = vmatprep.subr.bf16.mxu0 %v7014_v7  ;;  %4393 = vmatprep.subr.bf16.mxu1 %v7017_v8 }
 0xd9b   :  { %4351 = vmatpush1.bf16.msra.mxu0 %v7020_v9  ;;  %4394 = vmatpush1.bf16.msra.mxu1 %v7023_v10 }
 0xd9c   :  { %4475 = vmatprep.subr.bf16.mxu0 %v6912_v4  ;;  %4518 = vmatprep.subr.bf16.mxu1 %v6915_v50 }
 0xe51   :  { %v4231_v43 = vpop.f32.mrb[52].mxu0  ;;  %v4274_v62 = vpop.f32.mrb[52].mxu1 }
 0xe52   :  { %v5118_v25 = vadd.f32 %v4231_v43, %v6758_v22  ;;  %v4233_v61 = vpop.f32.mrb[53].mxu0  ;;  %v4276_v20 = vpop.f32.mrb[53].mxu1  ;;  %v5150_v50 = vadd.f32 %v4274_v62, %v6763_v27 }
 0xe53   :  { %v5119_v33 = vadd.f32 %v4233_v61, %v6760_v24  ;;  %v4235_v28 = vpop.f32.mrb[54].mxu0  ;;  %v4278_v35 = vpop.f32.mrb[54].mxu1  ;;  %v5151_v16 = vadd.f32 %v4276_v20, %v6769_v44 }
 0xe54   :  { %v4291_v26 = vmul.f32 0.5, %v5118_v25  ;;  %v5120_v54 = vadd.f32 %v4235_v28, %v6758_v22  ;;  %v4237_v34 = vpop.f32.mrb[55].mxu0  ;;  %v4280_v45 = vpop.f32.mrb[55].mxu1  ;;  %v5152_v14 = vadd.f32 %v4278_v35, %v6763_v27 }
 0xe55   :  { %v4299_v55 = vmul.f32 0.5, %v5119_v33  ;;  %v5121_v4 = vadd.f32 %v4237_v34, %v6760_v24  ;;  %v5153_v29 = vadd.f32 %v4280_v45, %v6769_v44  ;;  %v4309_v17 = vmul.f32 0.5, %v5151_v16 }
 0xe56   :  { %5704 = vtanh.f32 %v4291_v26  ;;  %v4292_v38 = vmul.f32 0.5, %v5120_v54 }
 0xe57   :  { %5706 = vtanh.f32 %v4299_v55  ;;  %v4300_v42 = vmul.f32 0.5, %v5121_v4  ;;  %v4310_v11 = vmul.f32 0.5, %v5153_v29 }
 0xe58   :  { %5708 = vtanh.f32 %v4292_v38 }
 0xe59   :  { %5710 = vtanh.f32 %v5150_v50 }
 0xe5a   :  { %5712 = vtanh.f32 %v4300_v42 }
 0xe5b   :  { %5714 = vtanh.f32 %v5152_v14 }
 0xe5c   :  { %5716 = vtanh.f32 %v4309_v17 }
 0xe5d   :  { %5718 = vtanh.f32 %v4310_v11 }
 0xe60   :  { %v5705_v40 = vpop.eup %5704 }
 0xe61   :  { %v5707_v15 = vpop.eup %5706  ;;  %v4295_v60 = vmul.f32 0.5, %v5705_v40 }
 0xe62   :  { %v4303_v18 = vmul.f32 0.5, %v5707_v15  ;;  %v5709_v12 = vpop.eup %5708 }
 0xe63   :  { %v4297_v43 = vadd.f32 0.5, %v4295_v60  ;;  %v5711_v62 = vpop.eup %5710  ;;  %v4296_v61 = vmul.f32 0.5, %v5709_v12 }
 0xe64   :  { %v4305_v25 = vadd.f32 0.5, %v4303_v18  ;;  %v5713_v33 = vpop.eup %5712 }
 0xe65   :  { %v4319_v28 = vmul.f32 %v5711_v62, %v4297_v43  ;;  %v4298_v20 = vadd.f32 0.5, %v4296_v61  ;;  %v4304_v26 = vmul.f32 0.5, %v5713_v33  ;;  %v5715_v54 = vpop.eup %5714 }
 0xe66   :  { %v4317_v35 = vmul.f32 %v4305_v25, %v7037_v30  ;;  %v5717_v38 = vpop.eup %5716 }
 0xe67   :  { %v4306_v45 = vadd.f32 0.5, %v4304_v26  ;;  %v4320_v55 = vmul.f32 %v5715_v54, %v4298_v20  ;;  %v5719_v42 = vpop.eup %5718  ;;  %v4313_v14 = vmul.f32 0.5, %v5717_v38 }
 0xe68   :  { %v7087_v34 = vadd.f32 %v4319_v28, %v4317_v35  ;;  %v4314_v30 = vmul.f32 0.5, %v5719_v42 }
 0xe69   :  { %v4318_v4 = vmul.f32 %v4306_v45, %v7041_v13  ;;  %v4315_v29 = vadd.f32 0.5, %v4313_v14 }
 0xe6a   :  { %5720 = vtanh.f32 %v7087_v34  ;;  %v4316_v40 = vadd.f32 0.5, %v4314_v30 }
 0xe6b   :  { %v7091_v50 = vadd.f32 %v4320_v55, %v4318_v4 }
 0xe6d   :  { %5722 = vtanh.f32 %v7091_v50 }
 0xe74   :  { %v5721_v16 = vpop.eup %5720 }
 0xe75   :  { %v4325_v60 = vmul.f32 %v5721_v16, %v4315_v29  ;;  %v5975_v29 = vmov 0.0  }
 0xe77   :  { %v5723_v15 = vpop.eup %5722 }
 0xe78   :  { %v4326_v17 = vmul.f32 %v5723_v15, %v4316_v40  ;;  %v5437_v40 = vld [vmem:[#allocation13 + $0x8] sm:$0xff]   ;;  %v5438_v15 = vld [vmem:[#allocation13 + $0x10] sm:$0xff]  }
 0xe7a   :  { %v4335_v18 = vpack.c.bf16 %v4326_v17, %v4325_v60  ;;  %v5439_v60 = vld [vmem:[#allocation13 + $0x18] sm:$0xff]   ;;  %v5440_v17 = vld [vmem:[#allocation13 + $0x20] sm:$0xff]  }
 0xe7c   :  { %4369 = vmatmul.mubr.bf16.vlgmr.msra.gmra.mrb[56].mxu0 %v4335_v18  ;;  %4412 = vmatmul.mubr.bf16.vlgmr.msra.gmra.mrb[56].mxu1 %v4335_v18  ;;  %v5441_v18 = vld [vmem:[#allocation13 + $0x28] sm:$0xff]  }
 0xe7d   :  { %4476 = vmatpush1.bf16.msra.mxu0 %v6934_v41  ;;  %4519 = vmatpush1.bf16.msra.mxu1 %v6937_v21 }
 0xe7e   :  { %4477 = vmatprep.subr.bf16.mxu0 %v6940_v23  ;;  %4520 = vmatprep.subr.bf16.mxu1 %v6943_v19 }
 0xe7f   :  { %4507 = vmatprep.mubr.bf16.mxu0 %v5974_v0  ;;  %4550 = vmatprep.mubr.bf16.mxu1 %v5974_v0 }
 0xe81   :  { %4478 = vmatpush1.bf16.msra.mxu0 %v6948_v49  ;;  %4521 = vmatpush1.bf16.msra.mxu1 %v6951_v46 }
 0xe82   :  { %4479 = vmatprep.subr.bf16.mxu0 %v6954_v32  ;;  %4522 = vmatprep.subr.bf16.mxu1 %v6957_v31 }
 0xe85   :  { %4480 = vmatpush1.bf16.msra.mxu0 %v6960_v2  ;;  %4523 = vmatpush1.bf16.msra.mxu1 %v6963_v47 }
 0xe86   :  { %4481 = vmatprep.subr.bf16.mxu0 %v6966_v48  ;;  %4524 = vmatprep.subr.bf16.mxu1 %v6969_v63 }
 0xe89   :  { %4482 = vmatpush1.bf16.msra.mxu0 %v6972_v51  ;;  %4525 = vmatpush1.bf16.msra.mxu1 %v6975_v1 }
 0xe8a   :  { %4483 = vmatprep.subr.bf16.mxu0 %v6978_v52  ;;  %4526 = vmatprep.subr.bf16.mxu1 %v6981_v57 }
 0xe8d   :  { %4484 = vmatpush1.bf16.msra.mxu0 %v6984_v56  ;;  %4527 = vmatpush1.bf16.msra.mxu1 %v6987_v39 }
 0xe8e   :  { %4485 = vmatprep.subr.bf16.mxu0 %v6990_v53  ;;  %4528 = vmatprep.subr.bf16.mxu1 %v6993_v59 }
 0xe91   :  { %4486 = vmatpush1.bf16.msra.mxu0 %v6996_v36  ;;  %4529 = vmatpush1.bf16.msra.mxu1 %v6999_v58 }
 0xe92   :  { %4487 = vmatprep.subr.bf16.mxu0 %v7002_v37  ;;  %4530 = vmatprep.subr.bf16.mxu1 %v7005_v3 }
 0xe95   :  { %4488 = vmatpush1.bf16.msra.mxu0 %v7008_v5  ;;  %4531 = vmatpush1.bf16.msra.mxu1 %v7011_v6 }
 0xe96   :  { %4489 = vmatprep.subr.bf16.mxu0 %v7014_v7  ;;  %4532 = vmatprep.subr.bf16.mxu1 %v7017_v8 }
 0xe99   :  { %4490 = vmatpush1.bf16.msra.mxu0 %v7020_v9  ;;  %4533 = vmatpush1.bf16.msra.mxu1 %v7023_v10 }
 0xe9a   :  { %5078 = vmatprep.subr.bf16.mxu0 %v5975_v29 }
 0xf4f   :  { %v4370_v0 = vpop.f32.mrb[56].mxu0  ;;  %v4413_v41 = vpop.f32.mrb[56].mxu1 }
 0xf50   :  { %v5122_v21 = vadd.f32 %v4370_v0, %v6758_v22  ;;  %v4372_v23 = vpop.f32.mrb[57].mxu0  ;;  %v4415_v19 = vpop.f32.mrb[57].mxu1  ;;  %v5154_v1 = vadd.f32 %v4413_v41, %v6763_v27  ;;  %v5442_v0 = vld [vmem:[#allocation13 + $0x30] sm:$0xff]   ;;  %v5443_v41 = vld [vmem:[#allocation13 + $0x38] sm:$0xff]  }
 0xf51   :  { %v5123_v49 = vadd.f32 %v4372_v23, %v6760_v24  ;;  %v4374_v46 = vpop.f32.mrb[58].mxu0  ;;  %v4417_v32 = vpop.f32.mrb[58].mxu1  ;;  %v5155_v39 = vadd.f32 %v4415_v19, %v6769_v44 }
 0xf52   :  { %v4430_v31 = vmul.f32 0.5, %v5122_v21  ;;  %v5124_v2 = vadd.f32 %v4374_v46, %v6758_v22  ;;  %v4376_v47 = vpop.f32.mrb[59].mxu0  ;;  %v4419_v48 = vpop.f32.mrb[59].mxu1  ;;  %v5156_v56 = vadd.f32 %v4417_v32, %v6763_v27 }
 0xf53   :  { %v4438_v63 = vmul.f32 0.5, %v5123_v49  ;;  %v5125_v51 = vadd.f32 %v4376_v47, %v6760_v24  ;;  %v5157_v53 = vadd.f32 %v4419_v48, %v6769_v44  ;;  %v4448_v37 = vmul.f32 0.5, %v5155_v39 }
 0xf54   :  { %5724 = vtanh.f32 %v4430_v31  ;;  %v4431_v52 = vmul.f32 0.5, %v5124_v2 }
 0xf55   :  { %5726 = vtanh.f32 %v4438_v63  ;;  %v4439_v57 = vmul.f32 0.5, %v5125_v51  ;;  %v4449_v5 = vmul.f32 0.5, %v5157_v53 }
 0xf56   :  { %5728 = vtanh.f32 %v4431_v52 }
 0xf57   :  { %5730 = vtanh.f32 %v5154_v1 }
 0xf58   :  { %5732 = vtanh.f32 %v4439_v57 }
 0xf59   :  { %5734 = vtanh.f32 %v5156_v56 }
 0xf5a   :  { %5736 = vtanh.f32 %v4448_v37 }
 0xf5b   :  { %5738 = vtanh.f32 %v4449_v5 }
 0xf5e   :  { %v5725_v59 = vpop.eup %5724 }
 0xf5f   :  { %v5727_v36 = vpop.eup %5726  ;;  %v4434_v58 = vmul.f32 0.5, %v5725_v59 }
 0xf60   :  { %v4442_v3 = vmul.f32 0.5, %v5727_v36  ;;  %v5729_v6 = vpop.eup %5728 }
 0xf61   :  { %v4436_v7 = vadd.f32 0.5, %v4434_v58  ;;  %v5731_v8 = vpop.eup %5730  ;;  %v4435_v10 = vmul.f32 0.5, %v5729_v6 }
 0xf62   :  { %v4444_v9 = vadd.f32 0.5, %v4442_v3  ;;  %v5733_v13 = vpop.eup %5732 }
 0xf63   :  { %v4458_v11 = vmul.f32 %v5731_v8, %v4436_v7  ;;  %v4437_v43 = vadd.f32 0.5, %v4435_v10  ;;  %v4443_v62 = vmul.f32 0.5, %v5733_v13  ;;  %v5735_v25 = vpop.eup %5734 }
 0xf64   :  { %v4456_v12 = vmul.f32 %v4444_v9, %v7087_v34  ;;  %v5737_v26 = vpop.eup %5736 }
 0xf65   :  { %v4445_v33 = vadd.f32 0.5, %v4443_v62  ;;  %v4459_v28 = vmul.f32 %v5735_v25, %v4437_v43  ;;  %v5739_v54 = vpop.eup %5738  ;;  %v4452_v45 = vmul.f32 0.5, %v5737_v26 }
 0xf66   :  { %v7135_v61 = vadd.f32 %v4458_v11, %v4456_v12  ;;  %v4453_v34 = vmul.f32 0.5, %v5739_v54 }
 0xf67   :  { %v4457_v35 = vmul.f32 %v4445_v33, %v7091_v50  ;;  %v4454_v4 = vadd.f32 0.5, %v4452_v45  ;;  %v5436_v50 = vld [vmem:[#allocation13] sm:$0xff]  }
 0xf68   :  { %5740 = vtanh.f32 %v7135_v61  ;;  %v4455_v38 = vadd.f32 0.5, %v4453_v34 }
 0xf69   :  { %v7139_v20 = vadd.f32 %v4459_v28, %v4457_v35 }
 0xf6b   :  { %5742 = vtanh.f32 %v7139_v20 }
 0xf72   :  { %v5741_v55 = vpop.eup %5740 }
 0xf73   :  { %v4464_v14 = vmul.f32 %v5741_v55, %v4454_v4 }
 0xf75   :  { %v5743_v42 = vpop.eup %5742 }
 0xf76   :  { %v4465_v30 = vmul.f32 %v5743_v42, %v4455_v38 }
 0xf78   :  { %v4474_v16 = vpack.c.bf16 %v4465_v30, %v4464_v14 }
 0xf7a   :  { %4508 = vmatmul.mubr.bf16.vlgmr.msra.gmra.mrb[60].mxu0 %v4474_v16  ;;  %4551 = vmatmul.mubr.bf16.vlgmr.msra.gmra.mrb[60].mxu1 %v4474_v16  ;;  %v5060_v16 = vld [vmem:[%s7177_s7] ss:$0 sm:$0xff] }
 0xf7b   :  { %5079 = vmatpush3.bf16.msra.mxu0 %v5436_v50  ;;  %5094 = vmatprep.mubr.msk.bf16.mxu0 %vm5976_vm0, %v5975_v29 }
 0xf7c   :  { %5080 = vmatprep.subr.bf16.mxu0 %v5975_v29 }
 0xf7f   :  { %5081 = vmatpush3.bf16.msra.mxu0 %v5437_v40 }
 0xf80   :  { %5082 = vmatprep.subr.bf16.mxu0 %v5975_v29 }
 0xf83   :  { %5083 = vmatpush3.bf16.msra.mxu0 %v5438_v15 }
 0xf84   :  { %5084 = vmatprep.subr.bf16.mxu0 %v5975_v29 }
 0xf87   :  { %5085 = vmatpush3.bf16.msra.mxu0 %v5439_v60 }
 0xf88   :  { %5086 = vmatprep.subr.bf16.mxu0 %v5975_v29 }
 0xf8b   :  { %5087 = vmatpush3.bf16.msra.mxu0 %v5440_v17 }
 0xf8c   :  { %5088 = vmatprep.subr.bf16.mxu0 %v5975_v29 }
 0xf8f   :  { %5089 = vmatpush3.bf16.msra.mxu0 %v5441_v18 }
 0xf90   :  { %5090 = vmatprep.subr.bf16.mxu0 %v5975_v29 }
 0xf93   :  { %5091 = vmatpush3.bf16.msra.mxu0 %v5442_v0 }
 0xf94   :  { %5092 = vmatprep.subr.bf16.mxu0 %v5975_v29 }
 0xf97   :  { %5093 = vmatpush3.bf16.msra.mxu0 %v5443_v41 }
0x104d   :  { %v4509_v21 = vpop.f32.mrb[60].mxu0  ;;  %v4552_v23 = vpop.f32.mrb[60].mxu1 }
0x104e   :  { %v5126_v19 = vadd.f32 %v4509_v21, %v6758_v22  ;;  %v4511_v49 = vpop.f32.mrb[61].mxu0  ;;  %v4554_v46 = vpop.f32.mrb[61].mxu1  ;;  %v5158_v57 = vadd.f32 %v4552_v23, %v6763_v27 }
0x104f   :  { %v5127_v32 = vadd.f32 %v4511_v49, %v6760_v24  ;;  %v4513_v31 = vpop.f32.mrb[62].mxu0  ;;  %v4556_v2 = vpop.f32.mrb[62].mxu1  ;;  %v5159_v59 = vadd.f32 %v4554_v46, %v6769_v44 }
0x1050   :  { %v4569_v47 = vmul.f32 0.5, %v5126_v19  ;;  %v5128_v48 = vadd.f32 %v4513_v31, %v6758_v22  ;;  %v4515_v63 = vpop.f32.mrb[63].mxu0  ;;  %v4558_v51 = vpop.f32.mrb[63].mxu1  ;;  %v5160_v53 = vadd.f32 %v4556_v2, %v6763_v27 }
0x1051   :  { %v4577_v1 = vmul.f32 0.5, %v5127_v32  ;;  %v5129_v52 = vadd.f32 %v4515_v63, %v6760_v24  ;;  %v4587_v22 = vmul.f32 0.5, %v5159_v59  ;;  %v5161_v36 = vadd.f32 %v4558_v51, %v6769_v44 }
0x1052   :  { %5744 = vtanh.f32 %v4569_v47  ;;  %v4570_v56 = vmul.f32 0.5, %v5128_v48 }
0x1053   :  { %5746 = vtanh.f32 %v4577_v1  ;;  %v4578_v39 = vmul.f32 0.5, %v5129_v52  ;;  %v4588_v5 = vmul.f32 0.5, %v5161_v36 }
0x1054   :  { %5748 = vtanh.f32 %v4570_v56 }
0x1055   :  { %5750 = vtanh.f32 %v5158_v57 }
0x1056   :  { %5752 = vtanh.f32 %v4578_v39 }
0x1057   :  { %5754 = vtanh.f32 %v5160_v53 }
0x1058   :  { %5756 = vtanh.f32 %v4587_v22 }
0x1059   :  { %5758 = vtanh.f32 %v4588_v5 }
0x105c   :  { %v5745_v58 = vpop.eup %5744 }
0x105d   :  { %v5747_v37 = vpop.eup %5746  ;;  %v4573_v24 = vmul.f32 0.5, %v5745_v58 }
0x105e   :  { %v4581_v3 = vmul.f32 0.5, %v5747_v37  ;;  %v5749_v6 = vpop.eup %5748 }
0x105f   :  { %v4575_v7 = vadd.f32 0.5, %v4573_v24  ;;  %v5751_v8 = vpop.eup %5750  ;;  %v4574_v10 = vmul.f32 0.5, %v5749_v6 }
0x1060   :  { %v4583_v9 = vadd.f32 0.5, %v4581_v3  ;;  %v5753_v27 = vpop.eup %5752 }
0x1061   :  { %v4597_v13 = vmul.f32 %v5751_v8, %v4575_v7  ;;  %v4576_v12 = vadd.f32 0.5, %v4574_v10  ;;  %v4582_v43 = vmul.f32 0.5, %v5753_v27  ;;  %v5755_v62 = vpop.eup %5754 }
0x1062   :  { %v4595_v11 = vmul.f32 %v4583_v9, %v7135_v61  ;;  %v5757_v35 = vpop.eup %5756 }
0x1063   :  { %v4584_v25 = vadd.f32 0.5, %v4582_v43  ;;  %v4598_v33 = vmul.f32 %v5755_v62, %v4576_v12  ;;  %v4591_v54 = vmul.f32 0.5, %v5757_v35  ;;  %v5759_v45 = vpop.eup %5758 }
0x1064   :  { %v4599_v44 = vadd.f32 %v4597_v13, %v4595_v11  ;;  %v4592_v55 = vmul.f32 0.5, %v5759_v45 }
0x1065   :  { %v4596_v28 = vmul.f32 %v4584_v25, %v7139_v20  ;;  %v4593_v34 = vadd.f32 0.5, %v4591_v54 }
0x1066   :  { %5760 = vtanh.f32 %v4599_v44  ;;  %v4594_v61 = vadd.f32 0.5, %v4592_v55 }
0x1067   :  { %v4600_v26 = vadd.f32 %v4598_v33, %v4596_v28 }
0x1069   :  { %5762 = vtanh.f32 %v4600_v26 }
0x1070   :  { %v5761_v4 = vpop.eup %5760 }
0x1071   :  { %v4603_v38 = vmul.f32 %v5761_v4, %v4593_v34 }
0x1073   :  { %v5763_v42 = vpop.eup %5762 }
0x1074   :  { %v4604_v14 = vmul.f32 %v5763_v42, %v4594_v61 }
0x1076   :  { %v4605_v30 = vpack.c.bf16 %v4604_v14, %v4603_v38 }
0x1078   :  { %5095 = vmatmul.mubr.bf16.vlgmr.msra.gmra.mrb[64].mxu0 %v4605_v30 }
0x114b   :  { %v4711_v50 = vpop.f32.mrb[64].mxu0 }
0x114c   :  { %v4712_v20 = vadd.f32 %v5060_v16, %v4711_v50  ;;  %v5096_v29 = vpop.f32.mrb[65].mxu0 }
0x114d   :  { %v4714_v40 = vpop.f32.mrb[66].mxu0 }
0x114e   :  { %4718 = vst [vmem:[#allocation15] sm:$0xff] %v4712_v20  ;;  %v4715_v15 = vadd.f32 %v5060_v16, %v4714_v40  ;;  %v5097_v60 = vpop.f32.mrb[67].mxu0 }
0x1150   :  { %4719 = vst [vmem:[#allocation15 + $0x8] sm:$0xff] %v4715_v15 }
0x1151   :  { %5939 = shalt.err (!%p5936_p10)
}
0x1152   :  { %s5940_s24 = scalar_lea.hbm %s7178_s8, 256 }
0x1153   :  { %p5941_p11 = scmp.ne.s32.totalorder %s7178_s8, %s5940_s24  ;;  %p5944_p12 = scmp.lt.u32.totalorder %s5940_s24, %s7178_s8 }
0x1155   :  { %p5946_p13 = pnand %p5944_p12, %p5941_p11 }
0x1157   :  { %5949 = shalt.err (!%p5946_p13)
}
0x1158   :  { %4731 = dma.vmem_to_hbm [thread:$0]  %s4726_s23, 256, %s7178_s8, [#allocation6], %s5961_s15, %s5961_s15, %s5962_s16  }
0x1159   :  { %5958 = dma.done.wait [#allocation6], 256  }
0x115a   :  { %5959 = vsyncadd [#allocation6], 4294967040 }
0x115b   :  { %4735 = vsyncpa [#allocation5], 1 }
0x115c   :  { %4736 = vsyncpa [#allocation8], 1 }
0x115d   :  { %4737 = vsyncpa [#allocation11], 1 }
0x115e   :  { %4738 = vsyncpa [#allocation14], 1 }
0x115f   :  { %4739 = vsyncpa [#allocation6], 1 }

</bundles_post_ra>
